<compile_context>
chip_gen: v6e
topology: v6e:2x2x1
jax: 0.10.0
libtpu: 0.0.40
codegen_flags: <defaults>
</compile_context>

<pallas_src>
import jax
import jax.numpy as jnp
from jax.experimental import pallas as pl
from jax.experimental.pallas import tpu as pltpu

IN_CH = 1
CONV_CH = 64
KSIZE = 3
SEQ_LEN = 356                  # conv(pad=1, stride=1) keeps 356; pool/2 -> 178
POOL_LEN = SEQ_LEN // 2        # 178
FC_IN = CONV_CH * POOL_LEN     # 11392 == nn.Linear in_features
NUM_CLASSES = 100
FC_OUT = NUM_CLASSES + 1       # 101

PAIRS = POOL_LEN // 2          # 89 pooled-time pairs -> one 128-lane group each
K_BLOCKS = 90                  # pad 89 -> 90 so K factors as 2 equal halves
K_PAD = K_BLOCKS * 128         # 11520 (padded FC reduction length)
NH = 2                         # K halves ("parallel": both TCs on v7x)
K_HALF = K_PAD // NH           # 5760 = 45 * 128


def conv_relu_pool_kernel(s_ref, a_ref, b_ref, out_ref):
    # s_ref : (6, B, 89) f32, s_ref[k][b, p] == x_padded[b, 4*p + k]
    # a_ref : (5, 128) f32 packed conv taps:
    #         lanes 0:64  = [w0, w1, w2, 0, 0]   (conv at time 4p / 4p+1)
    #         lanes 64:128= [0, 0, w0, w1, w2]   (conv at time 4p+2 / 4p+3)
    # b_ref : (1, 128) f32 bias duplicated across both halves.
    # out_ref: (B, 90, 128) bf16.  out[b, p, 0:64]   = pooled[b, :, 2p]
    #                              out[b, p, 64:128] = pooled[b, :, 2p+1]
    # i.e. flat index p*128 + half*64 + c == t*64 + c (t-major flatten);
    # row 89 is the zero pad of the K axis.
    # acc_a[..., lo] = conv(4p),   acc_a[..., hi] = conv(4p+2)
    # acc_b[..., lo] = conv(4p+1), acc_b[..., hi] = conv(4p+3)
    acc_a = s_ref[0][:, :, None] * a_ref[0:1, :][None]
    acc_b = s_ref[1][:, :, None] * a_ref[0:1, :][None]
    for m in range(1, 5):
        wm = a_ref[m:m + 1, :][None]            # (1, 1, 128)
        acc_a = acc_a + s_ref[m][:, :, None] * wm
        acc_b = acc_b + s_ref[m + 1][:, :, None] * wm
    # ReLU(max) == max(ReLU) since ReLU is monotone; bias is common to both.
    pooled = jnp.maximum(jnp.maximum(acc_a, acc_b) + b_ref[...][None], 0.0)
    pad = jnp.zeros((pooled.shape[0], K_BLOCKS - PAIRS, pooled.shape[-1]),
                    pooled.dtype)
    out_ref[...] = jnp.concatenate([pooled, pad], axis=1).astype(out_ref.dtype)


def fc_kernel(a_ref, w_ref, b_ref, out_ref):
    # a_ref  : (B, K_HALF)      bf16 activation half
    # w_ref  : (K_HALF, 101)    bf16 pre-permuted weight half
    # b_ref  : (1, 101)         f32 bias
    # out_ref: (1, B, 101)      f32 partial sum for this K-half
    h = pl.program_id(0)
    acc = jnp.dot(a_ref[...], w_ref[...], preferred_element_type=jnp.float32)
    bias = b_ref[...] * (h == 0).astype(jnp.float32)   # bias only in half 0
    out_ref[...] = (acc + bias)[None]


def prepare_params(conv_w, conv_b, fc_w, fc_b):
    """One-time parameter repack (call OUTSIDE the jitted forward)."""
    w = conv_w[:, 0, :].astype(jnp.float32)                   # (64, 3) == w[c, k]
    w0, w1, w2 = w[:, 0], w[:, 1], w[:, 2]
    z = jnp.zeros_like(w0)
    conv_a = jnp.stack([
        jnp.concatenate([w0, z]),
        jnp.concatenate([w1, z]),
        jnp.concatenate([w2, w0]),
        jnp.concatenate([z, w1]),
        jnp.concatenate([z, w2]),
    ], axis=0)                                                 # (5, 128)
    conv_b_dup = jnp.concatenate([conv_b, conv_b])[None, :].astype(jnp.float32)
    # PyTorch flatten is channel-major (col = c*178 + t); re-order K to the
    # kernel's t-major (t*64 + c) order, zero-pad K to 11520, store bf16.
    w3 = fc_w.reshape(FC_OUT, CONV_CH, POOL_LEN)               # [n, c, t]
    wp = jnp.transpose(w3, (2, 1, 0)).reshape(FC_IN, FC_OUT)   # row = t*64 + c
    wp = jnp.pad(wp, ((0, K_PAD - FC_IN), (0, 0))).astype(jnp.bfloat16)
    fc_b_row = fc_b[None, :].astype(jnp.float32)               # (1, 101)
    return conv_a, conv_b_dup, wp, fc_b_row


def cnn_forward(x, conv_a, conv_b_dup, fc_w_prepped, fc_b_row):
    """x: (B, 1, 356) f32; params from prepare_params.  Returns (B, 101) f32."""
    B = x.shape[0]

    # tiny glue: zero-pad (Conv1d padding=1) and build 6 stride-4 shifted views
    xs = x.reshape(B, SEQ_LEN)                        # in_channels == 1
    xp = jnp.pad(xs, ((0, 0), (1, 1)))                # (B, 358)
    s6 = jnp.stack(
        [xp[:, k:k + 4 * (PAIRS - 1) + 1:4] for k in range(6)], axis=0
    )                                                 # (6, B, 89)

    vmem = pl.BlockSpec(memory_space=pltpu.MemorySpace.VMEM)
    conv_out = pl.pallas_call(
        conv_relu_pool_kernel,
        out_shape=jax.ShapeDtypeStruct((B, K_BLOCKS, 128), jnp.bfloat16),
        in_specs=[vmem, vmem, vmem],
        out_specs=vmem,
    )(s6, conv_a, conv_b_dup)                         # (B, 90, 128)

    # row-major (B, 90, 128) == (B, 11520): free reshape, already in the
    # t-major flattened order the pre-permuted FC weight expects.
    act = conv_out.reshape(B, K_PAD)

    partials = pl.pallas_call(
        fc_kernel,
        out_shape=jax.ShapeDtypeStruct((NH, B, FC_OUT), jnp.float32),
        grid_spec=pltpu.PrefetchScalarGridSpec(
            num_scalar_prefetch=0,
            grid=(NH,),
            in_specs=[
                pl.BlockSpec((B, K_HALF), lambda h: (0, h)),
                pl.BlockSpec((K_HALF, FC_OUT), lambda h: (h, 0)),
                pl.BlockSpec((1, FC_OUT), lambda h: (0, 0)),
            ],
            out_specs=pl.BlockSpec((1, B, FC_OUT), lambda h: (h, 0, 0)),
        ),
        compiler_params=pltpu.CompilerParams(
            dimension_semantics=("parallel",)),
    )(act, fc_w_prepped, fc_b_row)                    # (2, B, 101)

    return partials[0] + partials[1]                  # (B, 101)


def reference(x, conv_w, conv_b, fc_w, fc_b):
    """Pure-JAX reference mirroring the PyTorch forward (f32 end to end)."""
    B = x.shape[0]
    xp = jnp.pad(x[:, 0, :], ((0, 0), (1, 1)))
    patches = jnp.stack([xp[:, t:t + SEQ_LEN] for t in range(KSIZE)], axis=-1)
    y = jnp.einsum("btk,ck->bct", patches, conv_w[:, 0, :]) + conv_b[None, :, None]
    y = jnp.maximum(y, 0.0)                                     # (B, 64, 356)
    y = jnp.max(y.reshape(B, CONV_CH, POOL_LEN, 2), axis=-1)    # (B, 64, 178)
    flat = y.reshape(B, FC_IN)                                  # channel-major
    return flat @ fc_w.T + fc_b[None, :]


if __name__ == "__main__":
    key = jax.random.PRNGKey(0)
    kx, kcw, kcb, kfw, kfb = jax.random.split(key, 5)
    B = 2
    x = jax.random.normal(kx, (B, IN_CH, SEQ_LEN), dtype=jnp.float32)
    conv_w = 0.1 * jax.random.normal(kcw, (CONV_CH, IN_CH, KSIZE), dtype=jnp.float32)
    conv_b = 0.1 * jax.random.normal(kcb, (CONV_CH,), dtype=jnp.float32)
    fc_w = 0.02 * jax.random.normal(kfw, (FC_OUT, FC_IN), dtype=jnp.float32)
    fc_b = 0.02 * jax.random.normal(kfb, (FC_OUT,), dtype=jnp.float32)

    params = prepare_params(conv_w, conv_b, fc_w, fc_b)   # one-time repack
    fwd = jax.jit(cnn_forward)
    out = jax.block_until_ready(fwd(x, *params))

    ref = reference(x, conv_w, conv_b, fc_w, fc_b)
    assert out.shape == (B, FC_OUT)
    max_err = float(jnp.max(jnp.abs(out - ref)))
    assert jnp.allclose(out, ref, atol=1e-2, rtol=1e-2), max_err
    print("KERNEL_OK")
</pallas_src>

<mosaic_0001>
module attributes {stable_mosaic.version = 11 : i64} {
  func.func @conv_relu_pool_kernel(%arg0: memref<6x2x89xf32, #tpu.memory_space<vmem>>, %arg1: memref<5x128xf32, #tpu.memory_space<vmem>>, %arg2: memref<1x128xf32, #tpu.memory_space<vmem>>, %arg3: memref<2x90x128xbf16, #tpu.memory_space<vmem>>) attributes {dimension_semantics = [], scalar_prefetch = 0 : i64, scratch_operands = 0 : i64, tpu.core_type = #tpu.core_type<tc>} {
    %c0 = arith.constant 0 : index
    %c0_0 = arith.constant 0 : index
    %c0_1 = arith.constant 0 : index
    %0 = vector.load %arg0[%c0, %c0_0, %c0_1] : memref<6x2x89xf32, #tpu.memory_space<vmem>>, vector<1x2x89xf32>
    %1 = vector.shape_cast %0 : vector<1x2x89xf32> to vector<2x89xf32>
    %2 = vector.shape_cast %1 : vector<2x89xf32> to vector<2x89x1xf32>
    %c0_2 = arith.constant 0 : index
    %c0_3 = arith.constant 0 : index
    %3 = vector.load %arg1[%c0_2, %c0_3] : memref<5x128xf32, #tpu.memory_space<vmem>>, vector<1x128xf32>
    %4 = vector.shape_cast %3 : vector<1x128xf32> to vector<1x1x128xf32>
    %5 = vector.broadcast %2 : vector<2x89x1xf32> to vector<2x89x128xf32>
    %6 = vector.broadcast %4 : vector<1x1x128xf32> to vector<2x89x128xf32>
    %7 = arith.mulf %5, %6 : vector<2x89x128xf32>
    %c1 = arith.constant 1 : index
    %c0_4 = arith.constant 0 : index
    %c0_5 = arith.constant 0 : index
    %8 = vector.load %arg0[%c1, %c0_4, %c0_5] : memref<6x2x89xf32, #tpu.memory_space<vmem>>, vector<1x2x89xf32>
    %9 = vector.shape_cast %8 : vector<1x2x89xf32> to vector<2x89xf32>
    %10 = vector.shape_cast %9 : vector<2x89xf32> to vector<2x89x1xf32>
    %c0_6 = arith.constant 0 : index
    %c0_7 = arith.constant 0 : index
    %11 = vector.load %arg1[%c0_6, %c0_7] : memref<5x128xf32, #tpu.memory_space<vmem>>, vector<1x128xf32>
    %12 = vector.shape_cast %11 : vector<1x128xf32> to vector<1x1x128xf32>
    %13 = vector.broadcast %10 : vector<2x89x1xf32> to vector<2x89x128xf32>
    %14 = vector.broadcast %12 : vector<1x1x128xf32> to vector<2x89x128xf32>
    %15 = arith.mulf %13, %14 : vector<2x89x128xf32>
    %c1_8 = arith.constant 1 : index
    %c0_9 = arith.constant 0 : index
    %16 = vector.load %arg1[%c1_8, %c0_9] : memref<5x128xf32, #tpu.memory_space<vmem>>, vector<1x128xf32>
    %17 = vector.shape_cast %16 : vector<1x128xf32> to vector<1x1x128xf32>
    %c1_10 = arith.constant 1 : index
    %c0_11 = arith.constant 0 : index
    %c0_12 = arith.constant 0 : index
    %18 = vector.load %arg0[%c1_10, %c0_11, %c0_12] : memref<6x2x89xf32, #tpu.memory_space<vmem>>, vector<1x2x89xf32>
    %19 = vector.shape_cast %18 : vector<1x2x89xf32> to vector<2x89xf32>
    %20 = vector.shape_cast %19 : vector<2x89xf32> to vector<2x89x1xf32>
    %21 = vector.broadcast %20 : vector<2x89x1xf32> to vector<2x89x128xf32>
    %22 = vector.broadcast %17 : vector<1x1x128xf32> to vector<2x89x128xf32>
    %23 = arith.mulf %21, %22 : vector<2x89x128xf32>
    %24 = arith.addf %7, %23 : vector<2x89x128xf32>
    %c2 = arith.constant 2 : index
    %c0_13 = arith.constant 0 : index
    %c0_14 = arith.constant 0 : index
    %25 = vector.load %arg0[%c2, %c0_13, %c0_14] : memref<6x2x89xf32, #tpu.memory_space<vmem>>, vector<1x2x89xf32>
    %26 = vector.shape_cast %25 : vector<1x2x89xf32> to vector<2x89xf32>
    %27 = vector.shape_cast %26 : vector<2x89xf32> to vector<2x89x1xf32>
    %28 = vector.broadcast %27 : vector<2x89x1xf32> to vector<2x89x128xf32>
    %29 = vector.broadcast %17 : vector<1x1x128xf32> to vector<2x89x128xf32>
    %30 = arith.mulf %28, %29 : vector<2x89x128xf32>
    %31 = arith.addf %15, %30 : vector<2x89x128xf32>
    %c2_15 = arith.constant 2 : index
    %c0_16 = arith.constant 0 : index
    %32 = vector.load %arg1[%c2_15, %c0_16] : memref<5x128xf32, #tpu.memory_space<vmem>>, vector<1x128xf32>
    %33 = vector.shape_cast %32 : vector<1x128xf32> to vector<1x1x128xf32>
    %c2_17 = arith.constant 2 : index
    %c0_18 = arith.constant 0 : index
    %c0_19 = arith.constant 0 : index
    %34 = vector.load %arg0[%c2_17, %c0_18, %c0_19] : memref<6x2x89xf32, #tpu.memory_space<vmem>>, vector<1x2x89xf32>
    %35 = vector.shape_cast %34 : vector<1x2x89xf32> to vector<2x89xf32>
    %36 = vector.shape_cast %35 : vector<2x89xf32> to vector<2x89x1xf32>
    %37 = vector.broadcast %36 : vector<2x89x1xf32> to vector<2x89x128xf32>
    %38 = vector.broadcast %33 : vector<1x1x128xf32> to vector<2x89x128xf32>
    %39 = arith.mulf %37, %38 : vector<2x89x128xf32>
    %40 = arith.addf %24, %39 : vector<2x89x128xf32>
    %c3 = arith.constant 3 : index
    %c0_20 = arith.constant 0 : index
    %c0_21 = arith.constant 0 : index
    %41 = vector.load %arg0[%c3, %c0_20, %c0_21] : memref<6x2x89xf32, #tpu.memory_space<vmem>>, vector<1x2x89xf32>
    %42 = vector.shape_cast %41 : vector<1x2x89xf32> to vector<2x89xf32>
    %43 = vector.shape_cast %42 : vector<2x89xf32> to vector<2x89x1xf32>
    %44 = vector.broadcast %43 : vector<2x89x1xf32> to vector<2x89x128xf32>
    %45 = vector.broadcast %33 : vector<1x1x128xf32> to vector<2x89x128xf32>
    %46 = arith.mulf %44, %45 : vector<2x89x128xf32>
    %47 = arith.addf %31, %46 : vector<2x89x128xf32>
    %c3_22 = arith.constant 3 : index
    %c0_23 = arith.constant 0 : index
    %48 = vector.load %arg1[%c3_22, %c0_23] : memref<5x128xf32, #tpu.memory_space<vmem>>, vector<1x128xf32>
    %49 = vector.shape_cast %48 : vector<1x128xf32> to vector<1x1x128xf32>
    %c3_24 = arith.constant 3 : index
    %c0_25 = arith.constant 0 : index
    %c0_26 = arith.constant 0 : index
    %50 = vector.load %arg0[%c3_24, %c0_25, %c0_26] : memref<6x2x89xf32, #tpu.memory_space<vmem>>, vector<1x2x89xf32>
    %51 = vector.shape_cast %50 : vector<1x2x89xf32> to vector<2x89xf32>
    %52 = vector.shape_cast %51 : vector<2x89xf32> to vector<2x89x1xf32>
    %53 = vector.broadcast %52 : vector<2x89x1xf32> to vector<2x89x128xf32>
    %54 = vector.broadcast %49 : vector<1x1x128xf32> to vector<2x89x128xf32>
    %55 = arith.mulf %53, %54 : vector<2x89x128xf32>
    %56 = arith.addf %40, %55 : vector<2x89x128xf32>
    %c4 = arith.constant 4 : index
    %c0_27 = arith.constant 0 : index
    %c0_28 = arith.constant 0 : index
    %57 = vector.load %arg0[%c4, %c0_27, %c0_28] : memref<6x2x89xf32, #tpu.memory_space<vmem>>, vector<1x2x89xf32>
    %58 = vector.shape_cast %57 : vector<1x2x89xf32> to vector<2x89xf32>
    %59 = vector.shape_cast %58 : vector<2x89xf32> to vector<2x89x1xf32>
    %60 = vector.broadcast %59 : vector<2x89x1xf32> to vector<2x89x128xf32>
    %61 = vector.broadcast %49 : vector<1x1x128xf32> to vector<2x89x128xf32>
    %62 = arith.mulf %60, %61 : vector<2x89x128xf32>
    %63 = arith.addf %47, %62 : vector<2x89x128xf32>
    %c4_29 = arith.constant 4 : index
    %c0_30 = arith.constant 0 : index
    %64 = vector.load %arg1[%c4_29, %c0_30] : memref<5x128xf32, #tpu.memory_space<vmem>>, vector<1x128xf32>
    %65 = vector.shape_cast %64 : vector<1x128xf32> to vector<1x1x128xf32>
    %c4_31 = arith.constant 4 : index
    %c0_32 = arith.constant 0 : index
    %c0_33 = arith.constant 0 : index
    %66 = vector.load %arg0[%c4_31, %c0_32, %c0_33] : memref<6x2x89xf32, #tpu.memory_space<vmem>>, vector<1x2x89xf32>
    %67 = vector.shape_cast %66 : vector<1x2x89xf32> to vector<2x89xf32>
    %68 = vector.shape_cast %67 : vector<2x89xf32> to vector<2x89x1xf32>
    %69 = vector.broadcast %68 : vector<2x89x1xf32> to vector<2x89x128xf32>
    %70 = vector.broadcast %65 : vector<1x1x128xf32> to vector<2x89x128xf32>
    %71 = arith.mulf %69, %70 : vector<2x89x128xf32>
    %72 = arith.addf %56, %71 : vector<2x89x128xf32>
    %c5 = arith.constant 5 : index
    %c0_34 = arith.constant 0 : index
    %c0_35 = arith.constant 0 : index
    %73 = vector.load %arg0[%c5, %c0_34, %c0_35] : memref<6x2x89xf32, #tpu.memory_space<vmem>>, vector<1x2x89xf32>
    %74 = vector.shape_cast %73 : vector<1x2x89xf32> to vector<2x89xf32>
    %75 = vector.shape_cast %74 : vector<2x89xf32> to vector<2x89x1xf32>
    %76 = vector.broadcast %75 : vector<2x89x1xf32> to vector<2x89x128xf32>
    %77 = vector.broadcast %65 : vector<1x1x128xf32> to vector<2x89x128xf32>
    %78 = arith.mulf %76, %77 : vector<2x89x128xf32>
    %79 = arith.addf %63, %78 : vector<2x89x128xf32>
    %80 = arith.maximumf %72, %79 : vector<2x89x128xf32>
    %c0_36 = arith.constant 0 : index
    %c0_37 = arith.constant 0 : index
    %81 = vector.load %arg2[%c0_36, %c0_37] : memref<1x128xf32, #tpu.memory_space<vmem>>, vector<1x128xf32>
    %82 = vector.shape_cast %81 : vector<1x128xf32> to vector<1x1x128xf32>
    %83 = vector.broadcast %82 : vector<1x1x128xf32> to vector<2x89x128xf32>
    %84 = arith.addf %80, %83 : vector<2x89x128xf32>
    %cst = arith.constant 0.000000e+00 : f32
    %85 = vector.broadcast %cst : f32 to vector<2x89x128xf32>
    %86 = arith.maximumf %84, %85 : vector<2x89x128xf32>
    %cst_38 = arith.constant 0.000000e+00 : f32
    %87 = vector.broadcast %cst_38 : f32 to vector<2x1x128xf32>
    %88 = tpu.concatenate %86, %87 in 1 : vector<2x89x128xf32>, vector<2x1x128xf32> -> vector<2x90x128xf32>
    %89 = arith.truncf %88 : vector<2x90x128xf32> to vector<2x90x128xbf16>
    %c0_39 = arith.constant 0 : index
    %c0_40 = arith.constant 0 : index
    %c0_41 = arith.constant 0 : index
    %90 = vector.load %arg3[%c0_39, %c0_40, %c0_41] : memref<2x90x128xbf16, #tpu.memory_space<vmem>>, vector<2x90x128xbf16>
    tpu.vector_store %arg3[%c0_39, %c0_40, %c0_41], %89 {strides = array<i32>} : memref<2x90x128xbf16, #tpu.memory_space<vmem>>, vector<2x90x128xbf16>,
    return
  }
}

module attributes {stable_mosaic.version = 11 : i64} {
  func.func @fc_kernel(%arg0: i32, %arg1: memref<2x5760xbf16, #tpu.memory_space<vmem>>, %arg2: memref<5760x101xbf16, #tpu.memory_space<vmem>>, %arg3: memref<1x101xf32, #tpu.memory_space<vmem>>, %arg4: memref<1x2x101xf32, #tpu.memory_space<vmem>>) attributes {dimension_semantics = [#tpu.dimension_semantics<parallel>], iteration_bounds = array<i64: 2>, scalar_prefetch = 0 : i64, scratch_operands = 0 : i64, tpu.core_type = #tpu.core_type<tc>, window_params = [{transform_indices = @transform_0, window_bounds = array<i64: 2, 5760>}, {transform_indices = @transform_1, window_bounds = array<i64: 5760, 101>}, {pipeline_mode = #tpu.pipeline_mode<synchronous>, transform_indices = @transform_2, window_bounds = array<i64: 1, 101>}, {transform_indices = @transform_3, window_bounds = array<i64: 1, 2, 101>}]} {
    %c0 = arith.constant 0 : index
    %c0_0 = arith.constant 0 : index
    %0 = vector.load %arg1[%c0, %c0_0] : memref<2x5760xbf16, #tpu.memory_space<vmem>>, vector<2x5760xbf16>
    %c0_1 = arith.constant 0 : index
    %c0_2 = arith.constant 0 : index
    %1 = vector.load %arg2[%c0_1, %c0_2] : memref<5760x101xbf16, #tpu.memory_space<vmem>>, vector<5760x101xbf16>
    %cst = arith.constant dense<0.000000e+00> : vector<2x101xf32>
    %2 = tpu.matmul %0, %1, %cst {dimension_numbers = #tpu.dot_dimension_numbers<[1], [0], [0], [1], [0, 0, 1, 1], [], []>} : vector<2x5760xbf16>, vector<5760x101xbf16>, vector<2x101xf32> -> vector<2x101xf32>
    %c0_3 = arith.constant 0 : index
    %c0_4 = arith.constant 0 : index
    %3 = vector.load %arg3[%c0_3, %c0_4] : memref<1x101xf32, #tpu.memory_space<vmem>>, vector<1x101xf32>
    %c0_i32 = arith.constant 0 : i32
    %4 = arith.cmpi eq, %arg0, %c0_i32 : i32
    %5 = arith.extui %4 : i1 to i32
    %6 = arith.sitofp %5 : i32 to f32
    %7 = vector.broadcast %6 : f32 to vector<1x101xf32>
    %8 = arith.mulf %3, %7 : vector<1x101xf32>
    %9 = vector.broadcast %8 : vector<1x101xf32> to vector<2x101xf32>
    %10 = arith.addf %2, %9 : vector<2x101xf32>
    %11 = vector.shape_cast %10 : vector<2x101xf32> to vector<1x2x101xf32>
    %c0_5 = arith.constant 0 : index
    %c0_6 = arith.constant 0 : index
    %c0_7 = arith.constant 0 : index
    %12 = vector.load %arg4[%c0_5, %c0_6, %c0_7] : memref<1x2x101xf32, #tpu.memory_space<vmem>>, vector<1x2x101xf32>
    tpu.vector_store %arg4[%c0_5, %c0_6, %c0_7], %11 {strides = array<i32>} : memref<1x2x101xf32, #tpu.memory_space<vmem>>, vector<1x2x101xf32>,
    return
  }
  func.func @transform_0(%arg0: i32) -> (i32, i32) {
    %c0_i32 = arith.constant 0 : i32
    %c0_i32_0 = arith.constant 0 : i32
    return %c0_i32, %arg0 : i32, i32
  }
  func.func @transform_1(%arg0: i32) -> (i32, i32) {
    %c0_i32 = arith.constant 0 : i32
    %c0_i32_0 = arith.constant 0 : i32
    return %arg0, %c0_i32 : i32, i32
  }
  func.func @transform_2(%arg0: i32) -> (i32, i32) {
    %c0_i32 = arith.constant 0 : i32
    %c0_i32_0 = arith.constant 0 : i32
    %c0_i32_1 = arith.constant 0 : i32
    return %c0_i32, %c0_i32_0 : i32, i32
  }
  func.func @transform_3(%arg0: i32) -> (i32, i32, i32) {
    %c0_i32 = arith.constant 0 : i32
    %c0_i32_0 = arith.constant 0 : i32
    %c0_i32_1 = arith.constant 0 : i32
    return %arg0, %c0_i32, %c0_i32_0 : i32, i32, i32
  }
}

</mosaic_0001>

<bundles_post_ra>
// kernel: cnn_forward.2
= control target key start
LH: loop header
LB: loop body
LE: loop exit
PB: predicated region body
PF: predicated region fallthrough
CT: control target
= control target key end

     0   :  { %8 = vsyncpa [#allocation3], 0  ;;  %s2610_s0 = inlined_call_operand.vmem [shape: f32[6,2,89], index: 0, kind: input, shape index: {}]   ;;  %s2611_s1 = inlined_call_operand.hbm [shape: f32[5,128], index: 1, kind: input, shape index: {}]   ;;  %s2612_s2 = inlined_call_operand.hbm [shape: f32[1,128], index: 2, kind: input, shape index: {}]   ;;  %s2613_s3 = inlined_call_operand.vmem [shape: bf16[2,90,128], index: 3, kind: output, shape index: {}]  }
   0x1   :  { %9 = vsyncpa [#allocation5], 0  ;;  %s1490_s12 = smov [#allocation2]   ;;  %s1491_s14 = smov [#allocation4]  }
   0x2   :  { %s18_s13 = sshll.u32 %s1490_s12, 4  ;;  %s28_s15 = sshll.u32 %s1491_s14, 4  ;;  %s19_s13 = int_to_ptr.vmem [resolvable:$true] %s18_s13  ;;  %s29_s15 = int_to_ptr.vmem [resolvable:$true] %s28_s15 }
   0x3   :  { %s1454_s16 = scalar_lea.vmem %s19_s13, 128  ;;  %p1459_p1 = scmp.lt.s32.totalorder %s19_s13, %s19_s13 }
   0x4   :  { %p1455_p0 = scmp.ne.s32.totalorder %s19_s13, %s1454_s16  ;;  %p1460_p2 = scmp.lt.s32.totalorder %s1454_s16, %s1454_s16 }
   0x6   :  { %p1461_p3 = por %p1460_p2, %p1459_p1 }
   0x8   :  { %p1462_p4 = pnand %p1461_p3, %p1455_p0 }
   0xa   :  { %1465 = shalt.err (!%p1462_p4)
}
   0xb   :  { %21 = dma.hbm_to_vmem [thread:$0]  %s2611_s1, 128, %s19_s13, [#allocation3]  }
   0xc   :  { %s1474_s19 = scalar_lea.vmem %s29_s15, 16  ;;  %s1478_s20 = scalar_lea.vmem %s29_s15, 32 }
   0xd   :  { %p1475_p5 = scmp.ne.s32.totalorder %s29_s15, %s1474_s19  ;;  %p1479_p6 = scmp.lt.s32.totalorder %s29_s15, %s29_s15 }
   0xe   :  { %p1480_p7 = scmp.lt.s32.totalorder %s1478_s20, %s1474_s19 }
  0x10   :  { %p1481_p8 = por %p1480_p7, %p1479_p6 }
  0x12   :  { %p1482_p9 = pnand %p1481_p8, %p1475_p5 }
  0x14   :  { %1485 = shalt.err (!%p1482_p9)
}
  0x15   :  { %31 = dma.hbm_to_vmem [thread:$0]  %s2612_s2, 16, %s29_s15, [#allocation5]  }
  0x16   :  { %1486 = dma.done.wait [#allocation3], 128  }
  0x17   :  { %1487 = vsyncadd [#allocation3], 4294967168 }
  0x18   :  { %1488 = dma.done.wait [#allocation5], 16  }
  0x19   :  { %1489 = vsyncadd [#allocation5], 4294967280  ;;  %v39_v0 = vlaneseq  ;;  %v38_v3 = vld [vmem:[%s2610_s0] sm:$0x3]  ;;  %v1327_v7 = vld [vmem:[%s2610_s0 + $0x2] sm:$0x3] }
  0x1a   :  { %v1329_v10 = vld [vmem:[%s2610_s0 + $0x4] sm:$0x3]  ;;  %v1331_v25 = vld [vmem:[%s2610_s0 + $0x6] sm:$0x3]  ;;  %v1333_v52 = vld [vmem:[%s2610_s0 + $0x8] sm:$0x3] }
  0x1b   :  { %v40_v1 = vshrl.u32 %v39_v0, 7  ;;  %vm1197_vm0 = vcmask 1040384  }
  0x1d   :  { %v1518_v2 = vsub.s32 0, %v40_v1  ;;  %v1524_v5 = vsub.s32 1, %v40_v1 }
  0x1f   :  { %v42_v4 = vrot.slane %v38_v3, %v1518_v2  ;;  %v93_v6 = vrot.slane %v38_v3, %v1524_v5  ;;  %v175_v8 = vrot.slane %v1327_v7, %v1518_v2  ;;  %v226_v9 = vrot.slane %v1327_v7, %v1524_v5 }
  0x20   :  { %v356_v11 = vrot.slane %v1329_v10, %v1518_v2  ;;  %v407_v14 = vrot.slane %v1329_v10, %v1524_v5  ;;  %v561_v28 = vrot.slane %v1331_v25, %v1518_v2  ;;  %v612_v41 = vrot.slane %v1331_v25, %v1524_v5  ;;  %v1335_v25 = vld [vmem:[%s2610_s0 + $0xa] sm:$0x3] }
  0x21   :  { %52 = vbcast.lane.b32.xlu1 %v42_v4, 272  ;;  %44 = vbcast.lane.b32.xlu0 %v42_v4, 256  ;;  %v766_v55 = vrot.slane %v1333_v52, %v1518_v2 }
  0x25   :  { %56 = vbcast.lane.b32.xlu1 %v42_v4, 280  ;;  %48 = vbcast.lane.b32.xlu0 %v42_v4, 264 }
  0x29   :  { %64 = vbcast.lane.b32.xlu1 %v42_v4, 296  ;;  %60 = vbcast.lane.b32.xlu0 %v42_v4, 288 }
  0x2d   :  { %72 = vbcast.lane.b32.xlu1 %v42_v4, 312  ;;  %68 = vbcast.lane.b32.xlu0 %v42_v4, 304 }
  0x31   :  { %80 = vbcast.lane.b32.xlu1 %v42_v4, 328  ;;  %76 = vbcast.lane.b32.xlu0 %v42_v4, 320 }
  0x35   :  { %88 = vbcast.lane.b32.xlu1 %v42_v4, 344  ;;  %84 = vbcast.lane.b32.xlu0 %v42_v4, 336 }
  0x39   :  { %99 = vbcast.lane.b32.xlu1 %v93_v6, 264  ;;  %95 = vbcast.lane.b32.xlu0 %v93_v6, 256 }
  0x3d   :  { %107 = vbcast.lane.b32.xlu1 %v93_v6, 280  ;;  %103 = vbcast.lane.b32.xlu0 %v93_v6, 272 }
  0x41   :  { %115 = vbcast.lane.b32.xlu1 %v93_v6, 296  ;;  %111 = vbcast.lane.b32.xlu0 %v93_v6, 288 }
  0x45   :  { %123 = vbcast.lane.b32.xlu1 %v93_v6, 312  ;;  %119 = vbcast.lane.b32.xlu0 %v93_v6, 304 }
  0x49   :  { %131 = vbcast.lane.b32.xlu1 %v93_v6, 328  ;;  %127 = vbcast.lane.b32.xlu0 %v93_v6, 320 }
  0x4d   :  { %139 = vbcast.lane.b32.xlu1 %v93_v6, 344  ;;  %135 = vbcast.lane.b32.xlu0 %v93_v6, 336  ;;  %v1647_v6 = vrot.slane %v1333_v52, %v1524_v5 }
  0x51   :  { %181 = vbcast.lane.b32.xlu1 %v175_v8, 264  ;;  %177 = vbcast.lane.b32.xlu0 %v175_v8, 256 }
  0x55   :  { %189 = vbcast.lane.b32.xlu1 %v175_v8, 280  ;;  %185 = vbcast.lane.b32.xlu0 %v175_v8, 272 }
  0x59   :  { %197 = vbcast.lane.b32.xlu1 %v175_v8, 296  ;;  %193 = vbcast.lane.b32.xlu0 %v175_v8, 288 }
  0x5d   :  { %205 = vbcast.lane.b32.xlu1 %v175_v8, 312  ;;  %201 = vbcast.lane.b32.xlu0 %v175_v8, 304 }
  0x61   :  { %213 = vbcast.lane.b32.xlu1 %v175_v8, 328  ;;  %209 = vbcast.lane.b32.xlu0 %v175_v8, 320 }
  0x65   :  { %221 = vbcast.lane.b32.xlu1 %v175_v8, 344  ;;  %217 = vbcast.lane.b32.xlu0 %v175_v8, 336 }
  0x69   :  { %232 = vbcast.lane.b32.xlu1 %v226_v9, 264  ;;  %228 = vbcast.lane.b32.xlu0 %v226_v9, 256 }
  0x6d   :  { %240 = vbcast.lane.b32.xlu1 %v226_v9, 280  ;;  %236 = vbcast.lane.b32.xlu0 %v226_v9, 272 }
  0x71   :  { %248 = vbcast.lane.b32.xlu1 %v226_v9, 296  ;;  %244 = vbcast.lane.b32.xlu0 %v226_v9, 288 }
  0x75   :  { %256 = vbcast.lane.b32.xlu1 %v226_v9, 312  ;;  %252 = vbcast.lane.b32.xlu0 %v226_v9, 304 }
  0x79   :  { %264 = vbcast.lane.b32.xlu1 %v226_v9, 328  ;;  %260 = vbcast.lane.b32.xlu0 %v226_v9, 320 }
  0x7d   :  { %272 = vbcast.lane.b32.xlu1 %v226_v9, 344  ;;  %268 = vbcast.lane.b32.xlu0 %v226_v9, 336 }
  0x81   :  { %362 = vbcast.lane.b32.xlu1 %v356_v11, 264  ;;  %358 = vbcast.lane.b32.xlu0 %v356_v11, 256 }
  0x85   :  { %370 = vbcast.lane.b32.xlu1 %v356_v11, 280  ;;  %366 = vbcast.lane.b32.xlu0 %v356_v11, 272 }
  0x89   :  { %378 = vbcast.lane.b32.xlu1 %v356_v11, 296  ;;  %374 = vbcast.lane.b32.xlu0 %v356_v11, 288 }
  0x8d   :  { %386 = vbcast.lane.b32.xlu1 %v356_v11, 312  ;;  %382 = vbcast.lane.b32.xlu0 %v356_v11, 304 }
  0x91   :  { %394 = vbcast.lane.b32.xlu1 %v356_v11, 328  ;;  %390 = vbcast.lane.b32.xlu0 %v356_v11, 320 }
  0x93   :  { %v1536_v12 = vpop.permute.xlu1 %52  ;;  %v1538_v13 = vpop.permute.xlu0 %44 }
  0x95   :  { %402 = vbcast.lane.b32.xlu1 %v356_v11, 344  ;;  %398 = vbcast.lane.b32.xlu0 %v356_v11, 336 }
  0x97   :  { %v1541_v15 = vpop.permute.xlu1 %56  ;;  %v1543_v16 = vpop.permute.xlu0 %48 }
  0x99   :  { %413 = vbcast.lane.b32.xlu1 %v407_v14, 264  ;;  %409 = vbcast.lane.b32.xlu0 %v407_v14, 256 }
  0x9b   :  { %v1545_v17 = vpop.permute.xlu1 %64  ;;  %v1547_v18 = vpop.permute.xlu0 %60 }
  0x9d   :  { %421 = vbcast.lane.b32.xlu1 %v407_v14, 280  ;;  %417 = vbcast.lane.b32.xlu0 %v407_v14, 272 }
  0x9f   :  { %v1549_v19 = vpop.permute.xlu1 %72  ;;  %v1551_v20 = vpop.permute.xlu0 %68 }
  0xa1   :  { %429 = vbcast.lane.b32.xlu1 %v407_v14, 296  ;;  %425 = vbcast.lane.b32.xlu0 %v407_v14, 288 }
  0xa3   :  { %v1553_v21 = vpop.permute.xlu1 %80  ;;  %v1555_v22 = vpop.permute.xlu0 %76 }
  0xa5   :  { %437 = vbcast.lane.b32.xlu1 %v407_v14, 312  ;;  %433 = vbcast.lane.b32.xlu0 %v407_v14, 304 }
  0xa7   :  { %v1557_v23 = vpop.permute.xlu1 %88  ;;  %v1559_v24 = vpop.permute.xlu0 %84 }
  0xa9   :  { %445 = vbcast.lane.b32.xlu1 %v407_v14, 328  ;;  %441 = vbcast.lane.b32.xlu0 %v407_v14, 320 }
  0xab   :  { %v1564_v26 = vpop.permute.xlu1 %99  ;;  %v1566_v27 = vpop.permute.xlu0 %95 }
  0xad   :  { %453 = vbcast.lane.b32.xlu1 %v407_v14, 344  ;;  %449 = vbcast.lane.b32.xlu0 %v407_v14, 336 }
  0xaf   :  { %v1569_v29 = vpop.permute.xlu1 %107  ;;  %v1571_v30 = vpop.permute.xlu0 %103 }
  0xb1   :  { %567 = vbcast.lane.b32.xlu1 %v561_v28, 264  ;;  %563 = vbcast.lane.b32.xlu0 %v561_v28, 256 }
  0xb3   :  { %v1573_v31 = vpop.permute.xlu1 %115  ;;  %v1575_v32 = vpop.permute.xlu0 %111 }
  0xb5   :  { %575 = vbcast.lane.b32.xlu1 %v561_v28, 280  ;;  %571 = vbcast.lane.b32.xlu0 %v561_v28, 272 }
  0xb7   :  { %v1577_v33 = vpop.permute.xlu1 %123  ;;  %v1579_v34 = vpop.permute.xlu0 %119 }
  0xb9   :  { %583 = vbcast.lane.b32.xlu1 %v561_v28, 296  ;;  %579 = vbcast.lane.b32.xlu0 %v561_v28, 288 }
  0xbb   :  { %v1581_v35 = vpop.permute.xlu1 %131  ;;  %v1583_v36 = vpop.permute.xlu0 %127 }
  0xbd   :  { %591 = vbcast.lane.b32.xlu1 %v561_v28, 312  ;;  %587 = vbcast.lane.b32.xlu0 %v561_v28, 304 }
  0xbf   :  { %v1585_v37 = vpop.permute.xlu1 %139  ;;  %v1587_v38 = vpop.permute.xlu0 %135 }
  0xc1   :  { %599 = vbcast.lane.b32.xlu1 %v561_v28, 328  ;;  %595 = vbcast.lane.b32.xlu0 %v561_v28, 320 }
  0xc3   :  { %v1589_v39 = vpop.permute.xlu1 %181  ;;  %v1591_v40 = vpop.permute.xlu0 %177 }
  0xc5   :  { %607 = vbcast.lane.b32.xlu1 %v561_v28, 344  ;;  %603 = vbcast.lane.b32.xlu0 %v561_v28, 336  ;;  %v1668_v28 = vld [vmem:[#allocation2] ss:$0 sm:$0xff] }
  0xc6   :  { %2649 = vst [vmem:[#allocation16_spill] sm:$0xff] %v1668_v28 }
  0xc7   :  { %v1594_v42 = vpop.permute.xlu1 %189  ;;  %v1596_v43 = vpop.permute.xlu0 %185 }
  0xc9   :  { %618 = vbcast.lane.b32.xlu1 %v612_v41, 264  ;;  %614 = vbcast.lane.b32.xlu0 %v612_v41, 256 }
  0xcb   :  { %v1598_v44 = vpop.permute.xlu1 %197  ;;  %v1600_v45 = vpop.permute.xlu0 %193 }
  0xcd   :  { %626 = vbcast.lane.b32.xlu1 %v612_v41, 280  ;;  %622 = vbcast.lane.b32.xlu0 %v612_v41, 272 }
  0xcf   :  { %v1602_v46 = vpop.permute.xlu1 %205  ;;  %v1604_v47 = vpop.permute.xlu0 %201 }
  0xd1   :  { %634 = vbcast.lane.b32.xlu1 %v612_v41, 296  ;;  %630 = vbcast.lane.b32.xlu0 %v612_v41, 288 }
  0xd3   :  { %v1606_v48 = vpop.permute.xlu1 %213  ;;  %v1608_v49 = vpop.permute.xlu0 %209 }
  0xd5   :  { %642 = vbcast.lane.b32.xlu1 %v612_v41, 312  ;;  %638 = vbcast.lane.b32.xlu0 %v612_v41, 304 }
  0xd7   :  { %v1610_v50 = vpop.permute.xlu1 %221  ;;  %v1612_v51 = vpop.permute.xlu0 %217 }
  0xd9   :  { %650 = vbcast.lane.b32.xlu1 %v612_v41, 328  ;;  %646 = vbcast.lane.b32.xlu0 %v612_v41, 320 }
  0xdb   :  { %v1617_v53 = vpop.permute.xlu1 %232  ;;  %v1619_v54 = vpop.permute.xlu0 %228 }
  0xdd   :  { %658 = vbcast.lane.b32.xlu1 %v612_v41, 344  ;;  %654 = vbcast.lane.b32.xlu0 %v612_v41, 336 }
  0xdf   :  { %v1622_v56 = vpop.permute.xlu1 %240  ;;  %v1624_v57 = vpop.permute.xlu0 %236 }
  0xe1   :  { %772 = vbcast.lane.b32.xlu1 %v766_v55, 264  ;;  %768 = vbcast.lane.b32.xlu0 %v766_v55, 256 }
  0xe3   :  { %v1626_v58 = vpop.permute.xlu1 %248  ;;  %v1628_v59 = vpop.permute.xlu0 %244 }
  0xe5   :  { %780 = vbcast.lane.b32.xlu1 %v766_v55, 280  ;;  %776 = vbcast.lane.b32.xlu0 %v766_v55, 272 }
  0xe7   :  { %v1630_v60 = vpop.permute.xlu1 %256  ;;  %v1632_v61 = vpop.permute.xlu0 %252 }
  0xe9   :  { %788 = vbcast.lane.b32.xlu1 %v766_v55, 296  ;;  %784 = vbcast.lane.b32.xlu0 %v766_v55, 288 }
  0xeb   :  { %v1634_v62 = vpop.permute.xlu1 %264  ;;  %v1636_v63 = vpop.permute.xlu0 %260 }
  0xec   :  { %2641 = vst [vmem:[#allocation8_spill] sm:$0xff] %v1634_v62  ;;  %2642 = vst [vmem:[#allocation9_spill] sm:$0xff] %v1636_v63 }
  0xed   :  { %796 = vbcast.lane.b32.xlu1 %v766_v55, 312  ;;  %792 = vbcast.lane.b32.xlu0 %v766_v55, 304 }
  0xef   :  { %v1638_v0 = vpop.permute.xlu1 %272  ;;  %v1640_v1 = vpop.permute.xlu0 %268 }
  0xf1   :  { %804 = vbcast.lane.b32.xlu1 %v766_v55, 328  ;;  %800 = vbcast.lane.b32.xlu0 %v766_v55, 320 }
  0xf3   :  { %v1642_v3 = vpop.permute.xlu1 %362  ;;  %v1644_v4 = vpop.permute.xlu0 %358 }
  0xf5   :  { %812 = vbcast.lane.b32.xlu1 %v766_v55, 344  ;;  %808 = vbcast.lane.b32.xlu0 %v766_v55, 336  ;;  %v1677_v55 = vrot.slane %v1335_v25, %v1524_v5  ;;  %v150_v5 = vmul.f32 %v1668_v28, %v1547_v18  ;;  %v1716_v18 = vmul.f32 %v1668_v28, %v1564_v26 }
  0xf7   :  { %v1649_v7 = vpop.permute.xlu1 %370  ;;  %v1651_v8 = vpop.permute.xlu0 %366 }
  0xf8   :  { %2643 = vst [vmem:[#allocation10_spill] sm:$0xff] %v1649_v7  ;;  %2644 = vst [vmem:[#allocation11_spill] sm:$0xff] %v1651_v8  ;;  %v1694_v8 = vld [vmem:[#allocation2 + $0x1] ss:$0 sm:$0xff] }
  0xf9   :  { %819 = vbcast.lane.b32.xlu1 %v1647_v6, 256  ;;  %863 = vbcast.lane.b32.xlu0 %v1647_v6, 344  ;;  %v304_v26 = vmul.f32 %v1694_v8, %v1589_v39 }
  0xfb   :  { %v1655_v9 = vpop.permute.xlu1 %378  ;;  %v1657_v10 = vpop.permute.xlu0 %374 }
  0xfc   :  { %2645 = vst [vmem:[#allocation12_spill] sm:$0xff] %v1655_v9  ;;  %2646 = vst [vmem:[#allocation13_spill] sm:$0xff] %v1657_v10  ;;  %v149_v10 = vmul.f32 %v1668_v28, %v1541_v15  ;;  %v1686_v9 = vrot.slane %v1335_v25, %v1518_v2  ;;  %v152_v2 = vmul.f32 %v1668_v28, %v1551_v20 }
  0xfd   :  { %827 = vbcast.lane.b32.xlu1 %v1647_v6, 272  ;;  %823 = vbcast.lane.b32.xlu0 %v1647_v6, 264  ;;  %v154_v15 = vmul.f32 %v1668_v28, %v1555_v22  ;;  %v1728_v22 = vmul.f32 %v1668_v28, %v1569_v29  ;;  %v1746_v25 = vmul.f32 %v1668_v28, %v1577_v33 }
  0xfe   :  { %v303_v29 = vmul.f32 %v1694_v8, %v1591_v40  ;;  %v305_v33 = vmul.f32 %v1694_v8, %v1596_v43 }
  0xff   :  { %v1661_v11 = vpop.permute.xlu1 %386  ;;  %v1663_v14 = vpop.permute.xlu0 %382 }
 0x100   :  { %2647 = vst [vmem:[#allocation14_spill] sm:$0xff] %v1661_v11  ;;  %2648 = vst [vmem:[#allocation15_spill] sm:$0xff] %v1663_v14  ;;  %v148_v14 = vmul.f32 %v1668_v28, %v1536_v12  ;;  %v146_v11 = vmul.f32 %v1668_v28, %v1538_v13  ;;  %v153_v12 = vmul.f32 %v1668_v28, %v1549_v19 }
 0x101   :  { %835 = vbcast.lane.b32.xlu1 %v1647_v6, 288  ;;  %831 = vbcast.lane.b32.xlu0 %v1647_v6, 280  ;;  %v155_v13 = vmul.f32 %v1668_v28, %v1553_v21  ;;  %v1720_v19 = vmul.f32 %v1668_v28, %v1566_v27  ;;  %v1742_v27 = vmul.f32 %v1668_v28, %v1575_v32 }
 0x102   :  { %v306_v32 = vmul.f32 %v1694_v8, %v1594_v42 }
 0x103   :  { %v1672_v41 = vpop.permute.xlu1 %394  ;;  %v1674_v52 = vpop.permute.xlu0 %390 }
 0x104   :  { %2650 = vst [vmem:[#allocation17_spill] sm:$0xff] %v1672_v41  ;;  %2651 = vst [vmem:[#allocation18_spill] sm:$0xff] %v1674_v52  ;;  %v147_v41 = vmul.f32 %v1668_v28, %v1543_v16  ;;  %v151_v52 = vmul.f32 %v1668_v28, %v1545_v17  ;;  %v1708_v16 = vmul.f32 %v1668_v28, %v1557_v23 }
 0x105   :  { %843 = vbcast.lane.b32.xlu1 %v1647_v6, 304  ;;  %839 = vbcast.lane.b32.xlu0 %v1647_v6, 296  ;;  %v1712_v17 = vmul.f32 %v1668_v28, %v1559_v24  ;;  %v1732_v23 = vmul.f32 %v1668_v28, %v1571_v30  ;;  %v1736_v24 = vmul.f32 %v1668_v28, %v1573_v31 }
 0x106   :  { %v1754_v30 = vmul.f32 %v1668_v28, %v1579_v34  ;;  %v1758_v31 = vmul.f32 %v1668_v28, %v1581_v35  ;;  %v1774_v34 = vmul.f32 %v1668_v28, %v1587_v38  ;;  %v1778_v35 = vmul.f32 %v1668_v28, %v1589_v39 }
 0x107   :  { %v1722_v20 = vpop.permute.xlu1 %402  ;;  %v1724_v21 = vpop.permute.xlu0 %398  ;;  %v1784_v63 = vadd.f32 %v304_v26, %v147_v41  ;;  %v307_v38 = vmul.f32 %v1694_v8, %v1600_v45  ;;  %v1798_v39 = vmul.f32 %v1668_v28, %v1594_v42  ;;  %v310_v41 = vmul.f32 %v1694_v8, %v1602_v46 }
 0x108   :  { %2652 = vst [vmem:[#allocation19_spill] sm:$0xff] %v1722_v20  ;;  %2653 = vst [vmem:[#allocation20_spill] sm:$0xff] %v1724_v21  ;;  %v1766_v21 = vmul.f32 %v1668_v28, %v1583_v36  ;;  %v1770_v20 = vmul.f32 %v1668_v28, %v1585_v37  ;;  %v1788_v36 = vmul.f32 %v1668_v28, %v1591_v40 }
 0x109   :  { %851 = vbcast.lane.b32.xlu1 %v1647_v6, 320  ;;  %847 = vbcast.lane.b32.xlu0 %v1647_v6, 312  ;;  %2654 = vst [vmem:[#allocation21_spill] sm:$0xff] %v1758_v31  ;;  %v308_v37 = vmul.f32 %v1694_v8, %v1598_v44  ;;  %v1804_v40 = vadd.f32 %v306_v32, %v149_v10 }
 0x10a   :  { %2655 = vst [vmem:[#allocation22_spill] sm:$0xff] %v1766_v21  ;;  %v1794_v21 = vadd.f32 %v303_v29, %v146_v11  ;;  %v1808_v26 = vmul.f32 %v1668_v28, %v1596_v43  ;;  %v309_v11 = vmul.f32 %v1694_v8, %v1604_v47  ;;  %v1816_v42 = vmul.f32 %v1668_v28, %v1598_v44 }
 0x10b   :  { %v1780_v31 = vpop.permute.xlu1 %413  ;;  %v1782_v7 = vpop.permute.xlu0 %409  ;;  %v1820_v29 = vmul.f32 %v1668_v28, %v1600_v45  ;;  %v311_v43 = vmul.f32 %v1694_v8, %v1608_v49  ;;  %v1830_v32 = vadd.f32 %v308_v37, %v151_v52  ;;  %v1836_v44 = vmul.f32 %v1668_v28, %v1602_v46 }
 0x10c   :  { %2656 = vst [vmem:[#allocation23_spill] sm:$0xff] %v1780_v31  ;;  %2657 = vst [vmem:[#allocation24_spill] sm:$0xff] %v1782_v7  ;;  %v1810_v7 = vadd.f32 %v305_v33, %v148_v14  ;;  %v1832_v33 = vadd.f32 %v307_v38, %v150_v5  ;;  %v314_v45 = vmul.f32 %v1694_v8, %v1610_v50 }
 0x10d   :  { %859 = vbcast.lane.b32.xlu1 %v1647_v6, 336  ;;  %855 = vbcast.lane.b32.xlu0 %v1647_v6, 328  ;;  %2658 = vst [vmem:[#allocation25_spill] sm:$0xff] %v1820_v29  ;;  %v312_v6 = vmul.f32 %v1694_v8, %v1606_v48  ;;  %v1840_v31 = vadd.f32 %v310_v41, %v153_v12 }
 0x10e   :  { %v1844_v29 = vmul.f32 %v1668_v28, %v1604_v47  ;;  %v1850_v52 = vadd.f32 %v309_v11, %v152_v2  ;;  %v1854_v46 = vmul.f32 %v1668_v28, %v1606_v48  ;;  %v316_v5 = vmul.f32 %v1694_v8, %v1617_v53 }
 0x10f   :  { %v1826_v10 = vpop.permute.xlu1 %421  ;;  %v1828_v14 = vpop.permute.xlu0 %417  ;;  %v315_v47 = vmul.f32 %v1694_v8, %v1619_v54  ;;  %v1860_v12 = vadd.f32 %v312_v6, %v155_v13  ;;  %v1864_v37 = vmul.f32 %v1668_v28, %v1608_v49  ;;  %v1866_v38 = vadd.f32 %v311_v43, %v154_v15 }
 0x110   :  { %2659 = vst [vmem:[#allocation26_spill] sm:$0xff] %v1828_v14  ;;  %v313_v14 = vmul.f32 %v1694_v8, %v1612_v51  ;;  %v318_v2 = vmul.f32 %v1694_v8, %v1622_v56  ;;  %v1876_v11 = vmul.f32 %v1668_v28, %v1610_v50  ;;  %v1879_v13 = vadd.f32 %v314_v45, %v1708_v16 }
 0x111   :  { %1068 = vbcast.lane.b32.xlu1 %v1677_v55, 344  ;;  %1017 = vbcast.lane.b32.xlu0 %v1686_v9, 344  ;;  %v1883_v49 = vmul.f32 %v1668_v28, %v1612_v51  ;;  %v317_v15 = vmul.f32 %v1694_v8, %v1624_v57  ;;  %v320_v43 = vmul.f32 %v1694_v8, %v1626_v58 }
 0x112   :  { %v1888_v6 = vadd.f32 %v313_v14, %v1712_v17  ;;  %v319_v50 = vmul.f32 %v1694_v8, %v1628_v59  ;;  %v1898_v51 = vmul.f32 %v1668_v28, %v1617_v53  ;;  %v1901_v16 = vadd.f32 %v316_v5, %v1716_v18  ;;  %v1923_v5 = vld [vmem:[#allocation2 + $0x2] ss:$0 sm:$0xff] }
 0x113   :  { %v1870_v41 = vpop.permute.xlu1 %429  ;;  %v1872_v48 = vpop.permute.xlu0 %425  ;;  %v1905_v17 = vmul.f32 %v1668_v28, %v1619_v54  ;;  %v1908_v14 = vadd.f32 %v315_v47, %v1720_v19  ;;  %v1912_v45 = vmul.f32 %v1668_v28, %v1622_v56  ;;  %v1919_v53 = vmul.f32 %v1668_v28, %v1624_v57 }
 0x114   :  { %2660 = vst [vmem:[#allocation27_spill] sm:$0xff] %v1872_v48  ;;  %v1915_v48 = vadd.f32 %v318_v2, %v1728_v22  ;;  %v322_v18 = vmul.f32 %v1694_v8, %v1630_v60  ;;  %v1930_v47 = vadd.f32 %v317_v15, %v1732_v23  ;;  %v1934_v56 = vmul.f32 %v1668_v28, %v1626_v58 }
 0x115   :  { %977 = vbcast.lane.b32.xlu1 %v1686_v9, 264  ;;  %973 = vbcast.lane.b32.xlu0 %v1686_v9, 256  ;;  %v1938_v57 = vmul.f32 %v1668_v28, %v1628_v59  ;;  %v321_v22 = vmul.f32 %v1694_v8, %v1632_v61  ;;  %v1943_v2 = vadd.f32 %v320_v43, %v1736_v24 }
 0x116   :  { %v1950_v23 = vmul.f32 %v1668_v28, %v1630_v60  ;;  %v326_v58 = vmul.f32 %v1694_v8, %v1638_v0  ;;  %v325_v59 = vmul.f32 %v1694_v8, %v1640_v1  ;;  %v456_v24 = vmul.f32 %v1694_v8, %v1642_v3 }
 0x117   :  { %v1925_v54 = vpop.permute.xlu1 %437  ;;  %v1927_v19 = vpop.permute.xlu0 %433  ;;  %2662 = vst [vmem:[#allocation29_spill] sm:$0xff] %v1938_v57  ;;  %v1963_v15 = vadd.f32 %v322_v18, %v1746_v25  ;;  %v1967_v60 = vmul.f32 %v1668_v28, %v1632_v61  ;;  %v455_v43 = vmul.f32 %v1694_v8, %v1644_v4  ;;  %v1978_v57 = vadd.f32 %v321_v22, %v1754_v30  ;;  %v2671_v25 = vld [vmem:[#allocation9_spill] sm:$0xff] }
 0x118   :  { %2661 = vst [vmem:[#allocation28_spill] sm:$0xff] %v1925_v54  ;;  %v1946_v54 = vadd.f32 %v319_v50, %v1742_v27  ;;  %2664 = vst [vmem:[#allocation31_spill] sm:$0xff] %v1950_v23  ;;  %v509_v27 = vmul.f32 %v1923_v5, %v1642_v3  ;;  %v508_v50 = vmul.f32 %v1923_v5, %v1644_v4 }
 0x119   :  { %985 = vbcast.lane.b32.xlu1 %v1686_v9, 280  ;;  %981 = vbcast.lane.b32.xlu0 %v1686_v9, 272  ;;  %2665 = vst [vmem:[#allocation32_spill] sm:$0xff] %v1963_v15  ;;  %2666 = vst [vmem:[#allocation33_spill] sm:$0xff] %v1967_v60  ;;  %v1982_v3 = vmul.f32 %v1694_v8, %v1634_v62  ;;  %v1986_v61 = vmul.f32 %v1694_v8, %v2671_v25 }
 0x11a   :  { %2663 = vst [vmem:[#allocation30_spill] sm:$0xff] %v1946_v54  ;;  %2669 = vst [vmem:[#allocation36_spill] sm:$0xff] %v1978_v57  ;;  %v297_v18 = vmul.f32 %v1668_v28, %v1638_v0  ;;  %v296_v4 = vmul.f32 %v1668_v28, %v1640_v1  ;;  %v350_v22 = vadd.f32 %v326_v58, %v1770_v20  ;;  %v2674_v28 = vld [vmem:[#allocation11_spill] sm:$0xff]  ;;  %v2675_v58 = vld [vmem:[#allocation12_spill] sm:$0xff] }
 0x11b   :  { %v1973_v23 = vpop.permute.xlu1 %445  ;;  %v1975_v54 = vpop.permute.xlu0 %441  ;;  %2670 = vst [vmem:[#allocation37_spill] sm:$0xff] %v1982_v3  ;;  %2672 = vst [vmem:[#allocation38_spill] sm:$0xff] %v1986_v61  ;;  %v349_v61 = vadd.f32 %v325_v59, %v1774_v34  ;;  %v480_v25 = vadd.f32 %v456_v24, %v1778_v35  ;;  %v533_v0 = vadd.f32 %v509_v27, %v1784_v63 }
 0x11c   :  { %2667 = vst [vmem:[#allocation34_spill] sm:$0xff] %v1973_v23  ;;  %2668 = vst [vmem:[#allocation35_spill] sm:$0xff] %v1975_v54  ;;  %v2673_v23 = vld [vmem:[#allocation10_spill] sm:$0xff]  ;;  %v479_v1 = vadd.f32 %v455_v43, %v1788_v36  ;;  %v532_v3 = vadd.f32 %v508_v50, %v1794_v21  ;;  %v457_v62 = vmul.f32 %v1694_v8, %v2674_v28  ;;  %v2678_v43 = vld [vmem:[#allocation13_spill] sm:$0xff] }
 0x11d   :  { %v458_v54 = vmul.f32 %v1694_v8, %v2673_v23  ;;  %v511_v30 = vmul.f32 %v1923_v5, %v2673_v23  ;;  %993 = vbcast.lane.b32.xlu1 %v1686_v9, 296  ;;  %989 = vbcast.lane.b32.xlu0 %v1686_v9, 288  ;;  %v510_v23 = vmul.f32 %v1923_v5, %v2674_v28  ;;  %v2018_v28 = vld [vmem:[#allocation2 + $0x3] ss:$0 sm:$0xff] }
 0x11e   :  { %v460_v59 = vmul.f32 %v1694_v8, %v2675_v58  ;;  %v459_v50 = vmul.f32 %v1694_v8, %v2678_v43 }
 0x11f   :  { %v454_v57 = vpop.permute.xlu1 %453  ;;  %v450_v60 = vpop.permute.xlu0 %449  ;;  %v482_v36 = vadd.f32 %v458_v54, %v1798_v39  ;;  %v535_v21 = vadd.f32 %v511_v30, %v1804_v40  ;;  %v481_v39 = vadd.f32 %v457_v62, %v1808_v26  ;;  %v534_v40 = vadd.f32 %v510_v23, %v1810_v7  ;;  %v2679_v26 = vld [vmem:[#allocation14_spill] sm:$0xff] }
 0x120   :  { %v478_v20 = vmul.f32 %v1694_v8, %v454_v57  ;;  %v531_v34 = vmul.f32 %v1923_v5, %v454_v57  ;;  %v477_v35 = vmul.f32 %v1694_v8, %v450_v60  ;;  %v530_v63 = vmul.f32 %v1923_v5, %v450_v60 }
 0x121   :  { %1001 = vbcast.lane.b32.xlu1 %v1686_v9, 312  ;;  %997 = vbcast.lane.b32.xlu0 %v1686_v9, 304  ;;  %v513_v54 = vmul.f32 %v1923_v5, %v2675_v58  ;;  %v484_v62 = vadd.f32 %v460_v59, %v1816_v42  ;;  %v512_v7 = vmul.f32 %v1923_v5, %v2678_v43  ;;  %v2681_v43 = vld [vmem:[#allocation15_spill] sm:$0xff] }
 0x122   :  { %v2020_v24 = vadd.f32 %v478_v20, %v297_v18  ;;  %v2022_v57 = vadd.f32 %v531_v34, %v350_v22  ;;  %v2024_v27 = vadd.f32 %v477_v35, %v296_v4  ;;  %v2026_v60 = vadd.f32 %v530_v63, %v349_v61 }
 0x123   :  { %v568_v30 = vpop.permute.xlu1 %567  ;;  %v564_v15 = vpop.permute.xlu0 %563  ;;  %v462_v23 = vmul.f32 %v1694_v8, %v2679_v26  ;;  %v537_v42 = vadd.f32 %v513_v54, %v1830_v32  ;;  %v515_v59 = vmul.f32 %v1923_v5, %v2679_v26  ;;  %v536_v32 = vadd.f32 %v512_v7, %v1832_v33 }
 0x124   :  { %2676 = vst [vmem:[#allocation10_spill] sm:$0xff] %v2020_v24  ;;  %2677 = vst [vmem:[#allocation11_spill] sm:$0xff] %v2022_v57  ;;  %v661_v18 = vmul.f32 %v1923_v5, %v568_v30  ;;  %v714_v22 = vmul.f32 %v2018_v28, %v568_v30  ;;  %v660_v4 = vmul.f32 %v1923_v5, %v564_v15 }
 0x125   :  { %v713_v61 = vmul.f32 %v2018_v28, %v564_v15  ;;  %1009 = vbcast.lane.b32.xlu1 %v1686_v9, 328  ;;  %1005 = vbcast.lane.b32.xlu0 %v1686_v9, 320  ;;  %v2680_v15 = vld [vmem:[#allocation25_spill] sm:$0xff]  ;;  %v461_v30 = vmul.f32 %v1694_v8, %v2681_v43  ;;  %v486_v54 = vadd.f32 %v462_v23, %v1836_v44  ;;  %v2683_v23 = vld [vmem:[#allocation18_spill] sm:$0xff] }
 0x126   :  { %v2045_v20 = vadd.f32 %v661_v18, %v480_v25  ;;  %v2047_v34 = vadd.f32 %v714_v22, %v533_v0  ;;  %v2049_v35 = vadd.f32 %v660_v4, %v479_v1  ;;  %v483_v58 = vadd.f32 %v459_v50, %v2680_v15  ;;  %v2682_v44 = vld [vmem:[#allocation17_spill] sm:$0xff] }
 0x127   :  { %v2051_v63 = vadd.f32 %v713_v61, %v532_v3  ;;  %v576_v57 = vpop.permute.xlu1 %575  ;;  %v572_v24 = vpop.permute.xlu0 %571  ;;  %v514_v50 = vmul.f32 %v1923_v5, %v2681_v43  ;;  %v485_v33 = vadd.f32 %v461_v30, %v1844_v29  ;;  %v464_v61 = vmul.f32 %v1694_v8, %v2682_v44 }
 0x128   :  { %v663_v25 = vmul.f32 %v1923_v5, %v576_v57  ;;  %v716_v0 = vmul.f32 %v2018_v28, %v576_v57  ;;  %v662_v1 = vmul.f32 %v1923_v5, %v572_v24  ;;  %v715_v3 = vmul.f32 %v2018_v28, %v572_v24 }
 0x129   :  { %1024 = vbcast.lane.b32.xlu1 %v1677_v55, 256  ;;  %1013 = vbcast.lane.b32.xlu0 %v1686_v9, 336  ;;  %v539_v24 = vadd.f32 %v515_v59, %v1840_v31  ;;  %v517_v7 = vmul.f32 %v1923_v5, %v2682_v44  ;;  %v538_v31 = vadd.f32 %v514_v50, %v1850_v52 }
 0x12a   :  { %v2069_v18 = vadd.f32 %v663_v25, %v482_v36  ;;  %v2071_v22 = vadd.f32 %v716_v0, %v535_v21  ;;  %v2073_v57 = vadd.f32 %v662_v1, %v481_v39  ;;  %v2075_v4 = vadd.f32 %v715_v3, %v534_v40  ;;  %v2684_v1 = vld [vmem:[#allocation19_spill] sm:$0xff] }
 0x12b   :  { %v584_v26 = vpop.permute.xlu1 %583  ;;  %v580_v9 = vpop.permute.xlu0 %579  ;;  %v463_v29 = vmul.f32 %v1694_v8, %v2683_v23  ;;  %v516_v15 = vmul.f32 %v1923_v5, %v2683_v23  ;;  %v488_v52 = vadd.f32 %v464_v61, %v1854_v46  ;;  %v541_v0 = vadd.f32 %v517_v7, %v1860_v12  ;;  %v2685_v61 = vld [vmem:[#allocation20_spill] sm:$0xff] }
 0x12c   :  { %v665_v36 = vmul.f32 %v1923_v5, %v584_v26  ;;  %v718_v21 = vmul.f32 %v2018_v28, %v584_v26  ;;  %v664_v39 = vmul.f32 %v1923_v5, %v580_v9  ;;  %v717_v40 = vmul.f32 %v2018_v28, %v580_v9 }
 0x12d   :  { %1032 = vbcast.lane.b32.xlu1 %v1677_v55, 272  ;;  %1028 = vbcast.lane.b32.xlu0 %v1677_v55, 264  ;;  %v466_v3 = vmul.f32 %v1694_v8, %v2684_v1  ;;  %v519_v50 = vmul.f32 %v1923_v5, %v2684_v1  ;;  %v487_v46 = vadd.f32 %v463_v29, %v1864_v37  ;;  %v2686_v29 = vld [vmem:[#allocation23_spill] sm:$0xff] }
 0x12e   :  { %v2094_v59 = vadd.f32 %v665_v36, %v484_v62  ;;  %v2096_v43 = vadd.f32 %v718_v21, %v537_v42  ;;  %v2098_v30 = vadd.f32 %v664_v39, %v483_v58  ;;  %v2100_v25 = vadd.f32 %v717_v40, %v536_v32 }
 0x12f   :  { %v592_v44 = vpop.permute.xlu1 %591  ;;  %v588_v26 = vpop.permute.xlu0 %587  ;;  %v465_v12 = vmul.f32 %v1694_v8, %v2685_v61  ;;  %v518_v7 = vmul.f32 %v1923_v5, %v2685_v61  ;;  %v540_v37 = vadd.f32 %v516_v15, %v1866_v38  ;;  %v490_v40 = vadd.f32 %v466_v3, %v1876_v11 }
 0x130   :  { %v667_v62 = vmul.f32 %v1923_v5, %v592_v44  ;;  %v720_v42 = vmul.f32 %v2018_v28, %v592_v44  ;;  %v666_v58 = vmul.f32 %v1923_v5, %v588_v26  ;;  %v719_v32 = vmul.f32 %v2018_v28, %v588_v26 }
 0x131   :  { %1040 = vbcast.lane.b32.xlu1 %v1677_v55, 288  ;;  %1036 = vbcast.lane.b32.xlu0 %v1677_v55, 280  ;;  %v543_v23 = vadd.f32 %v519_v50, %v1879_v13  ;;  %v468_v1 = vmul.f32 %v1694_v8, %v2686_v29  ;;  %v542_v38 = vadd.f32 %v518_v7, %v1888_v6 }
 0x132   :  { %v2119_v9 = vadd.f32 %v667_v62, %v486_v54  ;;  %v2121_v36 = vadd.f32 %v720_v42, %v539_v24  ;;  %v2123_v21 = vadd.f32 %v666_v58, %v485_v33  ;;  %v2125_v39 = vadd.f32 %v719_v32, %v538_v31 }
 0x133   :  { %v600_v44 = vpop.permute.xlu1 %599  ;;  %v596_v26 = vpop.permute.xlu0 %595  ;;  %v489_v62 = vadd.f32 %v465_v12, %v1883_v49  ;;  %v521_v11 = vmul.f32 %v1923_v5, %v2686_v29  ;;  %v492_v42 = vadd.f32 %v468_v1, %v1898_v51  ;;  %v2687_v49 = vld [vmem:[#allocation24_spill] sm:$0xff]  ;;  %v470_v32 = vmul.f32 %v1694_v8, %v1826_v10 }
 0x134   :  { %v669_v54 = vmul.f32 %v1923_v5, %v600_v44  ;;  %v722_v24 = vmul.f32 %v2018_v28, %v600_v44  ;;  %v668_v33 = vmul.f32 %v1923_v5, %v596_v26  ;;  %v721_v31 = vmul.f32 %v2018_v28, %v596_v26 }
 0x135   :  { %1048 = vbcast.lane.b32.xlu1 %v1677_v55, 304  ;;  %1044 = vbcast.lane.b32.xlu0 %v1677_v55, 296  ;;  %v467_v6 = vmul.f32 %v1694_v8, %v2687_v49  ;;  %v520_v58 = vmul.f32 %v1923_v5, %v2687_v49  ;;  %v523_v51 = vmul.f32 %v1923_v5, %v1826_v10 }
 0x136   :  { %v2142_v13 = vadd.f32 %v669_v54, %v488_v52  ;;  %v2144_v15 = vadd.f32 %v722_v24, %v541_v0  ;;  %v2146_v3 = vadd.f32 %v668_v33, %v487_v46  ;;  %v2148_v50 = vadd.f32 %v721_v31, %v540_v37  ;;  %v2688_v37 = vld [vmem:[#allocation26_spill] sm:$0xff] }
 0x137   :  { %v608_v61 = vpop.permute.xlu1 %607  ;;  %v604_v52 = vpop.permute.xlu0 %603  ;;  %v469_v29 = vmul.f32 %v1694_v8, %v2688_v37  ;;  %v522_v1 = vmul.f32 %v1923_v5, %v2688_v37  ;;  %v545_v10 = vadd.f32 %v521_v11, %v1901_v16  ;;  %v491_v33 = vadd.f32 %v467_v6, %v1905_v17 }
 0x138   :  { %v671_v0 = vmul.f32 %v1923_v5, %v608_v61  ;;  %v724_v46 = vmul.f32 %v2018_v28, %v608_v61  ;;  %v670_v12 = vmul.f32 %v1923_v5, %v604_v52  ;;  %v723_v7 = vmul.f32 %v2018_v28, %v604_v52 }
 0x139   :  { %1056 = vbcast.lane.b32.xlu1 %v1677_v55, 320  ;;  %1052 = vbcast.lane.b32.xlu0 %v1677_v55, 312  ;;  %v544_v31 = vadd.f32 %v520_v58, %v1908_v14  ;;  %v494_v49 = vadd.f32 %v470_v32, %v1912_v45  ;;  %v493_v16 = vadd.f32 %v469_v29, %v1919_v53  ;;  %v2691_v53 = vld [vmem:[#allocation27_spill] sm:$0xff] }
 0x13a   :  { %v2169_v44 = vadd.f32 %v671_v0, %v490_v40  ;;  %v2171_v26 = vadd.f32 %v724_v46, %v543_v23  ;;  %v2173_v54 = vadd.f32 %v670_v12, %v489_v62  ;;  %v2175_v24 = vadd.f32 %v723_v7, %v542_v38 }
 0x13b   :  { %v619_v61 = vpop.permute.xlu1 %618  ;;  %v615_v52 = vpop.permute.xlu0 %614  ;;  %v547_v38 = vadd.f32 %v523_v51, %v1915_v48  ;;  %v546_v17 = vadd.f32 %v522_v1, %v1930_v47  ;;  %v472_v58 = vmul.f32 %v1694_v8, %v1870_v41  ;;  %v525_v48 = vmul.f32 %v1923_v5, %v1870_v41  ;;  %v2692_v51 = vld [vmem:[#allocation28_spill] sm:$0xff] }
 0x13c   :  { %v673_v37 = vmul.f32 %v1923_v5, %v619_v61  ;;  %v726_v40 = vmul.f32 %v2018_v28, %v619_v61  ;;  %v672_v23 = vmul.f32 %v1923_v5, %v615_v52  ;;  %v725_v62 = vmul.f32 %v2018_v28, %v615_v52 }
 0x13d   :  { %1064 = vbcast.lane.b32.xlu1 %v1677_v55, 336  ;;  %1060 = vbcast.lane.b32.xlu0 %v1677_v55, 328  ;;  %v471_v47 = vmul.f32 %v1694_v8, %v2691_v53  ;;  %v524_v55 = vmul.f32 %v1923_v5, %v2691_v53  ;;  %v474_v29 = vmul.f32 %v1694_v8, %v2692_v51  ;;  %v2696_v53 = vld [vmem:[#allocation30_spill] sm:$0xff] }
 0x13e   :  { %v2190_v14 = vadd.f32 %v673_v37, %v492_v42  ;;  %v2192_v45 = vadd.f32 %v726_v40, %v545_v10  ;;  %v2194_v11 = vadd.f32 %v672_v23, %v491_v33  ;;  %v2196_v6 = vadd.f32 %v725_v62, %v544_v31  ;;  %v2695_v23 = vld [vmem:[#allocation29_spill] sm:$0xff] }
 0x13f   :  { %v627_v42 = vpop.permute.xlu1 %626  ;;  %v623_v32 = vpop.permute.xlu0 %622  ;;  %v527_v41 = vmul.f32 %v1923_v5, %v2692_v51  ;;  %v473_v1 = vmul.f32 %v1694_v8, %v1927_v19  ;;  %v526_v10 = vmul.f32 %v1923_v5, %v1927_v19  ;;  %v496_v37 = vadd.f32 %v472_v58, %v1934_v56  ;;  %v2699_v58 = vld [vmem:[#allocation33_spill] sm:$0xff] }
 0x140   :  { %2689 = vst [vmem:[#allocation12_spill] sm:$0xff] %v2190_v14  ;;  %2690 = vst [vmem:[#allocation13_spill] sm:$0xff] %v2192_v45  ;;  %v675_v0 = vmul.f32 %v1923_v5, %v627_v42  ;;  %v728_v46 = vmul.f32 %v2018_v28, %v627_v42  ;;  %v674_v12 = vmul.f32 %v1923_v5, %v623_v32 }
 0x141   :  { %v727_v7 = vmul.f32 %v2018_v28, %v623_v32  ;;  %v549_v40 = vadd.f32 %v525_v48, %v1943_v2  ;;  %v495_v62 = vadd.f32 %v471_v47, %v2695_v23  ;;  %v548_v42 = vadd.f32 %v524_v55, %v2696_v53  ;;  %v2700_v48 = vld [vmem:[#allocation36_spill] sm:$0xff]  ;;  %v2705_v53 = vld [vmem:[#allocation34_spill] sm:$0xff] }
 0x142   :  { %v2218_v33 = vadd.f32 %v675_v0, %v494_v49  ;;  %v2220_v31 = vadd.f32 %v728_v46, %v547_v38  ;;  %v2222_v61 = vadd.f32 %v674_v12, %v493_v16  ;;  %v2698_v46 = vld [vmem:[#allocation32_spill] sm:$0xff]  ;;  %v497_v2 = vadd.f32 %v473_v1, %v2699_v58 }
 0x143   :  { %v2224_v52 = vadd.f32 %v727_v7, %v546_v17  ;;  %v635_v32 = vpop.permute.xlu1 %634  ;;  %v631_v51 = vpop.permute.xlu0 %630  ;;  %v2697_v17 = vld [vmem:[#allocation31_spill] sm:$0xff]  ;;  %v551_v56 = vadd.f32 %v527_v41, %v2698_v46  ;;  %v550_v47 = vadd.f32 %v526_v10, %v2700_v48  ;;  %v2710_v46 = vld [vmem:[#allocation37_spill] sm:$0xff] }
 0x144   :  { %2693 = vst [vmem:[#allocation14_spill] sm:$0xff] %v2218_v33  ;;  %2694 = vst [vmem:[#allocation25_spill] sm:$0xff] %v2220_v31  ;;  %v677_v19 = vmul.f32 %v1923_v5, %v635_v32  ;;  %v730_v49 = vmul.f32 %v2018_v28, %v635_v32  ;;  %v676_v38 = vmul.f32 %v1923_v5, %v631_v51 }
 0x145   :  { %v729_v16 = vmul.f32 %v2018_v28, %v631_v51  ;;  %v498_v0 = vadd.f32 %v474_v29, %v2697_v17  ;;  %v476_v32 = vmul.f32 %v1694_v8, %v2705_v53  ;;  %v529_v29 = vmul.f32 %v1923_v5, %v2705_v53  ;;  %v2706_v51 = vld [vmem:[#allocation35_spill] sm:$0xff]  ;;  %v2709_v17 = vld [vmem:[#allocation21_spill] sm:$0xff]  ;;  %v2712_v53 = vld [vmem:[#allocation22_spill] sm:$0xff] }
 0x146   :  { %v2238_v12 = vadd.f32 %v677_v19, %v496_v37  ;;  %v2240_v55 = vadd.f32 %v730_v49, %v549_v40  ;;  %v2242_v7 = vadd.f32 %v676_v38, %v495_v62  ;;  %v475_v41 = vmul.f32 %v1694_v8, %v2706_v51  ;;  %v2707_v49 = vld [vmem:[#allocation8_spill] sm:$0xff]  ;;  %v2711_v8 = vld [vmem:[#allocation9_spill] sm:$0xff] }
 0x147   :  { %v2244_v23 = vadd.f32 %v729_v16, %v548_v42  ;;  %v528_v1 = vmul.f32 %v1923_v5, %v2706_v51  ;;  %v643_v10 = vpop.permute.xlu1 %642  ;;  %v639_v37 = vpop.permute.xlu0 %638  ;;  %v2708_v38 = vld [vmem:[#allocation16_spill] sm:$0xff]  ;;  %v348_v58 = vadd.f32 %v2710_v46, %v2709_v17  ;;  %v2713_v51 = vld [vmem:[#allocation38_spill] sm:$0xff] }
 0x148   :  { %2701 = vst [vmem:[#allocation15_spill] sm:$0xff] %v2238_v12  ;;  %2702 = vst [vmem:[#allocation17_spill] sm:$0xff] %v2240_v55  ;;  %v679_v40 = vmul.f32 %v1923_v5, %v643_v10  ;;  %v732_v62 = vmul.f32 %v2018_v28, %v643_v10  ;;  %v678_v42 = vmul.f32 %v1923_v5, %v639_v37 }
 0x149   :  { %2703 = vst [vmem:[#allocation18_spill] sm:$0xff] %v2242_v7  ;;  %2704 = vst [vmem:[#allocation19_spill] sm:$0xff] %v2244_v23  ;;  %v731_v19 = vmul.f32 %v2018_v28, %v639_v37  ;;  %v295_v16 = vmul.f32 %v2708_v38, %v2707_v49  ;;  %v294_v48 = vmul.f32 %v2708_v38, %v2711_v8 }
 0x14a   :  { %v347_v55 = vadd.f32 %v2713_v51, %v2712_v53  ;;  %v2266_v12 = vadd.f32 %v679_v40, %v498_v0  ;;  %v2268_v31 = vadd.f32 %v732_v62, %v551_v56  ;;  %v2270_v10 = vadd.f32 %v678_v42, %v497_v2 }
 0x14b   :  { %v2272_v33 = vadd.f32 %v731_v19, %v550_v47  ;;  %v500_v37 = vadd.f32 %v476_v32, %v295_v16  ;;  %v553_v23 = vadd.f32 %v529_v29, %v348_v58  ;;  %v499_v49 = vadd.f32 %v475_v41, %v294_v48  ;;  %v651_v45 = vpop.permute.xlu1 %650  ;;  %v647_v17 = vpop.permute.xlu0 %646 }
 0x14c   :  { %2714 = vst [vmem:[#allocation20_spill] sm:$0xff] %v2266_v12  ;;  %2715 = vst [vmem:[#allocation23_spill] sm:$0xff] %v2268_v31  ;;  %v552_v7 = vadd.f32 %v528_v1, %v347_v55  ;;  %v681_v46 = vmul.f32 %v1923_v5, %v651_v45  ;;  %v734_v38 = vmul.f32 %v2018_v28, %v651_v45 }
 0x14d   :  { %2716 = vst [vmem:[#allocation24_spill] sm:$0xff] %v2270_v10  ;;  %2717 = vst [vmem:[#allocation26_spill] sm:$0xff] %v2272_v33  ;;  %v680_v8 = vmul.f32 %v1923_v5, %v647_v17  ;;  %v733_v0 = vmul.f32 %v2018_v28, %v647_v17  ;;  %v2730_v10 = vld [vmem:[#allocation10_spill] sm:$0xff] }
 0x14e   :  { %v2278_v56 = vadd.f32 %v681_v46, %v500_v37  ;;  %v2280_v2 = vadd.f32 %v734_v38, %v553_v23 }
 0x14f   :  { %v2282_v47 = vadd.f32 %v680_v8, %v499_v49  ;;  %v2284_v32 = vadd.f32 %v733_v0, %v552_v7  ;;  %v659_v29 = vpop.permute.xlu1 %658  ;;  %v655_v55 = vpop.permute.xlu0 %654 }
 0x150   :  { %2718 = vst [vmem:[#allocation27_spill] sm:$0xff] %v2278_v56  ;;  %2719 = vst [vmem:[#allocation28_spill] sm:$0xff] %v2280_v2  ;;  %v682_v41 = vmul.f32 %v1923_v5, %v655_v55  ;;  %v735_v1 = vmul.f32 %v2018_v28, %v655_v55  ;;  %v736_v2 = vmul.f32 %v2018_v28, %v659_v29 }
 0x151   :  { %2720 = vst [vmem:[#allocation29_spill] sm:$0xff] %v2282_v47  ;;  %2721 = vst [vmem:[#allocation30_spill] sm:$0xff] %v2284_v32 }
 0x152   :  { %v2289_v45 = vadd.f32 %v682_v41, %v2024_v27  ;;  %v2292_v40 = vadd.f32 %v735_v1, %v2026_v60  ;;  %v2314_v41 = vld [vmem:[#allocation2 + $0x4] ss:$0 sm:$0xff]  ;;  %v683_v1 = vmul.f32 %v1923_v5, %v659_v29 }
 0x153   :  { %v773_v62 = vpop.permute.xlu1 %772  ;;  %v769_v42 = vpop.permute.xlu0 %768 }
 0x154   :  { %2722 = vst [vmem:[#allocation31_spill] sm:$0xff] %v2289_v45  ;;  %2723 = vst [vmem:[#allocation32_spill] sm:$0xff] %v2292_v40  ;;  %v866_v40 = vmul.f32 %v2018_v28, %v773_v62  ;;  %v919_v31 = vmul.f32 %v2314_v41, %v773_v62  ;;  %v865_v12 = vmul.f32 %v2018_v28, %v769_v42 }
 0x155   :  { %v918_v32 = vmul.f32 %v2314_v41, %v769_v42  ;;  %v707_v29 = vadd.f32 %v683_v1, %v2730_v10 }
 0x156   :  { %v890_v62 = vadd.f32 %v866_v40, %v2045_v20  ;;  %v2342_v10 = vadd.f32 %v919_v31, %v2047_v34 }
 0x157   :  { %v781_v23 = vpop.permute.xlu1 %780  ;;  %v777_v19 = vpop.permute.xlu0 %776  ;;  %v2348_v20 = vadd.f32 %v918_v32, %v2051_v63 }
 0x158   :  { %v868_v47 = vmul.f32 %v2018_v28, %v781_v23  ;;  %v921_v33 = vmul.f32 %v2314_v41, %v781_v23  ;;  %v867_v5 = vmul.f32 %v2018_v28, %v777_v19 }
 0x15a   :  { %v2351_v40 = vadd.f32 %v868_v47, %v2069_v18 }
 0x15b   :  { %v789_v16 = vpop.permute.xlu1 %788  ;;  %v785_v58 = vpop.permute.xlu0 %784 }
 0x15c   :  { %v869_v42 = vmul.f32 %v2018_v28, %v785_v58 }
 0x15e   :  { %v2371_v18 = vadd.f32 %v869_v42, %v2098_v30 }
 0x15f   :  { %v797_v7 = vpop.permute.xlu1 %796  ;;  %v793_v48 = vpop.permute.xlu0 %792 }
 0x160   :  { %v871_v30 = vmul.f32 %v2018_v28, %v793_v48 }
 0x163   :  { %v2294_v53 = vpop.permute.xlu1 %804  ;;  %v2296_v51 = vpop.permute.xlu0 %800 }
 0x164   :  { %v927_v1 = vmul.f32 %v2314_v41, %v2294_v53 }
 0x167   :  { %v813_v37 = vpop.permute.xlu1 %812  ;;  %v2298_v49 = vpop.permute.xlu0 %808 }
 0x168   :  { %v929_v31 = vmul.f32 %v2314_v41, %v813_v37 }
 0x16b   :  { %v2300_v27 = vpop.permute.xlu1 %819  ;;  %v864_v17 = vpop.permute.xlu0 %863 }
 0x16c   :  { %v941_v63 = vmul.f32 %v2314_v41, %v864_v17 }
 0x16f   :  { %v2302_v60 = vpop.permute.xlu1 %827  ;;  %v2304_v46 = vpop.permute.xlu0 %823 }
 0x173   :  { %v2306_v38 = vpop.permute.xlu1 %835  ;;  %v2308_v8 = vpop.permute.xlu0 %831 }
 0x174   :  { %2724 = vst [vmem:[#allocation33_spill] sm:$0xff] %v2306_v38  ;;  %2725 = vst [vmem:[#allocation36_spill] sm:$0xff] %v2308_v8  ;;  %v923_v8 = vmul.f32 %v2314_v41, %v789_v16  ;;  %v922_v38 = vmul.f32 %v2314_v41, %v785_v58  ;;  %v2357_v58 = vadd.f32 %v867_v5, %v2073_v57  ;;  %v2395_v5 = vld [vmem:[#allocation4] ss:$0 sm:$0xff] }
 0x175   :  { %v872_v57 = vmul.f32 %v2018_v28, %v797_v7 }
 0x177   :  { %v2310_v0 = vpop.permute.xlu1 %843  ;;  %v2312_v55 = vpop.permute.xlu0 %839 }
 0x178   :  { %2726 = vst [vmem:[#allocation34_spill] sm:$0xff] %v2310_v0  ;;  %2727 = vst [vmem:[#allocation35_spill] sm:$0xff] %v2312_v55  ;;  %v2731_v55 = vld [vmem:[#allocation11_spill] sm:$0xff] }
 0x179   :  { %v760_v0 = vadd.f32 %v736_v2, %v2731_v55  ;;  %v889_v2 = vadd.f32 %v865_v12, %v2049_v35  ;;  %v888_v55 = vmul.f32 %v2018_v28, %v864_v17  ;;  %v2368_v12 = vadd.f32 %v923_v8, %v2096_v43 }
 0x17a   :  { %v925_v43 = vmul.f32 %v2314_v41, %v797_v7  ;;  %v873_v7 = vmul.f32 %v2018_v28, %v2296_v51 }
 0x17b   :  { %v2319_v56 = vpop.permute.xlu1 %851  ;;  %v2321_v45 = vpop.permute.xlu0 %847  ;;  %v965_v17 = vadd.f32 %v941_v63, %v760_v0 }
 0x17c   :  { %2728 = vst [vmem:[#allocation8_spill] sm:$0xff] %v2319_v56  ;;  %2729 = vst [vmem:[#allocation16_spill] sm:$0xff] %v2321_v45  ;;  %v920_v56 = vmul.f32 %v2314_v41, %v777_v19  ;;  %v870_v45 = vmul.f32 %v2018_v28, %v789_v16  ;;  %v876_v19 = vmul.f32 %v2018_v28, %v813_v37 }
 0x17d   :  { %v2354_v16 = vadd.f32 %v921_v33, %v2071_v22  ;;  %v2374_v22 = vadd.f32 %v922_v38, %v2100_v25  ;;  %v874_v25 = vmul.f32 %v2018_v28, %v2294_v53  ;;  %v953_v37 = vadd.f32 %v929_v31, %v2171_v26 }
 0x17e   :  { %v2360_v34 = vadd.f32 %v920_v56, %v2075_v4  ;;  %v2363_v35 = vadd.f32 %v870_v45, %v2094_v59  ;;  %v900_v59 = vadd.f32 %v876_v19, %v2169_v44  ;;  %v912_v56 = vadd.f32 %v888_v55, %v707_v29 }
 0x17f   :  { %v2337_v14 = vpop.permute.xlu1 %859  ;;  %v2339_v23 = vpop.permute.xlu0 %855  ;;  %v924_v45 = vmul.f32 %v2314_v41, %v793_v48  ;;  %v2387_v44 = vadd.f32 %v872_v57, %v2119_v9  ;;  %v926_v48 = vmul.f32 %v2314_v41, %v2296_v51  ;;  %v2400_v55 = vadd.f32 %v925_v43, %v2121_v36 }
 0x180   :  { %v2403_v53 = vadd.f32 %v871_v30, %v2123_v21  ;;  %v2409_v51 = vadd.f32 %v874_v25, %v2142_v13  ;;  %v2417_v36 = vadd.f32 %v873_v7, %v2146_v3  ;;  %v877_v3 = vmul.f32 %v2018_v28, %v2300_v27 }
 0x181   :  { %v2406_v31 = vadd.f32 %v924_v45, %v2125_v39  ;;  %v2420_v21 = vadd.f32 %v926_v48, %v2148_v50  ;;  %v875_v39 = vmul.f32 %v2018_v28, %v2298_v49 }
 0x183   :  { %v1069_v4 = vpop.permute.xlu1 %1068  ;;  %v1018_v33 = vpop.permute.xlu0 %1017 }
 0x184   :  { %v1093_v47 = vmul.f32 %v2314_v41, %v1069_v4  ;;  %v1081_v32 = vmul.f32 %v2314_v41, %v1018_v33 }
 0x186   :  { %v1117_v38 = vadd.f32 %v1093_v47, %v912_v56  ;;  %v1105_v8 = vadd.f32 %v1081_v32, %v900_v59  ;;  %v2414_v59 = vadd.f32 %v927_v1, %v2144_v15  ;;  %v928_v15 = vmul.f32 %v2314_v41, %v2298_v49 }
 0x187   :  { %v978_v29 = vpop.permute.xlu1 %977  ;;  %v974_v42 = vpop.permute.xlu0 %973 }
 0x188   :  { %v1141_v26 = vmax.f32 %v965_v17, %v1117_v38  ;;  %v1129_v0 = vmax.f32 %v953_v37, %v1105_v8  ;;  %v1071_v19 = vmul.f32 %v2314_v41, %v978_v29  ;;  %v1070_v9 = vmul.f32 %v2314_v41, %v974_v42 }
 0x189   :  { %v2441_v42 = vadd.f32 %v875_v39, %v2173_v54  ;;  %v878_v39 = vmul.f32 %v2018_v28, %v2304_v46 }
 0x18a   :  { %v1172_v63 = vadd.f32 %v2395_v5, %v1141_v26  ;;  %v1160_v57 = vadd.f32 %v2395_v5, %v1129_v0  ;;  %v1095_v4 = vadd.f32 %v1071_v19, %v890_v62  ;;  %v1094_v33 = vadd.f32 %v1070_v9, %v889_v2 }
 0x18b   :  { %v986_v13 = vpop.permute.xlu1 %985  ;;  %v982_v56 = vpop.permute.xlu0 %981  ;;  %v2444_v26 = vadd.f32 %v928_v15, %v2175_v24  ;;  %v930_v0 = vmul.f32 %v2314_v41, %v2300_v27  ;;  %v901_v9 = vadd.f32 %v877_v3, %v2194_v11 }
 0x18c   :  { %v1196_v47 = vmax.f32 %v1172_v63, 0.0  ;;  %v1184_v32 = vmax.f32 %v1160_v57, 0.0  ;;  %v1119_v43 = vmax.f32 %v2342_v10, %v1095_v4  ;;  %v1118_v62 = vmax.f32 %v2348_v20, %v1094_v33 }
 0x18d   :  { %v1073_v50 = vmul.f32 %v2314_v41, %v986_v13  ;;  %v1072_v2 = vmul.f32 %v2314_v41, %v982_v56  ;;  %v879_v63 = vmul.f32 %v2018_v28, %v2302_v60 }
 0x18e   :  { %v1199_v30 = vsel %vm1197_vm0, %v1196_v47, 0.0  ;;  %v1198_v45 = vsel %vm1197_vm0, %v1184_v32, 0.0  ;;  %v1150_v25 = vadd.f32 %v2395_v5, %v1119_v43  ;;  %v1149_v10 = vadd.f32 %v2395_v5, %v1118_v62 }
 0x18f   :  { %v1384_v37 = vpack.c.bf16 %v1199_v30, %v1199_v30  ;;  %v1372_v20 = vpack.c.bf16 %v1198_v45, %v1198_v45  ;;  %v1097_v17 = vadd.f32 %v1073_v50, %v2351_v40  ;;  %v1096_v49 = vadd.f32 %v1072_v2, %v2357_v58  ;;  %v994_v38 = vpop.permute.xlu1 %993  ;;  %v990_v8 = vpop.permute.xlu0 %989 }
 0x190   :  { %v1174_v1 = vmax.f32 %v1150_v25, 0.0  ;;  %v1173_v7 = vmax.f32 %v1149_v10, 0.0  ;;  %v1075_v48 = vmul.f32 %v2314_v41, %v994_v38  ;;  %v1074_v29 = vmul.f32 %v2314_v41, %v990_v8  ;;  %v2733_v10 = vld [vmem:[#allocation33_spill] sm:$0xff] }
 0x191   :  { %1319 = vst [vmem:[%s2613_s3 + $0x5c] sm:$0x1] %v1384_v37  ;;  %1307 = vst [vmem:[%s2613_s3 + $0x2c] sm:$0x1] %v1372_v20  ;;  %v1121_v40 = vmax.f32 %v2354_v16, %v1097_v17  ;;  %v1120_v58 = vmax.f32 %v2360_v34, %v1096_v49  ;;  %v2479_v43 = vadd.f32 %v930_v0, %v2196_v6  ;;  %v2735_v0 = vld [vmem:[#allocation36_spill] sm:$0xff] }
 0x192   :  { %v1388_v54 = vpack.c.bf16 %v1174_v1, %v1173_v7  ;;  %v1099_v19 = vadd.f32 %v1075_v48, %v2363_v35  ;;  %v1098_v24 = vadd.f32 %v1074_v29, %v2371_v18  ;;  %v932_v18 = vmul.f32 %v2314_v41, %v2302_v60 }
 0x193   :  { %v1152_v57 = vadd.f32 %v2395_v5, %v1121_v40  ;;  %v1151_v4 = vadd.f32 %v2395_v5, %v1120_v58  ;;  %v1002_v16 = vpop.permute.xlu1 %1001  ;;  %v998_v33 = vpop.permute.xlu0 %997  ;;  %v903_v62 = vadd.f32 %v879_v63, %v2222_v61  ;;  %v931_v60 = vmul.f32 %v2314_v41, %v2304_v46 }
 0x194   :  { %1389 = vst [vmem:[%s2613_s3] sm:$0xff] %v1388_v54   ;;  %v1123_v27 = vmax.f32 %v2368_v12, %v1099_v19  ;;  %v1122_v34 = vmax.f32 %v2374_v22, %v1098_v24  ;;  %v1077_v35 = vmul.f32 %v2314_v41, %v1002_v16  ;;  %v1076_v11 = vmul.f32 %v2314_v41, %v998_v33  ;;  %v2736_v24 = vld [vmem:[#allocation18_spill] sm:$0xff]  ;;  %v2737_v33 = vld [vmem:[#allocation19_spill] sm:$0xff] }
 0x195   :  { %v1176_v13 = vmax.f32 %v1152_v57, 0.0  ;;  %v1175_v56 = vmax.f32 %v1151_v4, 0.0  ;;  %v881_v37 = vmul.f32 %v2018_v28, %v2733_v10  ;;  %v934_v49 = vmul.f32 %v2314_v41, %v2733_v10 }
 0x196   :  { %v1154_v47 = vadd.f32 %v2395_v5, %v1123_v27  ;;  %v1153_v32 = vadd.f32 %v2395_v5, %v1122_v34  ;;  %v1101_v12 = vadd.f32 %v1077_v35, %v2387_v44  ;;  %v1100_v22 = vadd.f32 %v1076_v11, %v2403_v53  ;;  %v2732_v53 = vld [vmem:[#allocation12_spill] sm:$0xff]  ;;  %v2738_v34 = vld [vmem:[#allocation34_spill] sm:$0xff] }
 0x197   :  { %v1393_v15 = vpack.c.bf16 %v1176_v13, %v1175_v56  ;;  %v1010_v3 = vpop.permute.xlu1 %1009  ;;  %v1006_v50 = vpop.permute.xlu0 %1005  ;;  %v2487_v44 = vadd.f32 %v932_v18, %v2224_v52  ;;  %v902_v6 = vadd.f32 %v878_v39, %v2732_v53  ;;  %v2734_v52 = vld [vmem:[#allocation13_spill] sm:$0xff]  ;;  %v880_v54 = vmul.f32 %v2018_v28, %v2735_v0 }
 0x198   :  { %v1178_v2 = vmax.f32 %v1154_v47, 0.0  ;;  %v1177_v30 = vmax.f32 %v1153_v32, 0.0  ;;  %v1125_v45 = vmax.f32 %v2400_v55, %v1101_v12  ;;  %v1124_v25 = vmax.f32 %v2406_v31, %v1100_v22  ;;  %v2739_v47 = vld [vmem:[#allocation35_spill] sm:$0xff] }
 0x199   :  { %1435 = vst [vmem:[%s2613_s3 + $0x8] sm:$0xff] %v1393_v15   ;;  %v1079_v61 = vmul.f32 %v2314_v41, %v1010_v3  ;;  %v1078_v46 = vmul.f32 %v2314_v41, %v1006_v50  ;;  %v955_v17 = vadd.f32 %v931_v60, %v2734_v52  ;;  %v905_v63 = vadd.f32 %v881_v37, %v2736_v24 }
 0x19a   :  { %v1398_v20 = vpack.c.bf16 %v1178_v2, %v1177_v30  ;;  %v1156_v55 = vadd.f32 %v2395_v5, %v1125_v45  ;;  %v1155_v31 = vadd.f32 %v2395_v5, %v1124_v25  ;;  %v958_v27 = vadd.f32 %v934_v49, %v2737_v33  ;;  %v2741_v2 = vld [vmem:[#allocation25_spill] sm:$0xff]  ;;  %v2742_v45 = vld [vmem:[#allocation24_spill] sm:$0xff]  ;;  %v2744_v49 = vld [vmem:[#allocation15_spill] sm:$0xff] }
 0x19b   :  { %v1103_v38 = vadd.f32 %v1079_v61, %v2409_v51  ;;  %v1102_v8 = vadd.f32 %v1078_v46, %v2417_v36  ;;  %v1025_v1 = vpop.permute.xlu1 %1024  ;;  %v1014_v7 = vpop.permute.xlu0 %1013  ;;  %v933_v51 = vmul.f32 %v2314_v41, %v2735_v0  ;;  %v883_v35 = vmul.f32 %v2018_v28, %v2738_v34 }
 0x19c   :  { %1436 = vst [vmem:[%s2613_s3 + $0x10] sm:$0xff] %v1398_v20   ;;  %v1180_v48 = vmax.f32 %v1156_v55, 0.0  ;;  %v1179_v29 = vmax.f32 %v1155_v31, 0.0  ;;  %v1082_v40 = vmul.f32 %v2314_v41, %v1025_v1  ;;  %v1080_v58 = vmul.f32 %v2314_v41, %v1014_v7  ;;  %v2743_v31 = vld [vmem:[#allocation26_spill] sm:$0xff]  ;;  %v2746_v7 = vld [vmem:[#allocation8_spill] sm:$0xff] }
 0x19d   :  { %v1127_v36 = vmax.f32 %v2414_v59, %v1103_v38  ;;  %v1126_v19 = vmax.f32 %v2420_v21, %v1102_v8  ;;  %v936_v56 = vmul.f32 %v2314_v41, %v2738_v34  ;;  %v882_v32 = vmul.f32 %v2018_v28, %v2739_v47  ;;  %v2745_v8 = vld [vmem:[#allocation17_spill] sm:$0xff] }
 0x19e   :  { %v1403_v57 = vpack.c.bf16 %v1180_v48, %v1179_v29  ;;  %v1106_v4 = vadd.f32 %v1082_v40, %v901_v9  ;;  %v1104_v16 = vadd.f32 %v1080_v58, %v2441_v42  ;;  %v935_v60 = vmul.f32 %v2314_v41, %v2739_v47  ;;  %v2747_v40 = vld [vmem:[#allocation16_spill] sm:$0xff] }
 0x19f   :  { %v1158_v11 = vadd.f32 %v2395_v5, %v1127_v36  ;;  %v1157_v18 = vadd.f32 %v2395_v5, %v1126_v19  ;;  %v1033_v39 = vpop.permute.xlu1 %1032  ;;  %v1029_v13 = vpop.permute.xlu0 %1028  ;;  %v957_v30 = vadd.f32 %v933_v51, %v2741_v2  ;;  %v907_v25 = vadd.f32 %v883_v35, %v2742_v45  ;;  %v2748_v35 = vld [vmem:[#allocation29_spill] sm:$0xff]  ;;  %v2751_v2 = vld [vmem:[#allocation23_spill] sm:$0xff] }
 0x1a0   :  { %1437 = vst [vmem:[%s2613_s3 + $0x18] sm:$0xff] %v1403_v57   ;;  %v1130_v59 = vmax.f32 %v2479_v43, %v1106_v4  ;;  %v1128_v21 = vmax.f32 %v2444_v26, %v1104_v16  ;;  %v1084_v42 = vmul.f32 %v2314_v41, %v1033_v39  ;;  %v1083_v9 = vmul.f32 %v2314_v41, %v1029_v13  ;;  %v2740_v26 = vld [vmem:[#allocation14_spill] sm:$0xff] }
 0x1a1   :  { %v1182_v12 = vmax.f32 %v1158_v11, 0.0  ;;  %v1181_v22 = vmax.f32 %v1157_v18, 0.0  ;;  %v904_v50 = vadd.f32 %v880_v54, %v2740_v26  ;;  %v960_v52 = vadd.f32 %v936_v56, %v2743_v31 }
 0x1a2   :  { %v1159_v15 = vadd.f32 %v2395_v5, %v1128_v21  ;;  %v1108_v43 = vadd.f32 %v1084_v42, %v903_v62  ;;  %v1107_v3 = vadd.f32 %v1083_v9, %v902_v6  ;;  %v1161_v10 = vadd.f32 %v2395_v5, %v1130_v59  ;;  %v2749_v59 = vld [vmem:[#allocation30_spill] sm:$0xff]  ;;  %v2750_v42 = vld [vmem:[#allocation20_spill] sm:$0xff] }
 0x1a3   :  { %v1408_v53 = vpack.c.bf16 %v1182_v12, %v1181_v22  ;;  %v1041_v61 = vpop.permute.xlu1 %1040  ;;  %v1037_v46 = vpop.permute.xlu0 %1036  ;;  %v906_v62 = vadd.f32 %v882_v32, %v2744_v49  ;;  %v959_v1 = vadd.f32 %v935_v60, %v2745_v8  ;;  %v885_v48 = vmul.f32 %v2018_v28, %v2746_v7 }
 0x1a4   :  { %v1183_v37 = vmax.f32 %v1159_v15, 0.0  ;;  %v1132_v20 = vmax.f32 %v2487_v44, %v1108_v43  ;;  %v1131_v55 = vmax.f32 %v955_v17, %v1107_v3  ;;  %v1086_v6 = vmul.f32 %v2314_v41, %v1041_v61 }
 0x1a5   :  { %1438 = vst [vmem:[%s2613_s3 + $0x20] sm:$0xff] %v1408_v53   ;;  %v1085_v38 = vmul.f32 %v2314_v41, %v1037_v46  ;;  %v938_v17 = vmul.f32 %v2314_v41, %v2746_v7  ;;  %v884_v58 = vmul.f32 %v2018_v28, %v2747_v40  ;;  %v1185_v19 = vmax.f32 %v1161_v10, 0.0 }
 0x1a6   :  { %v1371_v29 = vpack.c.bf16 %v1183_v37, %v1183_v37  ;;  %v1162_v44 = vadd.f32 %v2395_v5, %v1131_v55  ;;  %v1110_v0 = vadd.f32 %v1086_v6, %v905_v63  ;;  %v937_v16 = vmul.f32 %v2314_v41, %v2747_v40 }
 0x1a7   :  { %v1109_v54 = vadd.f32 %v1085_v38, %v904_v50  ;;  %v1049_v51 = vpop.permute.xlu1 %1048  ;;  %v1045_v36 = vpop.permute.xlu0 %1044  ;;  %v1163_v33 = vadd.f32 %v2395_v5, %v1132_v20  ;;  %v909_v11 = vadd.f32 %v885_v48, %v2748_v35  ;;  %v962_v21 = vadd.f32 %v938_v17, %v2749_v59  ;;  %v2753_v38 = vld [vmem:[#allocation27_spill] sm:$0xff]  ;;  %v2754_v48 = vld [vmem:[#allocation32_spill] sm:$0xff] }
 0x1a8   :  { %1306 = vst [vmem:[%s2613_s3 + $0x28] sm:$0xf] %v1371_v29  ;;  %v1186_v24 = vmax.f32 %v1162_v44, 0.0  ;;  %v1088_v57 = vmul.f32 %v2314_v41, %v1049_v51  ;;  %v1087_v4 = vmul.f32 %v2314_v41, %v1045_v36  ;;  %v1134_v34 = vmax.f32 %v958_v27, %v1110_v0  ;;  %v2755_v44 = vld [vmem:[#allocation28_spill] sm:$0xff] }
 0x1a9   :  { %v1133_v63 = vmax.f32 %v957_v30, %v1109_v54  ;;  %v908_v9 = vadd.f32 %v884_v58, %v2750_v42  ;;  %v887_v43 = vmul.f32 %v2018_v28, %v2337_v14  ;;  %v886_v3 = vmul.f32 %v2018_v28, %v2339_v23 }
 0x1aa   :  { %v1413_v18 = vpack.c.bf16 %v1186_v24, %v1185_v19  ;;  %v1112_v39 = vadd.f32 %v1088_v57, %v907_v25  ;;  %v1111_v13 = vadd.f32 %v1087_v4, %v906_v62  ;;  %v1165_v56 = vadd.f32 %v2395_v5, %v1134_v34  ;;  %v2752_v62 = vld [vmem:[#allocation31_spill] sm:$0xff] }
 0x1ab   :  { %v1164_v47 = vadd.f32 %v2395_v5, %v1133_v63  ;;  %v1057_v32 = vpop.permute.xlu1 %1056  ;;  %v1053_v12 = vpop.permute.xlu0 %1052  ;;  %v1187_v26 = vmax.f32 %v1163_v33, 0.0  ;;  %v961_v30 = vadd.f32 %v937_v16, %v2751_v2  ;;  %v940_v61 = vmul.f32 %v2314_v41, %v2337_v14 }
 0x1ac   :  { %1439 = vst [vmem:[%s2613_s3 + $0x30] sm:$0xff] %v1413_v18   ;;  %v1136_v27 = vmax.f32 %v960_v52, %v1112_v39  ;;  %v1135_v22 = vmax.f32 %v959_v1, %v1111_v13  ;;  %v1090_v60 = vmul.f32 %v2314_v41, %v1057_v32  ;;  %v1089_v15 = vmul.f32 %v2314_v41, %v1053_v12 }
 0x1ad   :  { %v1188_v50 = vmax.f32 %v1164_v47, 0.0  ;;  %v939_v46 = vmul.f32 %v2314_v41, %v2339_v23  ;;  %v1189_v10 = vmax.f32 %v1165_v56, 0.0  ;;  %v911_v6 = vadd.f32 %v887_v43, %v2752_v62 }
 0x1ae   :  { %v1166_v45 = vadd.f32 %v2395_v5, %v1135_v22  ;;  %v1114_v25 = vadd.f32 %v1090_v60, %v909_v11  ;;  %v1113_v53 = vadd.f32 %v1089_v15, %v908_v9  ;;  %v1167_v28 = vadd.f32 %v2395_v5, %v1136_v27 }
 0x1af   :  { %v1418_v37 = vpack.c.bf16 %v1188_v50, %v1187_v26  ;;  %v1065_v20 = vpop.permute.xlu1 %1064  ;;  %v1061_v55 = vpop.permute.xlu0 %1060  ;;  %v910_v8 = vadd.f32 %v886_v3, %v2753_v38  ;;  %v964_v29 = vadd.f32 %v940_v61, %v2754_v48  ;;  %v963_v17 = vadd.f32 %v939_v46, %v2755_v44 }
 0x1b0   :  { %v1190_v31 = vmax.f32 %v1166_v45, 0.0  ;;  %v1138_v52 = vmax.f32 %v962_v21, %v1114_v25  ;;  %v1137_v49 = vmax.f32 %v961_v30, %v1113_v53  ;;  %v1092_v14 = vmul.f32 %v2314_v41, %v1065_v20 }
 0x1b1   :  { %1440 = vst [vmem:[%s2613_s3 + $0x38] sm:$0xff] %v1418_v37   ;;  %v1091_v23 = vmul.f32 %v2314_v41, %v1061_v55  ;;  %v1191_v0 = vmax.f32 %v1167_v28, 0.0 }
 0x1b2   :  { %v1423_v1 = vpack.c.bf16 %v1190_v31, %v1189_v10  ;;  %v1168_v7 = vadd.f32 %v2395_v5, %v1137_v49  ;;  %v1116_v40 = vadd.f32 %v1092_v14, %v911_v6  ;;  %v1169_v51 = vadd.f32 %v2395_v5, %v1138_v52 }
 0x1b3   :  { %v1115_v58 = vadd.f32 %v1091_v23, %v910_v8 }
 0x1b4   :  { %1441 = vst [vmem:[%s2613_s3 + $0x40] sm:$0xff] %v1423_v1   ;;  %v1192_v54 = vmax.f32 %v1168_v7, 0.0  ;;  %v1140_v36 = vmax.f32 %v964_v29, %v1116_v40  ;;  %v1193_v4 = vmax.f32 %v1169_v51, 0.0 }
 0x1b5   :  { %v1139_v19 = vmax.f32 %v963_v17, %v1115_v58 }
 0x1b6   :  { %v1428_v41 = vpack.c.bf16 %v1192_v54, %v1191_v0  ;;  %v1171_v24 = vadd.f32 %v2395_v5, %v1140_v36 }
 0x1b7   :  { %v1170_v57 = vadd.f32 %v2395_v5, %v1139_v19 }
 0x1b8   :  { %1442 = vst [vmem:[%s2613_s3 + $0x48] sm:$0xff] %v1428_v41   ;;  %v1195_v16 = vmax.f32 %v1171_v24, 0.0 }
 0x1b9   :  { %v1194_v33 = vmax.f32 %v1170_v57, 0.0 }
 0x1ba   :  { %v1383_v34 = vpack.c.bf16 %v1195_v16, %v1195_v16 }
 0x1bb   :  { %v1433_v63 = vpack.c.bf16 %v1194_v33, %v1193_v4 }
 0x1bc   :  { %1318 = vst [vmem:[%s2613_s3 + $0x58] sm:$0xf] %v1383_v34 }
 0x1bd   :  { %1443 = vst [vmem:[%s2613_s3 + $0x50] sm:$0xff] %v1433_v63  }
 0x1be   :  { %1324 = vsyncpa [#allocation3], 1 }
 0x1bf   :  { %1325 = vsyncpa [#allocation5], 1 }

// kernel: cnn_forward.3
= control target key start
LH: loop header
LB: loop body
LE: loop exit
PB: predicated region body
PF: predicated region fallthrough
CT: control target
= control target key end

     0   :  { %s5698_s12 = smov 0   ;;  %s6179_s0 = inlined_call_operand.vmem [shape: bf16[2,11520], index: 0, kind: input, shape index: {}]   ;;  %s6180_s1 = inlined_call_operand.vmem [shape: bf16[11520,101], index: 1, kind: input, shape index: {}]   ;;  %s6181_s2 = inlined_call_operand.vmem [shape: f32[1,101], index: 2, kind: input, shape index: {}]   ;;  %s6182_s3 = inlined_call_operand.vmem [shape: f32[2,2,101], index: 3, kind: output, shape index: {}]  }
   0x1 LB: > { %s5704_s13 = sadd.s32 4294967295, %s5673_s12   ;;  %p4412_p0 = scmp.ge.s32.totalorder %s5673_s12, 1  ;;  %s5673_s12 = sphi %s5698_s12, %s13_s12  }
   0x2   : > { %p148_p1 = scmp.lt.s32.totalorder %s5673_s12, 3 }
   0x4   : > { %p149_p2 = pnand %p4412_p0, %p148_p1 }
   0x5   : > { %s180_s14 = smul.u32 (!%p149_p2), 720, %s5704_s13  ;;  %p918_p5 = scmp.eq.s32.totalorder (!%p149_p2), %s5704_s13, 0 }
   0x6   : > { %152 = sbr.rel (%p149_p2) target bundleno = 598 (0x256), region = 32  ;;  %p186_p6 = scmp.lt.s32.totalorder (!%p149_p2), %s5704_s13, 1 }
   0x7   : > { %p181_p3 = scmp.lt.s32.totalorder (!%p149_p2), %s180_s14, 1439  ;;  %s175_s19 = smul.u32 (!%p149_p2), 45, %s5704_s13 }
   0x9   : > { %p176_p4 = scmp.lt.s32.totalorder (!%p149_p2), %s175_s19, 89 }
   0xb   : > { %s6184_s14 = smov (!%p181_p3, %s180_s14), 1439  ;;  %v924_v20 = vlaneseq  ;;  %v5675_v22 = vmov 1966171168   ;;  %s6186_s19 = smov (!%p176_p4, %s175_s19), 89  ;;  %vm5677_vm0 = vmmov 0   ;;  %vm4344_vm1 = vcmask 820224  }
   0xc   : > { %s4413_s15 = sshll.u32 %s6184_s14, 2  ;;  %v937_v23 = vunpack.c.l.s4 %v5675_v22  ;;  %s5749_s22 = scalar_lea.vmem %s6179_s0, %s6186_s19 }
   0xd   : > { %s5712_s18 = scalar_lea.vmem %s6180_s1, %s4413_s15  ;;  %v5739_v27 = vshrl.u32 %v924_v20, 7  ;;  %v191_v37 = vld [vmem:[%s5749_s22] sm:$0xff]  ;;  %s6188_s13 = smov (!%p186_p6, %s5704_s13), 1 }
   0xe   : > { %v5301_v0 = vld [vmem:[%s5712_s18 + $0x78] sm:$0xff]   ;;  %v5305_v4 = vld [vmem:[%s5712_s18 + $0x70] sm:$0xff]   ;;  %v5309_v8 = vld [vmem:[%s5712_s18 + $0x68] sm:$0xff]   ;;  %v938_v29 = vunpack.c.0.s8 %v937_v23  ;;  %v935_v38 = vcombine.high %v191_v37, %v191_v37  ;;  %s5910_s23 = scalar_select %p918_p5, 1, 0 }
   0xf   : > { %v5302_v1 = vld [vmem:[%s5712_s18 + $0x38] sm:$0xff]   ;;  %4777 = vmatprep.subr.bf16.mxu0 %v5301_v0  ;;  %v5306_v5 = vld [vmem:[%s5712_s18 + $0x30] sm:$0xff]   ;;  %v5310_v9 = vld [vmem:[%s5712_s18 + $0x28] sm:$0xff]   ;;  %s4414_s27 = sshll.u32 %s6188_s13, 1 }
  0x10   : > { %v5303_v2 = vld [vmem:[%s5712_s18 + $0xf8] sm:$0xff]   ;;  %4778 = vmatpush3.bf16.msra.mxu0 %v5302_v1  ;;  %v5307_v6 = vld [vmem:[%s5712_s18 + $0xf0] sm:$0xff]   ;;  %v5311_v10 = vld [vmem:[%s5712_s18 + $0xe8] sm:$0xff]   ;;  %v5752_v34 = vsub.s32 %v938_v29, %v5739_v27  ;;  %s920_s24 = scvt.s32.f32 %s5910_s23  ;;  %s189_s30 = scalar_lea.vmem %s6182_s3, %s4414_s27 }
  0x11   : > { %v5304_v3 = vld [vmem:[%s5712_s18 + $0xb8] sm:$0xff]   ;;  %4799 = vmatprep.subr.bf16.mxu1 %v5303_v2  ;;  %4779 = vmatprep.subr.bf16.mxu0 %v5305_v4  ;;  %v5308_v7 = vld [vmem:[%s5712_s18 + $0xb0] sm:$0xff]   ;;  %v5312_v11 = vld [vmem:[%s5712_s18 + $0xa8] sm:$0xff]  }
  0x12   : > { %4800 = vmatpush3.bf16.msra.mxu1 %v5304_v3  ;;  %v5313_v12 = vld [vmem:[%s5712_s18 + $0x60] sm:$0xff]   ;;  %v5317_v16 = vld [vmem:[%s5712_s18 + $0x58] sm:$0xff]   ;;  %v5321_v21 = vld [vmem:[%s5712_s18 + $0x50] sm:$0xff]   ;;  %v942_v39 = vrot.slane %v191_v37, %v5752_v34  ;;  %v5763_v45 = vrot.slane %v935_v38, %v5752_v34 }
  0x13   : > { %4801 = vmatprep.subr.bf16.mxu1 %v5307_v6  ;;  %v5314_v13 = vld [vmem:[%s5712_s18 + $0x20] sm:$0xff]   ;;  %v5318_v17 = vld [vmem:[%s5712_s18 + $0x18] sm:$0xff]   ;;  %v5322_v24 = vld [vmem:[%s5712_s18 + $0x10] sm:$0xff]  }
  0x14   : > { %4780 = vmatpush3.bf16.msra.mxu0 %v5306_v5  ;;  %v5315_v14 = vld [vmem:[%s5712_s18 + $0xe0] sm:$0xff]   ;;  %v5319_v18 = vld [vmem:[%s5712_s18 + $0xd8] sm:$0xff]   ;;  %v5323_v25 = vld [vmem:[%s5712_s18 + $0xd0] sm:$0xff]   ;;  %v950_v42 = vcombine.high %v942_v39, %v942_v39  ;;  %v958_v43 = vrot.slane %v942_v39, %v5752_v34  ;;  %v951_v49 = vcombine.high %v5763_v45, %v5763_v45 }
  0x15   : > { %4781 = vmatprep.subr.bf16.mxu0 %v5309_v8  ;;  %v5316_v15 = vld [vmem:[%s5712_s18 + $0xa0] sm:$0xff]   ;;  %v5320_v19 = vld [vmem:[%s5712_s18 + $0x98] sm:$0xff]   ;;  %v5324_v26 = vld [vmem:[%s5712_s18 + $0x90] sm:$0xff]  }
  0x16   : > { %4802 = vmatpush3.bf16.msra.mxu1 %v5308_v7  ;;  %v5325_v28 = vld [vmem:[%s5712_s18 + $0x48] sm:$0xff]   ;;  %v5329_v33 = vld [vmem:[%s5712_s18 + $0x40] sm:$0xff]   ;;  %v5334_v41 = vld [vmem:[%s5712_s18 + $0x178] sm:$0xff]   ;;  %v972_v47 = vrot.slane %v950_v42, %v5752_v34  ;;  %v980_v50 = vcombine.high %v958_v43, %v958_v43  ;;  %v979_v54 = vrot.slane %v951_v49, %v5752_v34 }
  0x17   : > { %4803 = vmatprep.subr.bf16.mxu1 %v5311_v10  ;;  %v5326_v30 = vld [vmem:[%s5712_s18 + $0x8] sm:$0xff]   ;;  %v5330_v35 = vld [vmem:[%s5712_s18] sm:$0xff]   ;;  %v5335_v44 = vld [vmem:[%s5712_s18 + $0x138] sm:$0xff]  }
  0x18   : > { %4782 = vmatpush3.bf16.msra.mxu0 %v5310_v9  ;;  %v5327_v31 = vld [vmem:[%s5712_s18 + $0xc8] sm:$0xff]   ;;  %v5331_v36 = vld [vmem:[%s5712_s18 + $0xc0] sm:$0xff]   ;;  %v5336_v46 = vld [vmem:[%s5712_s18 + $0x1f8] sm:$0xff]   ;;  %3456 = vmatprep.mubr.bf16.mxu0 %v972_v47  ;;  %v982_v52 = vcombine.high %v972_v47, %v972_v47  ;;  %v983_v57 = vcombine.high %v979_v54, %v979_v54 }
  0x19   : > { %4783 = vmatprep.subr.bf16.mxu0 %v5313_v12  ;;  %v5328_v32 = vld [vmem:[%s5712_s18 + $0x88] sm:$0xff]   ;;  %v5333_v40 = vld [vmem:[%s5712_s18 + $0x80] sm:$0xff]   ;;  %v5337_v48 = vld [vmem:[%s5712_s18 + $0x1b8] sm:$0xff]  }
  0x1a   : > { %4804 = vmatpush3.bf16.msra.mxu1 %v5312_v11  ;;  %v5338_v51 = vld [vmem:[%s5712_s18 + $0x170] sm:$0xff]   ;;  %3496 = vmatprep.mubr.bf16.mxu1 %v982_v52  ;;  %v5342_v58 = vld [vmem:[%s5712_s18 + $0x168] sm:$0xff]   ;;  %v5346_v62 = vld [vmem:[%s5712_s18 + $0x160] sm:$0xff]  }
  0x1b   : > { %4805 = vmatprep.subr.bf16.mxu1 %v5315_v14  ;;  %v5339_v53 = vld [vmem:[%s5712_s18 + $0x130] sm:$0xff]   ;;  %v5343_v59 = vld [vmem:[%s5712_s18 + $0x128] sm:$0xff]   ;;  %v5347_v63 = vld [vmem:[%s5712_s18 + $0x120] sm:$0xff]  }
  0x1c   : > { %4784 = vmatpush3.bf16.msra.mxu0 %v5314_v13  ;;  %v5340_v55 = vld [vmem:[%s5712_s18 + $0x1f0] sm:$0xff]   ;;  %v5344_v60 = vld [vmem:[%s5712_s18 + $0x1e8] sm:$0xff]   ;;  %v5348_v0 = vld [vmem:[%s5712_s18 + $0x1e0] sm:$0xff]  }
  0x1d   : > { %4785 = vmatprep.subr.bf16.mxu0 %v5317_v16  ;;  %v5341_v56 = vld [vmem:[%s5712_s18 + $0x1b0] sm:$0xff]   ;;  %v5345_v61 = vld [vmem:[%s5712_s18 + $0x1a8] sm:$0xff]   ;;  %v5349_v1 = vld [vmem:[%s5712_s18 + $0x1a0] sm:$0xff]  }
  0x1e   : > { %4806 = vmatpush3.bf16.msra.mxu1 %v5316_v15  ;;  %v5350_v2 = vld [vmem:[%s5712_s18 + $0x158] sm:$0xff]   ;;  %v5354_v6 = vld [vmem:[%s5712_s18 + $0x150] sm:$0xff]   ;;  %v5358_v10 = vld [vmem:[%s5712_s18 + $0x148] sm:$0xff]  }
  0x1f   : > { %4807 = vmatprep.subr.bf16.mxu1 %v5319_v18  ;;  %v5351_v3 = vld [vmem:[%s5712_s18 + $0x118] sm:$0xff]   ;;  %v5355_v7 = vld [vmem:[%s5712_s18 + $0x110] sm:$0xff]   ;;  %v5359_v11 = vld [vmem:[%s5712_s18 + $0x108] sm:$0xff]   ;;  %v965_v18 = vrot.slane %v5763_v45, %v5752_v34 }
  0x20   : > { %4786 = vmatpush3.bf16.msra.mxu0 %v5318_v17  ;;  %v5352_v4 = vld [vmem:[%s5712_s18 + $0x1d8] sm:$0xff]   ;;  %v5356_v8 = vld [vmem:[%s5712_s18 + $0x1d0] sm:$0xff]   ;;  %v5360_v12 = vld [vmem:[%s5712_s18 + $0x1c8] sm:$0xff]  }
  0x21   : > { %4787 = vmatprep.subr.bf16.mxu0 %v5321_v21  ;;  %v5353_v5 = vld [vmem:[%s5712_s18 + $0x198] sm:$0xff]   ;;  %v5357_v9 = vld [vmem:[%s5712_s18 + $0x190] sm:$0xff]   ;;  %v5361_v13 = vld [vmem:[%s5712_s18 + $0x188] sm:$0xff]   ;;  %v981_v23 = vcombine.high %v965_v18, %v965_v18 }
  0x22   : > { %4808 = vmatpush3.bf16.msra.mxu1 %v5320_v19  ;;  %v5362_v14 = vld [vmem:[%s5712_s18 + $0x140] sm:$0xff]   ;;  %v5366_v19 = vld [vmem:[%s5712_s18 + $0x278] sm:$0xff]   ;;  %v5374_v29 = vld [vmem:[%s5712_s18 + $0x268] sm:$0xff]  }
  0x23   : > { %4809 = vmatprep.subr.bf16.mxu1 %v5323_v25  ;;  %v5363_v15 = vld [vmem:[%s5712_s18 + $0x100] sm:$0xff]   ;;  %v5367_v20 = vld [vmem:[%s5712_s18 + $0x238] sm:$0xff]   ;;  %v5371_v25 = vld [vmem:[%s5712_s18 + $0x230] sm:$0xff]  }
  0x24   : > { %4788 = vmatpush3.bf16.msra.mxu0 %v5322_v24  ;;  %v5364_v16 = vld [vmem:[%s5712_s18 + $0x1c0] sm:$0xff]   ;;  %v5368_v21 = vld [vmem:[%s5712_s18 + $0x2f8] sm:$0xff]   ;;  %v5370_v24 = vld [vmem:[%s5712_s18 + $0x270] sm:$0xff]  }
  0x25   : > { %4789 = vmatprep.subr.bf16.mxu0 %v5325_v28  ;;  %v5365_v17 = vld [vmem:[%s5712_s18 + $0x180] sm:$0xff]   ;;  %v5369_v22 = vld [vmem:[%s5712_s18 + $0x2b8] sm:$0xff]   ;;  %v5373_v28 = vld [vmem:[%s5712_s18 + $0x2b0] sm:$0xff]  }
  0x26   : > { %4810 = vmatpush3.bf16.msra.mxu1 %v5324_v26  ;;  %v5372_v26 = vld [vmem:[%s5712_s18 + $0x2f0] sm:$0xff]   ;;  %v5381_v37 = vld [vmem:[%s5712_s18 + $0x2a0] sm:$0xff]   ;;  %v5382_v38 = vld [vmem:[%s5712_s18 + $0x258] sm:$0xff]  }
  0x27   : > { %4811 = vmatprep.subr.bf16.mxu1 %v5327_v31  ;;  %v5376_v31 = vld [vmem:[%s5712_s18 + $0x2e8] sm:$0xff]   ;;  %v5383_v39 = vld [vmem:[%s5712_s18 + $0x218] sm:$0xff]   ;;  %v5386_v42 = vld [vmem:[%s5712_s18 + $0x250] sm:$0xff]  }
  0x28   : > { %4790 = vmatpush3.bf16.msra.mxu0 %v5326_v30  ;;  %v5375_v30 = vld [vmem:[%s5712_s18 + $0x228] sm:$0xff]   ;;  %v5389_v45 = vld [vmem:[%s5712_s18 + $0x290] sm:$0xff]   ;;  %v5396_v52 = vld [vmem:[%s5712_s18 + $0x2c0] sm:$0xff]  }
  0x29   : > { %4791 = vmatprep.subr.bf16.mxu0 %v5329_v33  ;;  %v5378_v33 = vld [vmem:[%s5712_s18 + $0x260] sm:$0xff]   ;;  %v5391_v47 = vld [vmem:[%s5712_s18 + $0x208] sm:$0xff]  }
  0x2a   : > { %4812 = vmatpush3.bf16.msra.mxu1 %v5328_v32  ;;  %v5377_v32 = vld [vmem:[%s5712_s18 + $0x2a8] sm:$0xff]  }
  0x2b   : > { %4813 = vmatprep.subr.bf16.mxu1 %v5331_v36  ;;  %v5380_v36 = vld [vmem:[%s5712_s18 + $0x2e0] sm:$0xff]   ;;  %v5393_v49 = vld [vmem:[%s5712_s18 + $0x288] sm:$0xff]  }
  0x2c   : > { %4792 = vmatpush3.bf16.msra.mxu0 %v5330_v35  ;;  %v5379_v35 = vld [vmem:[%s5712_s18 + $0x220] sm:$0xff]  }
  0x2d   : > { %4821 = vmatprep.subr.bf16.mxu0 %v5334_v41  ;;  %v5385_v41 = vld [vmem:[%s5712_s18 + $0x298] sm:$0xff]  }
  0x2e   : > { %4814 = vmatpush3.bf16.msra.mxu1 %v5333_v40  ;;  %v5384_v40 = vld [vmem:[%s5712_s18 + $0x2d8] sm:$0xff]  }
  0x2f   : > { %4843 = vmatprep.subr.bf16.mxu1 %v5336_v46  ;;  %3457 = vmatmul.mubr.bf16.vlgmr.msra.gmra.mxu0 %v958_v43  ;;  %v5387_v43 = vld [vmem:[%s5712_s18 + $0x210] sm:$0xff]   ;;  %v5390_v46 = vld [vmem:[%s5712_s18 + $0x248] sm:$0xff]  }
  0x30   : > { %4822 = vmatpush3.bf16.msra.mxu0 %v5335_v44  ;;  %3536 = vmatprep.mubr.bf16.mxu0 %v979_v54  ;;  %v5388_v44 = vld [vmem:[%s5712_s18 + $0x2d0] sm:$0xff]  }
  0x31   : > { %3497 = vmatmul.mubr.bf16.vlgmr.msra.gmra.mxu1 %v980_v50  ;;  %4823 = vmatprep.subr.bf16.mxu0 %v5338_v51  ;;  %v5394_v50 = vld [vmem:[%s5712_s18 + $0x240] sm:$0xff]  }
  0x32   : > { %4844 = vmatpush3.bf16.msra.mxu1 %v5337_v48  ;;  %3576 = vmatprep.mubr.bf16.mxu1 %v983_v57  ;;  %v5392_v48 = vld [vmem:[%s5712_s18 + $0x2c8] sm:$0xff]   ;;  %v5395_v51 = vld [vmem:[%s5712_s18 + $0x200] sm:$0xff]   ;;  %v5398_v57 = vld [vmem:[%s5712_s18 + $0x378] sm:$0xff]  }
  0x33   : > { %4845 = vmatprep.subr.bf16.mxu1 %v5340_v55  ;;  %v5397_v55 = vld [vmem:[%s5712_s18 + $0x280] sm:$0xff]  }
  0x34   : > { %4824 = vmatpush3.bf16.msra.mxu0 %v5339_v53  ;;  %v192_v53 = vld [vmem:[%s5749_s22 + $0x8] sm:$0xff] }
  0x35   : > { %4825 = vmatprep.subr.bf16.mxu0 %v5342_v58  ;;  %v991_v54 = vrot.slane %v192_v53, %v5752_v34 }
  0x36   : > { %4846 = vmatpush3.bf16.msra.mxu1 %v5341_v56  ;;  %v984_v56 = vcombine.high %v192_v53, %v192_v53  ;;  %v5446_v53 = vld [vmem:[%s5712_s18 + $0x4a0] sm:$0xff]  }
  0x37   : > { %4847 = vmatprep.subr.bf16.mxu1 %v5344_v60  ;;  %v999_v58 = vcombine.high %v991_v54, %v991_v54  ;;  %v5399_v60 = vld [vmem:[%s5712_s18 + $0x338] sm:$0xff]  }
  0x38   : > { %4826 = vmatpush3.bf16.msra.mxu0 %v5343_v59  ;;  %v1007_v59 = vrot.slane %v991_v54, %v5752_v34  ;;  %v5447_v54 = vld [vmem:[%s5712_s18 + $0x458] sm:$0xff]  }
  0x39   : > { %4827 = vmatprep.subr.bf16.mxu0 %v5346_v62  ;;  %v5400_v62 = vld [vmem:[%s5712_s18 + $0x3f8] sm:$0xff]  }
  0x3a   : > { %4848 = vmatpush3.bf16.msra.mxu1 %v5345_v61  ;;  %v5839_v61 = vrot.slane %v984_v56, %v5752_v34  ;;  %v5449_v56 = vld [vmem:[%s5712_s18 + $0x4d8] sm:$0xff]  }
  0x3b   : > { %4849 = vmatprep.subr.bf16.mxu1 %v5348_v0  ;;  %v5401_v0 = vld [vmem:[%s5712_s18 + $0x3b8] sm:$0xff]  }
  0x3c   : > { %4828 = vmatpush3.bf16.msra.mxu0 %v5347_v63  ;;  %v1021_v63 = vrot.slane %v999_v58, %v5752_v34  ;;  %v5451_v58 = vld [vmem:[%s5712_s18 + $0x450] sm:$0xff]  }
  0x3d   : > { %4829 = vmatprep.subr.bf16.mxu0 %v5350_v2  ;;  %v1029_v2 = vcombine.high %v1007_v59, %v1007_v59 }
  0x3e   : > { %4850 = vmatpush3.bf16.msra.mxu1 %v5349_v1  ;;  %v1000_v1 = vcombine.high %v5839_v61, %v5839_v61 }
  0x3f   : > { %4851 = vmatprep.subr.bf16.mxu1 %v5352_v4  ;;  %v1031_v4 = vcombine.high %v1021_v63, %v1021_v63 }
  0x40   : > { %4830 = vmatpush3.bf16.msra.mxu0 %v5351_v3  ;;  %v5402_v3 = vld [vmem:[%s5712_s18 + $0x370] sm:$0xff]  }
  0x41   : > { %4831 = vmatprep.subr.bf16.mxu0 %v5354_v6  ;;  %v1028_v6 = vrot.slane %v1000_v1, %v5752_v34  ;;  %v5458_v1 = vld [vmem:[%s5712_s18 + $0x488] sm:$0xff]  }
  0x42   : > { %4852 = vmatpush3.bf16.msra.mxu1 %v5353_v5  ;;  %v5403_v5 = vld [vmem:[%s5712_s18 + $0x330] sm:$0xff]  }
  0x43   : > { %4853 = vmatprep.subr.bf16.mxu1 %v5356_v8  ;;  %v5405_v8 = vld [vmem:[%s5712_s18 + $0x3b0] sm:$0xff]  }
  0x44   : > { %4832 = vmatpush3.bf16.msra.mxu0 %v5355_v7  ;;  %v5404_v7 = vld [vmem:[%s5712_s18 + $0x3f0] sm:$0xff]  }
  0x45   : > { %4833 = vmatprep.subr.bf16.mxu0 %v5358_v10  ;;  %v5406_v10 = vld [vmem:[%s5712_s18 + $0x368] sm:$0xff]  }
  0x46   : > { %4854 = vmatpush3.bf16.msra.mxu1 %v5357_v9  ;;  %v1032_v9 = vcombine.high %v1028_v6, %v1028_v6 }
  0x47   : > { %4855 = vmatprep.subr.bf16.mxu1 %v5360_v12  ;;  %v5408_v12 = vld [vmem:[%s5712_s18 + $0x3e8] sm:$0xff]  }
  0x48   : > { %4834 = vmatpush3.bf16.msra.mxu0 %v5359_v11  ;;  %v5407_v11 = vld [vmem:[%s5712_s18 + $0x328] sm:$0xff]  }
  0x49   : > { %4835 = vmatprep.subr.bf16.mxu0 %v5362_v14  ;;  %v5410_v14 = vld [vmem:[%s5712_s18 + $0x360] sm:$0xff]  }
  0x4a   : > { %4856 = vmatpush3.bf16.msra.mxu1 %v5361_v13  ;;  %v5409_v13 = vld [vmem:[%s5712_s18 + $0x3a8] sm:$0xff]  }
  0x4b   : > { %4857 = vmatprep.subr.bf16.mxu1 %v5364_v16  ;;  %v5412_v16 = vld [vmem:[%s5712_s18 + $0x3e0] sm:$0xff]  }
  0x4c   : > { %4836 = vmatpush3.bf16.msra.mxu0 %v5363_v15  ;;  %v5411_v15 = vld [vmem:[%s5712_s18 + $0x320] sm:$0xff]  }
  0x4d   : > { %4865 = vmatprep.subr.bf16.mxu0 %v5366_v19  ;;  %v5415_v19 = vld [vmem:[%s5712_s18 + $0x318] sm:$0xff]  }
  0x4e   : > { %4858 = vmatpush3.bf16.msra.mxu1 %v5365_v17  ;;  %v5413_v17 = vld [vmem:[%s5712_s18 + $0x3a0] sm:$0xff]  }
  0x4f   : > { %3537 = vmatmul.mubr.bf16.vlgmr.msra.gmra.mxu0 %v965_v18  ;;  %4887 = vmatprep.subr.bf16.mxu1 %v5368_v21  ;;  %v5414_v18 = vld [vmem:[%s5712_s18 + $0x358] sm:$0xff]  }
  0x50   : > { %4866 = vmatpush3.bf16.msra.mxu0 %v5367_v20  ;;  %3616 = vmatprep.mubr.bf16.mxu0 %v1021_v63  ;;  %v5416_v20 = vld [vmem:[%s5712_s18 + $0x3d8] sm:$0xff]   ;;  %v5456_v63 = vld [vmem:[%s5712_s18 + $0x408] sm:$0xff]  }
  0x51   : > { %3577 = vmatmul.mubr.bf16.vlgmr.msra.gmra.mxu1 %v981_v23  ;;  %4867 = vmatprep.subr.bf16.mxu0 %v5370_v24  ;;  %v5417_v21 = vld [vmem:[%s5712_s18 + $0x398] sm:$0xff]   ;;  %v5419_v23 = vld [vmem:[%s5712_s18 + $0x310] sm:$0xff]  }
  0x52   : > { %4888 = vmatpush3.bf16.msra.mxu1 %v5369_v22  ;;  %3656 = vmatprep.mubr.bf16.mxu1 %v1031_v4  ;;  %v5418_v22 = vld [vmem:[%s5712_s18 + $0x350] sm:$0xff]   ;;  %v5461_v4 = vld [vmem:[%s5712_s18 + $0x4c0] sm:$0xff]  }
  0x53   : > { %4889 = vmatprep.subr.bf16.mxu1 %v5372_v26  ;;  %v5420_v24 = vld [vmem:[%s5712_s18 + $0x3d0] sm:$0xff]   ;;  %v5422_v26 = vld [vmem:[%s5712_s18 + $0x348] sm:$0xff]  }
  0x54   : > { %4868 = vmatpush3.bf16.msra.mxu0 %v5371_v25  ;;  %v5421_v25 = vld [vmem:[%s5712_s18 + $0x390] sm:$0xff]  }
  0x55   : > { %4869 = vmatprep.subr.bf16.mxu0 %v5374_v29  ;;  %v5424_v29 = vld [vmem:[%s5712_s18 + $0x3c8] sm:$0xff]  }
  0x56   : > { %4890 = vmatpush3.bf16.msra.mxu1 %v5373_v28  ;;  %v5423_v28 = vld [vmem:[%s5712_s18 + $0x308] sm:$0xff]  }
  0x57   : > { %4891 = vmatprep.subr.bf16.mxu1 %v5376_v31  ;;  %v5426_v31 = vld [vmem:[%s5712_s18 + $0x340] sm:$0xff]  }
  0x58   : > { %4870 = vmatpush3.bf16.msra.mxu0 %v5375_v30  ;;  %v5425_v30 = vld [vmem:[%s5712_s18 + $0x388] sm:$0xff]  }
  0x59   : > { %4871 = vmatprep.subr.bf16.mxu0 %v5378_v33  ;;  %v5428_v33 = vld [vmem:[%s5712_s18 + $0x3c0] sm:$0xff]  }
  0x5a   : > { %4892 = vmatpush3.bf16.msra.mxu1 %v5377_v32  ;;  %v5427_v32 = vld [vmem:[%s5712_s18 + $0x300] sm:$0xff]  }
  0x5b   : > { %4893 = vmatprep.subr.bf16.mxu1 %v5380_v36  ;;  %v1014_v36 = vrot.slane %v5839_v61, %v5752_v34  ;;  %v5454_v61 = vld [vmem:[%s5712_s18 + $0x490] sm:$0xff]  }
  0x5c   : > { %4872 = vmatpush3.bf16.msra.mxu0 %v5379_v35  ;;  %v5430_v35 = vld [vmem:[%s5712_s18 + $0x380] sm:$0xff]  }
  0x5d   : > { %4873 = vmatprep.subr.bf16.mxu0 %v5382_v38  ;;  %v5432_v38 = vld [vmem:[%s5712_s18 + $0x438] sm:$0xff]  }
  0x5e   : > { %4894 = vmatpush3.bf16.msra.mxu1 %v5381_v37  ;;  %v5431_v37 = vld [vmem:[%s5712_s18 + $0x478] sm:$0xff]  }
  0x5f   : > { %4895 = vmatprep.subr.bf16.mxu1 %v5384_v40  ;;  %v5434_v40 = vld [vmem:[%s5712_s18 + $0x4b8] sm:$0xff]  }
  0x60   : > { %4874 = vmatpush3.bf16.msra.mxu0 %v5383_v39  ;;  %v5433_v39 = vld [vmem:[%s5712_s18 + $0x4f8] sm:$0xff]  }
  0x61   : > { %4875 = vmatprep.subr.bf16.mxu0 %v5386_v42  ;;  %v5435_v42 = vld [vmem:[%s5712_s18 + $0x470] sm:$0xff]  }
  0x62   : > { %4896 = vmatpush3.bf16.msra.mxu1 %v5385_v41  ;;  %v1030_v41 = vcombine.high %v1014_v36, %v1014_v36 }
  0x63   : > { %4897 = vmatprep.subr.bf16.mxu1 %v5388_v44  ;;  %v5437_v44 = vld [vmem:[%s5712_s18 + $0x4f0] sm:$0xff]  }
  0x64   : > { %4876 = vmatpush3.bf16.msra.mxu0 %v5387_v43  ;;  %v5436_v43 = vld [vmem:[%s5712_s18 + $0x430] sm:$0xff]  }
  0x65   : > { %4877 = vmatprep.subr.bf16.mxu0 %v5390_v46  ;;  %v5439_v46 = vld [vmem:[%s5712_s18 + $0x468] sm:$0xff]  }
  0x66   : > { %4898 = vmatpush3.bf16.msra.mxu1 %v5389_v45  ;;  %v5438_v45 = vld [vmem:[%s5712_s18 + $0x4b0] sm:$0xff]  }
  0x67   : > { %4899 = vmatprep.subr.bf16.mxu1 %v5392_v48  ;;  %v5441_v48 = vld [vmem:[%s5712_s18 + $0x4e8] sm:$0xff]  }
  0x68   : > { %4878 = vmatpush3.bf16.msra.mxu0 %v5391_v47  ;;  %v5440_v47 = vld [vmem:[%s5712_s18 + $0x428] sm:$0xff]  }
  0x69   : > { %4879 = vmatprep.subr.bf16.mxu0 %v5394_v50  ;;  %v5443_v50 = vld [vmem:[%s5712_s18 + $0x460] sm:$0xff]  }
  0x6a   : > { %4900 = vmatpush3.bf16.msra.mxu1 %v5393_v49  ;;  %v5442_v49 = vld [vmem:[%s5712_s18 + $0x4a8] sm:$0xff]  }
  0x6b   : > { %4901 = vmatprep.subr.bf16.mxu1 %v5396_v52  ;;  %v5445_v52 = vld [vmem:[%s5712_s18 + $0x4e0] sm:$0xff]  }
  0x6c   : > { %4880 = vmatpush3.bf16.msra.mxu0 %v5395_v51  ;;  %v5444_v51 = vld [vmem:[%s5712_s18 + $0x420] sm:$0xff]  }
  0x6d   : > { %4909 = vmatprep.subr.bf16.mxu0 %v5398_v57  ;;  %v5450_v57 = vld [vmem:[%s5712_s18 + $0x498] sm:$0xff]  }
  0x6e   : > { %4902 = vmatpush3.bf16.msra.mxu1 %v5397_v55  ;;  %v5448_v55 = vld [vmem:[%s5712_s18 + $0x418] sm:$0xff]  }
  0x6f   : > { %3617 = vmatmul.mubr.bf16.vlgmr.msra.gmra.mxu0 %v1007_v59  ;;  %4931 = vmatprep.subr.bf16.mxu1 %v5400_v62  ;;  %v5452_v59 = vld [vmem:[%s5712_s18 + $0x410] sm:$0xff]   ;;  %v5455_v62 = vld [vmem:[%s5712_s18 + $0x448] sm:$0xff]  }
  0x70   : > { %4910 = vmatpush3.bf16.msra.mxu0 %v5399_v60  ;;  %3696 = vmatprep.mubr.bf16.mxu0 %v1028_v6  ;;  %v5453_v60 = vld [vmem:[%s5712_s18 + $0x4d0] sm:$0xff]  }
  0x71   : > { %3657 = vmatmul.mubr.bf16.vlgmr.msra.gmra.mxu1 %v1029_v2  ;;  %4911 = vmatprep.subr.bf16.mxu0 %v5402_v3  ;;  %v5459_v2 = vld [vmem:[%s5712_s18 + $0x440] sm:$0xff]  }
  0x72   : > { %4932 = vmatpush3.bf16.msra.mxu1 %v5401_v0  ;;  %3736 = vmatprep.mubr.bf16.mxu1 %v1032_v9  ;;  %v5457_v0 = vld [vmem:[%s5712_s18 + $0x4c8] sm:$0xff]   ;;  %v5460_v3 = vld [vmem:[%s5712_s18 + $0x400] sm:$0xff]   ;;  %v5463_v9 = vld [vmem:[%s5712_s18 + $0x578] sm:$0xff]  }
  0x73   : > { %4933 = vmatprep.subr.bf16.mxu1 %v5404_v7  ;;  %v5462_v7 = vld [vmem:[%s5712_s18 + $0x480] sm:$0xff]  }
  0x74   : > { %4912 = vmatpush3.bf16.msra.mxu0 %v5403_v5  ;;  %v193_v5 = vld [vmem:[%s5749_s22 + $0x10] sm:$0xff] }
  0x75   : > { %4913 = vmatprep.subr.bf16.mxu0 %v5406_v10  ;;  %v1040_v6 = vrot.slane %v193_v5, %v5752_v34 }
  0x76   : > { %4934 = vmatpush3.bf16.msra.mxu1 %v5405_v8  ;;  %v1033_v8 = vcombine.high %v193_v5, %v193_v5  ;;  %v5511_v5 = vld [vmem:[%s5712_s18 + $0x6a0] sm:$0xff]  }
  0x77   : > { %4935 = vmatprep.subr.bf16.mxu1 %v5408_v12  ;;  %v1048_v10 = vcombine.high %v1040_v6, %v1040_v6  ;;  %v5464_v12 = vld [vmem:[%s5712_s18 + $0x538] sm:$0xff]  }
  0x78   : > { %4914 = vmatpush3.bf16.msra.mxu0 %v5407_v11  ;;  %v1056_v11 = vrot.slane %v1040_v6, %v5752_v34  ;;  %v5512_v6 = vld [vmem:[%s5712_s18 + $0x658] sm:$0xff]  }
  0x79   : > { %4915 = vmatprep.subr.bf16.mxu0 %v5410_v14  ;;  %v5465_v14 = vld [vmem:[%s5712_s18 + $0x5f8] sm:$0xff]  }
  0x7a   : > { %4936 = vmatpush3.bf16.msra.mxu1 %v5409_v13  ;;  %v5918_v13 = vrot.slane %v1033_v8, %v5752_v34  ;;  %v5514_v8 = vld [vmem:[%s5712_s18 + $0x6d8] sm:$0xff]  }
  0x7b   : > { %4937 = vmatprep.subr.bf16.mxu1 %v5412_v16  ;;  %v5466_v16 = vld [vmem:[%s5712_s18 + $0x5b8] sm:$0xff]  }
  0x7c   : > { %4916 = vmatpush3.bf16.msra.mxu0 %v5411_v15  ;;  %v1070_v15 = vrot.slane %v1048_v10, %v5752_v34  ;;  %v5516_v10 = vld [vmem:[%s5712_s18 + $0x650] sm:$0xff]  }
  0x7d   : > { %4917 = vmatprep.subr.bf16.mxu0 %v5414_v18  ;;  %v1078_v18 = vcombine.high %v1056_v11, %v1056_v11 }
  0x7e   : > { %4938 = vmatpush3.bf16.msra.mxu1 %v5413_v17  ;;  %v1049_v17 = vcombine.high %v5918_v13, %v5918_v13 }
  0x7f   : > { %4939 = vmatprep.subr.bf16.mxu1 %v5416_v20  ;;  %v1080_v20 = vcombine.high %v1070_v15, %v1070_v15 }
  0x80   : > { %4918 = vmatpush3.bf16.msra.mxu0 %v5415_v19  ;;  %v5467_v19 = vld [vmem:[%s5712_s18 + $0x570] sm:$0xff]  }
  0x81   : > { %4919 = vmatprep.subr.bf16.mxu0 %v5418_v22  ;;  %v1077_v22 = vrot.slane %v1049_v17, %v5752_v34  ;;  %v5523_v17 = vld [vmem:[%s5712_s18 + $0x688] sm:$0xff]  }
  0x82   : > { %4940 = vmatpush3.bf16.msra.mxu1 %v5417_v21  ;;  %v5468_v21 = vld [vmem:[%s5712_s18 + $0x530] sm:$0xff]  }
  0x83   : > { %4941 = vmatprep.subr.bf16.mxu1 %v5420_v24  ;;  %v5470_v24 = vld [vmem:[%s5712_s18 + $0x5b0] sm:$0xff]  }
  0x84   : > { %4920 = vmatpush3.bf16.msra.mxu0 %v5419_v23  ;;  %v5469_v23 = vld [vmem:[%s5712_s18 + $0x5f0] sm:$0xff]  }
  0x85   : > { %4921 = vmatprep.subr.bf16.mxu0 %v5422_v26  ;;  %v5471_v26 = vld [vmem:[%s5712_s18 + $0x568] sm:$0xff]  }
  0x86   : > { %4942 = vmatpush3.bf16.msra.mxu1 %v5421_v25  ;;  %v1081_v25 = vcombine.high %v1077_v22, %v1077_v22 }
  0x87   : > { %4943 = vmatprep.subr.bf16.mxu1 %v5424_v29  ;;  %v5473_v29 = vld [vmem:[%s5712_s18 + $0x5e8] sm:$0xff]  }
  0x88   : > { %4922 = vmatpush3.bf16.msra.mxu0 %v5423_v28  ;;  %v5472_v28 = vld [vmem:[%s5712_s18 + $0x528] sm:$0xff]  }
  0x89   : > { %4923 = vmatprep.subr.bf16.mxu0 %v5426_v31  ;;  %v5475_v31 = vld [vmem:[%s5712_s18 + $0x560] sm:$0xff]  }
  0x8a   : > { %4944 = vmatpush3.bf16.msra.mxu1 %v5425_v30  ;;  %v5474_v30 = vld [vmem:[%s5712_s18 + $0x5a8] sm:$0xff]  }
  0x8b   : > { %4945 = vmatprep.subr.bf16.mxu1 %v5428_v33  ;;  %v5477_v33 = vld [vmem:[%s5712_s18 + $0x5e0] sm:$0xff]  }
  0x8c   : > { %4924 = vmatpush3.bf16.msra.mxu0 %v5427_v32  ;;  %v5476_v32 = vld [vmem:[%s5712_s18 + $0x520] sm:$0xff]  }
  0x8d   : > { %4953 = vmatprep.subr.bf16.mxu0 %v5431_v37  ;;  %v5480_v37 = vld [vmem:[%s5712_s18 + $0x518] sm:$0xff]  }
  0x8e   : > { %4946 = vmatpush3.bf16.msra.mxu1 %v5430_v35  ;;  %v5478_v35 = vld [vmem:[%s5712_s18 + $0x5a0] sm:$0xff]  }
  0x8f   : > { %3697 = vmatmul.mubr.bf16.vlgmr.msra.gmra.mxu0 %v1014_v36  ;;  %4975 = vmatprep.subr.bf16.mxu1 %v5433_v39  ;;  %v5479_v36 = vld [vmem:[%s5712_s18 + $0x558] sm:$0xff]  }
  0x90   : > { %4954 = vmatpush3.bf16.msra.mxu0 %v5432_v38  ;;  %3776 = vmatprep.mubr.bf16.mxu0 %v1070_v15  ;;  %v5481_v38 = vld [vmem:[%s5712_s18 + $0x5d8] sm:$0xff]   ;;  %v5521_v15 = vld [vmem:[%s5712_s18 + $0x608] sm:$0xff]  }
  0x91   : > { %3737 = vmatmul.mubr.bf16.vlgmr.msra.gmra.mxu1 %v1030_v41  ;;  %4955 = vmatprep.subr.bf16.mxu0 %v5435_v42  ;;  %v5482_v39 = vld [vmem:[%s5712_s18 + $0x598] sm:$0xff]   ;;  %v5484_v41 = vld [vmem:[%s5712_s18 + $0x510] sm:$0xff]  }
  0x92   : > { %4976 = vmatpush3.bf16.msra.mxu1 %v5434_v40  ;;  %3816 = vmatprep.mubr.bf16.mxu1 %v1080_v20  ;;  %v5483_v40 = vld [vmem:[%s5712_s18 + $0x550] sm:$0xff]   ;;  %v5526_v20 = vld [vmem:[%s5712_s18 + $0x6c0] sm:$0xff]  }
  0x93   : > { %4977 = vmatprep.subr.bf16.mxu1 %v5437_v44  ;;  %v5485_v42 = vld [vmem:[%s5712_s18 + $0x5d0] sm:$0xff]   ;;  %v5487_v44 = vld [vmem:[%s5712_s18 + $0x548] sm:$0xff]  }
  0x94   : > { %4956 = vmatpush3.bf16.msra.mxu0 %v5436_v43  ;;  %v5486_v43 = vld [vmem:[%s5712_s18 + $0x590] sm:$0xff]  }
  0x95   : > { %4957 = vmatprep.subr.bf16.mxu0 %v5439_v46  ;;  %v5489_v46 = vld [vmem:[%s5712_s18 + $0x5c8] sm:$0xff]  }
  0x96   : > { %4978 = vmatpush3.bf16.msra.mxu1 %v5438_v45  ;;  %v5488_v45 = vld [vmem:[%s5712_s18 + $0x508] sm:$0xff]  }
  0x97   : > { %4979 = vmatprep.subr.bf16.mxu1 %v5441_v48  ;;  %v5491_v48 = vld [vmem:[%s5712_s18 + $0x540] sm:$0xff]  }
  0x98   : > { %4958 = vmatpush3.bf16.msra.mxu0 %v5440_v47  ;;  %v5490_v47 = vld [vmem:[%s5712_s18 + $0x588] sm:$0xff]  }
  0x99   : > { %4959 = vmatprep.subr.bf16.mxu0 %v5443_v50  ;;  %v5493_v50 = vld [vmem:[%s5712_s18 + $0x5c0] sm:$0xff]  }
  0x9a   : > { %4980 = vmatpush3.bf16.msra.mxu1 %v5442_v49  ;;  %v5492_v49 = vld [vmem:[%s5712_s18 + $0x500] sm:$0xff]  }
  0x9b   : > { %4981 = vmatprep.subr.bf16.mxu1 %v5445_v52  ;;  %v1063_v52 = vrot.slane %v5918_v13, %v5752_v34  ;;  %v5519_v13 = vld [vmem:[%s5712_s18 + $0x690] sm:$0xff]  }
  0x9c   : > { %4960 = vmatpush3.bf16.msra.mxu0 %v5444_v51  ;;  %v5495_v51 = vld [vmem:[%s5712_s18 + $0x580] sm:$0xff]  }
  0x9d   : > { %4961 = vmatprep.subr.bf16.mxu0 %v5447_v54  ;;  %v5497_v54 = vld [vmem:[%s5712_s18 + $0x638] sm:$0xff]  }
  0x9e   : > { %4982 = vmatpush3.bf16.msra.mxu1 %v5446_v53  ;;  %v5496_v53 = vld [vmem:[%s5712_s18 + $0x678] sm:$0xff]  }
  0x9f   : > { %4983 = vmatprep.subr.bf16.mxu1 %v5449_v56  ;;  %v5499_v56 = vld [vmem:[%s5712_s18 + $0x6b8] sm:$0xff]  }
  0xa0   : > { %4962 = vmatpush3.bf16.msra.mxu0 %v5448_v55  ;;  %v5498_v55 = vld [vmem:[%s5712_s18 + $0x6f8] sm:$0xff]  }
  0xa1   : > { %4963 = vmatprep.subr.bf16.mxu0 %v5451_v58  ;;  %v5500_v58 = vld [vmem:[%s5712_s18 + $0x670] sm:$0xff]  }
  0xa2   : > { %4984 = vmatpush3.bf16.msra.mxu1 %v5450_v57  ;;  %v1079_v57 = vcombine.high %v1063_v52, %v1063_v52 }
  0xa3   : > { %4985 = vmatprep.subr.bf16.mxu1 %v5453_v60  ;;  %v5502_v60 = vld [vmem:[%s5712_s18 + $0x6f0] sm:$0xff]  }
  0xa4   : > { %4964 = vmatpush3.bf16.msra.mxu0 %v5452_v59  ;;  %v5501_v59 = vld [vmem:[%s5712_s18 + $0x630] sm:$0xff]  }
  0xa5   : > { %4965 = vmatprep.subr.bf16.mxu0 %v5455_v62  ;;  %v5504_v62 = vld [vmem:[%s5712_s18 + $0x668] sm:$0xff]  }
  0xa6   : > { %4986 = vmatpush3.bf16.msra.mxu1 %v5454_v61  ;;  %v5503_v61 = vld [vmem:[%s5712_s18 + $0x6b0] sm:$0xff]  }
  0xa7   : > { %4987 = vmatprep.subr.bf16.mxu1 %v5457_v0  ;;  %v5506_v0 = vld [vmem:[%s5712_s18 + $0x6e8] sm:$0xff]  }
  0xa8   : > { %4966 = vmatpush3.bf16.msra.mxu0 %v5456_v63  ;;  %v5505_v63 = vld [vmem:[%s5712_s18 + $0x628] sm:$0xff]  }
  0xa9   : > { %4967 = vmatprep.subr.bf16.mxu0 %v5459_v2  ;;  %v5508_v2 = vld [vmem:[%s5712_s18 + $0x660] sm:$0xff]  }
  0xaa   : > { %4988 = vmatpush3.bf16.msra.mxu1 %v5458_v1  ;;  %v5507_v1 = vld [vmem:[%s5712_s18 + $0x6a8] sm:$0xff]  }
  0xab   : > { %4989 = vmatprep.subr.bf16.mxu1 %v5461_v4  ;;  %v5510_v4 = vld [vmem:[%s5712_s18 + $0x6e0] sm:$0xff]  }
  0xac   : > { %4968 = vmatpush3.bf16.msra.mxu0 %v5460_v3  ;;  %v5509_v3 = vld [vmem:[%s5712_s18 + $0x620] sm:$0xff]  }
  0xad   : > { %4997 = vmatprep.subr.bf16.mxu0 %v5463_v9  ;;  %v5515_v9 = vld [vmem:[%s5712_s18 + $0x698] sm:$0xff]  }
  0xae   : > { %4990 = vmatpush3.bf16.msra.mxu1 %v5462_v7  ;;  %v5513_v7 = vld [vmem:[%s5712_s18 + $0x618] sm:$0xff]  }
  0xaf   : > { %3777 = vmatmul.mubr.bf16.vlgmr.msra.gmra.mxu0 %v1056_v11  ;;  %5019 = vmatprep.subr.bf16.mxu1 %v5465_v14  ;;  %v5517_v11 = vld [vmem:[%s5712_s18 + $0x610] sm:$0xff]   ;;  %v5520_v14 = vld [vmem:[%s5712_s18 + $0x648] sm:$0xff]  }
  0xb0   : > { %4998 = vmatpush3.bf16.msra.mxu0 %v5464_v12  ;;  %3856 = vmatprep.mubr.bf16.mxu0 %v1077_v22  ;;  %v5518_v12 = vld [vmem:[%s5712_s18 + $0x6d0] sm:$0xff]  }
  0xb1   : > { %3817 = vmatmul.mubr.bf16.vlgmr.msra.gmra.mxu1 %v1078_v18  ;;  %4999 = vmatprep.subr.bf16.mxu0 %v5467_v19  ;;  %v5524_v18 = vld [vmem:[%s5712_s18 + $0x640] sm:$0xff]  }
  0xb2   : > { %5020 = vmatpush3.bf16.msra.mxu1 %v5466_v16  ;;  %3896 = vmatprep.mubr.bf16.mxu1 %v1081_v25  ;;  %v5522_v16 = vld [vmem:[%s5712_s18 + $0x6c8] sm:$0xff]   ;;  %v5525_v19 = vld [vmem:[%s5712_s18 + $0x600] sm:$0xff]  }
  0xb3   : > { %5021 = vmatprep.subr.bf16.mxu1 %v5469_v23  ;;  %v5527_v23 = vld [vmem:[%s5712_s18 + $0x680] sm:$0xff]  }
  0xb4   : > { %5000 = vmatpush3.bf16.msra.mxu0 %v5468_v21  ;;  %v194_v21 = vld [vmem:[%s5749_s22 + $0x18] sm:$0xff] }
  0xb5   : > { %5001 = vmatprep.subr.bf16.mxu0 %v5471_v26  ;;  %v1089_v22 = vrot.slane %v194_v21, %v5752_v34  ;;  %v1082_v25 = vcombine.high %v194_v21, %v194_v21  ;;  %v5528_v26 = vld [vmem:[%s5712_s18 + $0x778] sm:$0xff]  }
  0xb6   : > { %5022 = vmatpush3.bf16.msra.mxu1 %v5470_v24  ;;  %v921_v24 = vstv %s920_s24  ;;  %v5561_v21 = vld [vmem:[%s5712_s18 + $0x878] sm:$0xff]  }
  0xb7   : > { %5023 = vmatprep.subr.bf16.mxu1 %v5473_v29  ;;  %v1105_v29 = vrot.slane %v1089_v22, %v5752_v34 }
  0xb8   : > { %5002 = vmatpush3.bf16.msra.mxu0 %v5472_v28  ;;  %v1097_v28 = vcombine.high %v1089_v22, %v1089_v22  ;;  %v5562_v22 = vld [vmem:[%s5712_s18 + $0x838] sm:$0xff]  }
  0xb9   : > { %5003 = vmatprep.subr.bf16.mxu0 %v5475_v31  ;;  %v917_v31 = vld [vmem:[%s6181_s2] sm:$0x1] }
  0xba   : > { %5024 = vmatpush3.bf16.msra.mxu1 %v5474_v30  ;;  %v5529_v30 = vld [vmem:[%s5712_s18 + $0x738] sm:$0xff]  }
  0xbb   : > { %5025 = vmatprep.subr.bf16.mxu1 %v5477_v33  ;;  %v922_v33 = vmul.f32 %v921_v24, %v917_v31  ;;  %v5564_v24 = vld [vmem:[%s5712_s18 + $0x8b8] sm:$0xff]  }
  0xbc   : > { %5004 = vmatpush3.bf16.msra.mxu0 %v5476_v32  ;;  %v5998_v32 = vrot.slane %v1082_v25, %v5752_v34 }
  0xbd   : > { %5005 = vmatprep.subr.bf16.mxu0 %v5479_v36  ;;  %v5530_v36 = vld [vmem:[%s5712_s18 + $0x7f8] sm:$0xff]  }
  0xbe   : > { %5026 = vmatpush3.bf16.msra.mxu1 %v5478_v35  ;;  %v926_v35 = vsub.s32 0, %v5739_v27 }
  0xbf   : > { %5027 = vmatprep.subr.bf16.mxu1 %v5481_v38  ;;  %v5531_v38 = vld [vmem:[%s5712_s18 + $0x7b8] sm:$0xff]  }
  0xc0   : > { %5006 = vmatpush3.bf16.msra.mxu0 %v5480_v37  ;;  %v1119_v37 = vrot.slane %v1097_v28, %v5752_v34 }
  0xc1   : > { %5007 = vmatprep.subr.bf16.mxu0 %v5483_v40  ;;  %v1127_v40 = vcombine.high %v1105_v29, %v1105_v29 }
  0xc2   : > { %5028 = vmatpush3.bf16.msra.mxu1 %v5482_v39  ;;  %v1098_v39 = vcombine.high %v5998_v32, %v5998_v32 }
  0xc3   : > { %5029 = vmatprep.subr.bf16.mxu1 %v5485_v42 }
  0xc4   : > { %5008 = vmatpush3.bf16.msra.mxu0 %v5484_v41  ;;  %v5532_v41 = vld [vmem:[%s5712_s18 + $0x770] sm:$0xff]   ;;  %v1126_v27 = vrot.slane %v1098_v39, %v5752_v34  ;;  %v5570_v39 = vld [vmem:[%s5712_s18 + $0x828] sm:$0xff]  }
  0xc5   : > { %5009 = vmatprep.subr.bf16.mxu0 %v5487_v44  ;;  %v5533_v44 = vld [vmem:[%s5712_s18 + $0x730] sm:$0xff]  }
  0xc6   : > { %5030 = vmatpush3.bf16.msra.mxu1 %v5486_v43  ;;  %v1129_v43 = vcombine.high %v1119_v37, %v1119_v37 }
  0xc7   : > { %5031 = vmatprep.subr.bf16.mxu1 %v5489_v46  ;;  %v5534_v46 = vld [vmem:[%s5712_s18 + $0x7f0] sm:$0xff]  }
  0xc8   : > { %5010 = vmatpush3.bf16.msra.mxu0 %v5488_v45  ;;  %v927_v45 = vrot.slane %v922_v33, %v926_v35  ;;  %v5568_v33 = vld [vmem:[%s5712_s18 + $0x8b0] sm:$0xff]  }
  0xc9   : > { %5011 = vmatprep.subr.bf16.mxu0 %v5491_v48 }
  0xca   : > { %5032 = vmatpush3.bf16.msra.mxu1 %v5490_v47 }
  0xcb   : > { %5033 = vmatprep.subr.bf16.mxu1 %v5493_v50  ;;  %v1130_v50 = vcombine.high %v1126_v27, %v1126_v27 }
  0xcc   : > { %5012 = vmatpush3.bf16.msra.mxu0 %v5492_v49  ;;  %v5535_v49 = vld [vmem:[%s5712_s18 + $0x7b0] sm:$0xff]  }
  0xcd   : > { %5041 = vmatprep.subr.bf16.mxu0 %v5496_v53 }
  0xce   : > { %5034 = vmatpush3.bf16.msra.mxu1 %v5495_v51 }
  0xcf   : > { %3857 = vmatmul.mubr.bf16.vlgmr.msra.gmra.mxu0 %v1063_v52  ;;  %5063 = vmatprep.subr.bf16.mxu1 %v5498_v55  ;;  %v5536_v52 = vld [vmem:[%s5712_s18 + $0x768] sm:$0xff]  }
  0xd0   : > { %5042 = vmatpush3.bf16.msra.mxu0 %v5497_v54  ;;  %3936 = vmatprep.mubr.bf16.mxu0 %v1119_v37  ;;  %v5537_v55 = vld [vmem:[%s5712_s18 + $0x728] sm:$0xff]  }
  0xd1   : > { %3897 = vmatmul.mubr.bf16.vlgmr.msra.gmra.mxu1 %v1079_v57  ;;  %5043 = vmatprep.subr.bf16.mxu0 %v5500_v58  ;;  %v5538_v58 = vld [vmem:[%s5712_s18 + $0x7e8] sm:$0xff]  }
  0xd2   : > { %5064 = vmatpush3.bf16.msra.mxu1 %v5499_v56  ;;  %3976 = vmatprep.mubr.bf16.mxu1 %v1129_v43 }
  0xd3   : > { %5065 = vmatprep.subr.bf16.mxu1 %v5502_v60  ;;  %v5539_v60 = vld [vmem:[%s5712_s18 + $0x7a8] sm:$0xff]  }
  0xd4   : > { %5044 = vmatpush3.bf16.msra.mxu0 %v5501_v59 }
  0xd5   : > { %5045 = vmatprep.subr.bf16.mxu0 %v5504_v62 }
  0xd6   : > { %5066 = vmatpush3.bf16.msra.mxu1 %v5503_v61 }
  0xd7   : > { %5067 = vmatprep.subr.bf16.mxu1 %v5506_v0  ;;  %v5541_v0 = vld [vmem:[%s5712_s18 + $0x720] sm:$0xff]  }
  0xd8   : > { %5046 = vmatpush3.bf16.msra.mxu0 %v5505_v63  ;;  %v5540_v63 = vld [vmem:[%s5712_s18 + $0x760] sm:$0xff]  }
  0xd9   : > { %5047 = vmatprep.subr.bf16.mxu0 %v5508_v2  ;;  %v5542_v2 = vld [vmem:[%s5712_s18 + $0x7e0] sm:$0xff]  }
  0xda   : > { %5068 = vmatpush3.bf16.msra.mxu1 %v5507_v1 }
  0xdb   : > { %5069 = vmatprep.subr.bf16.mxu1 %v5510_v4  ;;  %v5544_v4 = vld [vmem:[%s5712_s18 + $0x758] sm:$0xff]  }
  0xdc   : > { %5048 = vmatpush3.bf16.msra.mxu0 %v5509_v3  ;;  %v5543_v3 = vld [vmem:[%s5712_s18 + $0x7a0] sm:$0xff]  }
  0xdd   : > { %5049 = vmatprep.subr.bf16.mxu0 %v5512_v6  ;;  %v5546_v6 = vld [vmem:[%s5712_s18 + $0x7d8] sm:$0xff]  }
  0xde   : > { %5070 = vmatpush3.bf16.msra.mxu1 %v5511_v5  ;;  %v5545_v5 = vld [vmem:[%s5712_s18 + $0x718] sm:$0xff]  }
  0xdf   : > { %5071 = vmatprep.subr.bf16.mxu1 %v5514_v8  ;;  %v5548_v8 = vld [vmem:[%s5712_s18 + $0x750] sm:$0xff]  }
  0xe0   : > { %5050 = vmatpush3.bf16.msra.mxu0 %v5513_v7  ;;  %v5547_v7 = vld [vmem:[%s5712_s18 + $0x798] sm:$0xff]  }
  0xe1   : > { %5051 = vmatprep.subr.bf16.mxu0 %v5516_v10  ;;  %v5550_v10 = vld [vmem:[%s5712_s18 + $0x7d0] sm:$0xff]  }
  0xe2   : > { %5072 = vmatpush3.bf16.msra.mxu1 %v5515_v9  ;;  %v5549_v9 = vld [vmem:[%s5712_s18 + $0x710] sm:$0xff]  }
  0xe3   : > { %5073 = vmatprep.subr.bf16.mxu1 %v5518_v12  ;;  %v5552_v12 = vld [vmem:[%s5712_s18 + $0x748] sm:$0xff]  }
  0xe4   : > { %5052 = vmatpush3.bf16.msra.mxu0 %v5517_v11  ;;  %v5551_v11 = vld [vmem:[%s5712_s18 + $0x790] sm:$0xff]  }
  0xe5   : > { %5053 = vmatprep.subr.bf16.mxu0 %v5520_v14  ;;  %v5554_v14 = vld [vmem:[%s5712_s18 + $0x7c8] sm:$0xff]  }
  0xe6   : > { %5074 = vmatpush3.bf16.msra.mxu1 %v5519_v13  ;;  %v5553_v13 = vld [vmem:[%s5712_s18 + $0x708] sm:$0xff]  }
  0xe7   : > { %5075 = vmatprep.subr.bf16.mxu1 %v5522_v16  ;;  %v5556_v16 = vld [vmem:[%s5712_s18 + $0x740] sm:$0xff]  }
  0xe8   : > { %5054 = vmatpush3.bf16.msra.mxu0 %v5521_v15  ;;  %v5555_v15 = vld [vmem:[%s5712_s18 + $0x788] sm:$0xff]  }
  0xe9   : > { %5055 = vmatprep.subr.bf16.mxu0 %v5524_v18  ;;  %v5558_v18 = vld [vmem:[%s5712_s18 + $0x7c0] sm:$0xff]  }
  0xea   : > { %5076 = vmatpush3.bf16.msra.mxu1 %v5523_v17  ;;  %v5557_v17 = vld [vmem:[%s5712_s18 + $0x700] sm:$0xff]  }
  0xeb   : > { %5077 = vmatprep.subr.bf16.mxu1 %v5526_v20  ;;  %v1112_v20 = vrot.slane %v5998_v32, %v5752_v34 }
  0xec   : > { %5056 = vmatpush3.bf16.msra.mxu0 %v5525_v19  ;;  %v5560_v19 = vld [vmem:[%s5712_s18 + $0x780] sm:$0xff]  }
  0xed   : > { %5085 = vmatprep.subr.bf16.mxu0 %v5528_v26  ;;  %v1128_v25 = vcombine.high %v1112_v20, %v1112_v20  ;;  %v5565_v26 = vld [vmem:[%s5712_s18 + $0x870] sm:$0xff]  }
  0xee   : > { %5078 = vmatpush3.bf16.msra.mxu1 %v5527_v23  ;;  %v5563_v23 = vld [vmem:[%s5712_s18 + $0x8f8] sm:$0xff]  }
  0xef   : > { %v4793_v42 = vpop.f32.mrf.mxu0  ;;  %5107 = vmatprep.subr.bf16.mxu1 %v5530_v36  ;;  %3937 = vmatmul.mubr.bf16.vlgmr.msra.gmra.mxu0 %v1105_v29  ;;  %v5566_v29 = vld [vmem:[%s5712_s18 + $0x830] sm:$0xff]   ;;  %v5569_v36 = vld [vmem:[%s5712_s18 + $0x868] sm:$0xff]  }
  0xf0   : > { %5086 = vmatpush3.bf16.msra.mxu0 %v5529_v30  ;;  %4016 = vmatprep.mubr.bf16.mxu0 %v1126_v27  ;;  %v5567_v30 = vld [vmem:[%s5712_s18 + $0x8f0] sm:$0xff]  }
  0xf1   : > { %v4794_v47 = vpop.f32.mrf.mxu0  ;;  %v4815_v48 = vpop.f32.mrf.mxu1  ;;  %3977 = vmatmul.mubr.bf16.vlgmr.msra.gmra.mxu1 %v1127_v40  ;;  %5087 = vmatprep.subr.bf16.mxu0 %v5532_v41 }
  0xf2   : > { %v4795_v51 = vadd.f32 %v4794_v47, %v4793_v42  ;;  %5108 = vmatpush3.bf16.msra.mxu1 %v5531_v38  ;;  %4056 = vmatprep.mubr.bf16.mxu1 %v1130_v50  ;;  %v5571_v42 = vld [vmem:[%s5712_s18 + $0x8e8] sm:$0xff]   ;;  %v5574_v47 = vld [vmem:[%s5712_s18 + $0x820] sm:$0xff]  }
  0xf3   : > { %v4796_v53 = vpop.f32.mrf.mxu0  ;;  %v4816_v54 = vpop.f32.mrf.mxu1  ;;  %5109 = vmatprep.subr.bf16.mxu1 %v5534_v46  ;;  %v5573_v46 = vld [vmem:[%s5712_s18 + $0x860] sm:$0xff]  }
  0xf4   : > { %v3459_v56 = vadd.f32 %v4795_v51, %v927_v45  ;;  %v4817_v57 = vadd.f32 %v4816_v54, %v4815_v48  ;;  %5088 = vmatpush3.bf16.msra.mxu0 %v5533_v44  ;;  %v5572_v44 = vld [vmem:[%s5712_s18 + $0x8a8] sm:$0xff]   ;;  %v5576_v50 = vld [vmem:[%s5712_s18 + $0x8a0] sm:$0xff]   ;;  %v5577_v51 = vld [vmem:[%s5712_s18 + $0x858] sm:$0xff]  }
  0xf5   : > { %v4797_v59 = vpop.f32.mrf.mxu0  ;;  %v4818_v61 = vpop.f32.mrf.mxu1  ;;  %5089 = vmatprep.subr.bf16.mxu0 %v5536_v52  ;;  %v5578_v52 = vld [vmem:[%s5712_s18 + $0x818] sm:$0xff]  }
  0xf6   : > { %v6015_v62 = vadd.f32 %v4817_v57, %v3459_v56  ;;  %5110 = vmatpush3.bf16.msra.mxu1 %v5535_v49  ;;  %v5575_v49 = vld [vmem:[%s5712_s18 + $0x8e0] sm:$0xff]   ;;  %v5579_v53 = vld [vmem:[%s5712_s18 + $0x8d8] sm:$0xff]   ;;  %v5582_v56 = vld [vmem:[%s5712_s18 + $0x810] sm:$0xff]  }
  0xf7   : > { %v4819_v1 = vpop.f32.mrf.mxu1  ;;  %5111 = vmatprep.subr.bf16.mxu1 %v5538_v58  ;;  %v5580_v54 = vld [vmem:[%s5712_s18 + $0x898] sm:$0xff]   ;;  %v5583_v57 = vld [vmem:[%s5712_s18 + $0x8d0] sm:$0xff]   ;;  %v5585_v59 = vld [vmem:[%s5712_s18 + $0x848] sm:$0xff]  }
  0xf8   : > { %5090 = vmatpush3.bf16.msra.mxu0 %v5537_v55  ;;  %v5581_v55 = vld [vmem:[%s5712_s18 + $0x850] sm:$0xff]   ;;  %v5587_v61 = vld [vmem:[%s5712_s18 + $0x8c8] sm:$0xff]   ;;  %v5591_v1 = vld [vmem:[%s5712_s18 + $0x8c0] sm:$0xff]  }
  0xf9   : > { %5091 = vmatprep.subr.bf16.mxu0 %v5540_v63  ;;  %v5584_v58 = vld [vmem:[%s5712_s18 + $0x890] sm:$0xff]   ;;  %v5589_v63 = vld [vmem:[%s5712_s18 + $0x840] sm:$0xff]  }
  0xfa   : > { %5112 = vmatpush3.bf16.msra.mxu1 %v5539_v60  ;;  %v5586_v60 = vld [vmem:[%s5712_s18 + $0x808] sm:$0xff]  }
  0xfb   : > { %5113 = vmatprep.subr.bf16.mxu1 %v5542_v2  ;;  %v195_v2 = vld [vmem:[%s5749_s22 + $0x20] sm:$0xff] }
  0xfc   : > { %5092 = vmatpush3.bf16.msra.mxu0 %v5541_v0  ;;  %v5590_v0 = vld [vmem:[%s5712_s18 + $0x800] sm:$0xff]  }
  0xfd   : > { %5093 = vmatprep.subr.bf16.mxu0 %v5544_v4  ;;  %v5592_v4 = vld [vmem:[%s5712_s18 + $0x880] sm:$0xff]  }
  0xfe   : > { %5114 = vmatpush3.bf16.msra.mxu1 %v5543_v3  ;;  %v1138_v3 = vrot.slane %v195_v2, %v5752_v34 }
  0xff   : > { %5115 = vmatprep.subr.bf16.mxu1 %v5546_v6  ;;  %v5593_v6 = vld [vmem:[%s5712_s18 + $0x978] sm:$0xff]  }
 0x100   : > { %5094 = vmatpush3.bf16.msra.mxu0 %v5545_v5  ;;  %v1131_v5 = vcombine.high %v195_v2, %v195_v2  ;;  %v5630_v2 = vld [vmem:[%s5712_s18 + $0xa70] sm:$0xff]  }
 0x101   : > { %5095 = vmatprep.subr.bf16.mxu0 %v5548_v8  ;;  %v1154_v8 = vrot.slane %v1138_v3, %v5752_v34 }
 0x102   : > { %5116 = vmatpush3.bf16.msra.mxu1 %v5547_v7  ;;  %v1146_v7 = vcombine.high %v1138_v3, %v1138_v3 }
 0x103   : > { %5117 = vmatprep.subr.bf16.mxu1 %v5550_v10  ;;  %v6080_v10 = vrot.slane %v1131_v5, %v5752_v34  ;;  %v5632_v5 = vld [vmem:[%s5712_s18 + $0xaf0] sm:$0xff]  }
 0x104   : > { %5096 = vmatpush3.bf16.msra.mxu0 %v5549_v9  ;;  %v5594_v9 = vld [vmem:[%s5712_s18 + $0x938] sm:$0xff]  }
 0x105   : > { %5097 = vmatprep.subr.bf16.mxu0 %v5552_v12  ;;  %v1168_v12 = vrot.slane %v1146_v7, %v5752_v34 }
 0x106   : > { %5118 = vmatpush3.bf16.msra.mxu1 %v5551_v11  ;;  %v5595_v11 = vld [vmem:[%s5712_s18 + $0x9f8] sm:$0xff]  }
 0x107   : > { %5119 = vmatprep.subr.bf16.mxu1 %v5554_v14  ;;  %v1147_v14 = vcombine.high %v6080_v10, %v6080_v10 }
 0x108   : > { %5098 = vmatpush3.bf16.msra.mxu0 %v5553_v13  ;;  %v5596_v13 = vld [vmem:[%s5712_s18 + $0x9b8] sm:$0xff]  }
 0x109   : > { %5099 = vmatprep.subr.bf16.mxu0 %v5556_v16  ;;  %v5597_v16 = vld [vmem:[%s5712_s18 + $0x970] sm:$0xff]  }
 0x10a   : > { %5120 = vmatpush3.bf16.msra.mxu1 %v5555_v15  ;;  %v1176_v15 = vcombine.high %v1154_v8, %v1154_v8 }
 0x10b   : > { %5121 = vmatprep.subr.bf16.mxu1 %v5558_v18  ;;  %v1178_v18 = vcombine.high %v1168_v12, %v1168_v12 }
 0x10c   : > { %5100 = vmatpush3.bf16.msra.mxu0 %v5557_v17 }
 0x10d   : > { %5129 = vmatprep.subr.bf16.mxu0 %v5561_v21  ;;  %v5599_v21 = vld [vmem:[%s5712_s18 + $0x9f0] sm:$0xff]  }
 0x10e   : > { %5122 = vmatpush3.bf16.msra.mxu1 %v5560_v19  ;;  %v5598_v19 = vld [vmem:[%s5712_s18 + $0x930] sm:$0xff]  }
 0x10f   : > { %v4837_v28 = vpop.f32.mrf.mxu0  ;;  %4017 = vmatmul.mubr.bf16.vlgmr.msra.gmra.mxu0 %v1112_v20  ;;  %5151 = vmatprep.subr.bf16.mxu1 %v5563_v23  ;;  %v1175_v20 = vrot.slane %v1147_v14, %v5752_v34 }
 0x110   : > { %5130 = vmatpush3.bf16.msra.mxu0 %v5562_v22  ;;  %4096 = vmatprep.mubr.bf16.mxu0 %v1168_v12 }
 0x111   : > { %v4838_v31 = vpop.f32.mrf.mxu0  ;;  %v4859_v32 = vpop.f32.mrf.mxu1  ;;  %4057 = vmatmul.mubr.bf16.vlgmr.msra.gmra.mxu1 %v1128_v25  ;;  %5131 = vmatprep.subr.bf16.mxu0 %v5565_v26  ;;  %v1179_v25 = vcombine.high %v1175_v20, %v1175_v20 }
 0x112   : > { %v4839_v35 = vadd.f32 %v4838_v31, %v4837_v28  ;;  %5152 = vmatpush3.bf16.msra.mxu1 %v5564_v24  ;;  %4136 = vmatprep.mubr.bf16.mxu1 %v1178_v18  ;;  %v5600_v24 = vld [vmem:[%s5712_s18 + $0x9b0] sm:$0xff]   ;;  %v5601_v28 = vld [vmem:[%s5712_s18 + $0x968] sm:$0xff]  }
 0x113   : > { %v4840_v37 = vpop.f32.mrf.mxu0  ;;  %v4860_v38 = vpop.f32.mrf.mxu1  ;;  %5153 = vmatprep.subr.bf16.mxu1 %v5567_v30  ;;  %v5602_v31 = vld [vmem:[%s5712_s18 + $0x928] sm:$0xff]  }
 0x114   : > { %v3539_v40 = vadd.f32 %v4839_v35, %v6015_v62  ;;  %v4861_v41 = vadd.f32 %v4860_v38, %v4859_v32  ;;  %5132 = vmatpush3.bf16.msra.mxu0 %v5566_v29  ;;  %v5588_v62 = vld [vmem:[%s5712_s18 + $0x888] sm:$0xff]  }
 0x115   : > { %v4841_v43 = vpop.f32.mrf.mxu0  ;;  %v4862_v27 = vpop.f32.mrf.mxu1  ;;  %5133 = vmatprep.subr.bf16.mxu0 %v5569_v36  ;;  %v5603_v35 = vld [vmem:[%s5712_s18 + $0x9e8] sm:$0xff]  }
 0x116   : > { %v6052_v45 = vadd.f32 %v4861_v41, %v3539_v40  ;;  %5154 = vmatpush3.bf16.msra.mxu1 %v5568_v33  ;;  %v5604_v37 = vld [vmem:[%s5712_s18 + $0x9a8] sm:$0xff]   ;;  %v5605_v40 = vld [vmem:[%s5712_s18 + $0x960] sm:$0xff]   ;;  %v5609_v27 = vld [vmem:[%s5712_s18 + $0x958] sm:$0xff]  }
 0x117   : > { %v4863_v48 = vpop.f32.mrf.mxu1  ;;  %5155 = vmatprep.subr.bf16.mxu1 %v5571_v42  ;;  %v5606_v41 = vld [vmem:[%s5712_s18 + $0x920] sm:$0xff]   ;;  %v5637_v18 = vld [vmem:[%s5712_s18 + $0xaa8] sm:$0xff]  }
 0x118   : > { %5134 = vmatpush3.bf16.msra.mxu0 %v5570_v39  ;;  %v5607_v43 = vld [vmem:[%s5712_s18 + $0x9e0] sm:$0xff]   ;;  %v5613_v48 = vld [vmem:[%s5712_s18 + $0x950] sm:$0xff]  }
 0x119   : > { %5135 = vmatprep.subr.bf16.mxu0 %v5573_v46  ;;  %v5611_v46 = vld [vmem:[%s5712_s18 + $0x9d8] sm:$0xff]  }
 0x11a   : > { %5156 = vmatpush3.bf16.msra.mxu1 %v5572_v44  ;;  %v5608_v44 = vld [vmem:[%s5712_s18 + $0x9a0] sm:$0xff]  }
 0x11b   : > { %5157 = vmatprep.subr.bf16.mxu1 %v5575_v49  ;;  %v5614_v49 = vld [vmem:[%s5712_s18 + $0x910] sm:$0xff]  }
 0x11c   : > { %5136 = vmatpush3.bf16.msra.mxu0 %v5574_v47  ;;  %v5612_v47 = vld [vmem:[%s5712_s18 + $0x998] sm:$0xff]  }
 0x11d   : > { %5137 = vmatprep.subr.bf16.mxu0 %v5577_v51  ;;  %v5616_v51 = vld [vmem:[%s5712_s18 + $0x990] sm:$0xff]  }
 0x11e   : > { %5158 = vmatpush3.bf16.msra.mxu1 %v5576_v50  ;;  %v5615_v50 = vld [vmem:[%s5712_s18 + $0x9d0] sm:$0xff]  }
 0x11f   : > { %5159 = vmatprep.subr.bf16.mxu1 %v5579_v53  ;;  %v5618_v53 = vld [vmem:[%s5712_s18 + $0x908] sm:$0xff]  }
 0x120   : > { %5138 = vmatpush3.bf16.msra.mxu0 %v5578_v52  ;;  %v5617_v52 = vld [vmem:[%s5712_s18 + $0x948] sm:$0xff]  }
 0x121   : > { %5139 = vmatprep.subr.bf16.mxu0 %v5581_v55  ;;  %v5620_v55 = vld [vmem:[%s5712_s18 + $0x988] sm:$0xff]  }
 0x122   : > { %5160 = vmatpush3.bf16.msra.mxu1 %v5580_v54  ;;  %v5619_v54 = vld [vmem:[%s5712_s18 + $0x9c8] sm:$0xff]  }
 0x123   : > { %5161 = vmatprep.subr.bf16.mxu1 %v5583_v57  ;;  %v5622_v57 = vld [vmem:[%s5712_s18 + $0x900] sm:$0xff]  }
 0x124   : > { %5140 = vmatpush3.bf16.msra.mxu0 %v5582_v56  ;;  %v5621_v56 = vld [vmem:[%s5712_s18 + $0x940] sm:$0xff]  }
 0x125   : > { %5141 = vmatprep.subr.bf16.mxu0 %v5585_v59  ;;  %v5625_v59 = vld [vmem:[%s5712_s18 + $0x980] sm:$0xff]  }
 0x126   : > { %5162 = vmatpush3.bf16.msra.mxu1 %v5584_v58  ;;  %v5623_v58 = vld [vmem:[%s5712_s18 + $0x9c0] sm:$0xff]  }
 0x127   : > { %5163 = vmatprep.subr.bf16.mxu1 %v5587_v61  ;;  %v5626_v61 = vld [vmem:[%s5712_s18 + $0xa78] sm:$0xff]  }
 0x128   : > { %5142 = vmatpush3.bf16.msra.mxu0 %v5586_v60  ;;  %v1161_v60 = vrot.slane %v6080_v10, %v5752_v34  ;;  %v5634_v10 = vld [vmem:[%s5712_s18 + $0xa68] sm:$0xff]  }
 0x129   : > { %5143 = vmatprep.subr.bf16.mxu0 %v5589_v63  ;;  %v5628_v63 = vld [vmem:[%s5712_s18 + $0xaf8] sm:$0xff]  }
 0x12a   : > { %5164 = vmatpush3.bf16.msra.mxu1 %v5588_v62  ;;  %v5627_v62 = vld [vmem:[%s5712_s18 + $0xa38] sm:$0xff]  }
 0x12b   : > { %5165 = vmatprep.subr.bf16.mxu1 %v5591_v1  ;;  %v1177_v1 = vcombine.high %v1161_v60, %v1161_v60 }
 0x12c   : > { %5144 = vmatpush3.bf16.msra.mxu0 %v5590_v0  ;;  %v5629_v0 = vld [vmem:[%s5712_s18 + $0xab8] sm:$0xff]  }
 0x12d   : > { %5173 = vmatprep.subr.bf16.mxu0 %v5593_v6 }
 0x12e   : > { %5166 = vmatpush3.bf16.msra.mxu1 %v5592_v4  ;;  %v5631_v4 = vld [vmem:[%s5712_s18 + $0xa30] sm:$0xff]  }
 0x12f   : > { %v4881_v17 = vpop.f32.mrf.mxu0  ;;  %4097 = vmatmul.mubr.bf16.vlgmr.msra.gmra.mxu0 %v1154_v8  ;;  %5195 = vmatprep.subr.bf16.mxu1 %v5595_v11  ;;  %v5633_v8 = vld [vmem:[%s5712_s18 + $0xab0] sm:$0xff]  }
 0x130   : > { %5174 = vmatpush3.bf16.msra.mxu0 %v5594_v9  ;;  %4176 = vmatprep.mubr.bf16.mxu0 %v1175_v20 }
 0x131   : > { %v4882_v22 = vpop.f32.mrf.mxu0  ;;  %v4903_v23 = vpop.f32.mrf.mxu1  ;;  %4137 = vmatmul.mubr.bf16.vlgmr.msra.gmra.mxu1 %v1176_v15  ;;  %5175 = vmatprep.subr.bf16.mxu0 %v5597_v16  ;;  %v5636_v16 = vld [vmem:[%s5712_s18 + $0xae8] sm:$0xff]  }
 0x132   : > { %v4883_v26 = vadd.f32 %v4882_v22, %v4881_v17  ;;  %5196 = vmatpush3.bf16.msra.mxu1 %v5596_v13  ;;  %4216 = vmatprep.mubr.bf16.mxu1 %v1179_v25  ;;  %v5635_v13 = vld [vmem:[%s5712_s18 + $0xa28] sm:$0xff]   ;;  %v5639_v22 = vld [vmem:[%s5712_s18 + $0xa20] sm:$0xff]  }
 0x133   : > { %v4884_v29 = vpop.f32.mrf.mxu0  ;;  %v4904_v30 = vpop.f32.mrf.mxu1  ;;  %5197 = vmatprep.subr.bf16.mxu1 %v5599_v21  ;;  %v5638_v21 = vld [vmem:[%s5712_s18 + $0xa60] sm:$0xff]  }
 0x134   : > { %v3619_v32 = vadd.f32 %v4883_v26, %v6052_v45  ;;  %v4905_v33 = vadd.f32 %v4904_v30, %v4903_v23  ;;  %5176 = vmatpush3.bf16.msra.mxu0 %v5598_v19  ;;  %v5610_v45 = vld [vmem:[%s5712_s18 + $0x918] sm:$0xff]   ;;  %v5641_v25 = vld [vmem:[%s5712_s18 + $0xaa0] sm:$0xff]  }
 0x135   : > { %v4885_v36 = vpop.f32.mrf.mxu0  ;;  %v4906_v38 = vpop.f32.mrf.mxu1  ;;  %5177 = vmatprep.subr.bf16.mxu0 %v5601_v28  ;;  %v5642_v26 = vld [vmem:[%s5712_s18 + $0xa58] sm:$0xff]  }
 0x136   : > { %v6097_v39 = vadd.f32 %v4905_v33, %v3619_v32  ;;  %5198 = vmatpush3.bf16.msra.mxu1 %v5600_v24  ;;  %v5640_v24 = vld [vmem:[%s5712_s18 + $0xae0] sm:$0xff]   ;;  %v5643_v28 = vld [vmem:[%s5712_s18 + $0xa18] sm:$0xff]   ;;  %v5647_v32 = vld [vmem:[%s5712_s18 + $0xa10] sm:$0xff]  }
 0x137   : > { %v4907_v42 = vpop.f32.mrf.mxu1  ;;  %5199 = vmatprep.subr.bf16.mxu1 %v5603_v35  ;;  %v5644_v29 = vld [vmem:[%s5712_s18 + $0xad8] sm:$0xff]   ;;  %v5648_v33 = vld [vmem:[%s5712_s18 + $0xad0] sm:$0xff]   ;;  %v5650_v36 = vld [vmem:[%s5712_s18 + $0xa48] sm:$0xff]  }
 0x138   : > { %5178 = vmatpush3.bf16.msra.mxu0 %v5602_v31  ;;  %v5645_v30 = vld [vmem:[%s5712_s18 + $0xa98] sm:$0xff]   ;;  %v5646_v31 = vld [vmem:[%s5712_s18 + $0xa50] sm:$0xff]   ;;  %v5652_v38 = vld [vmem:[%s5712_s18 + $0xac8] sm:$0xff]  }
 0x139   : > { %5179 = vmatprep.subr.bf16.mxu0 %v5605_v40  ;;  %v5649_v35 = vld [vmem:[%s5712_s18 + $0xa90] sm:$0xff]   ;;  %v5654_v40 = vld [vmem:[%s5712_s18 + $0xa40] sm:$0xff]  }
 0x13a   : > { %5200 = vmatpush3.bf16.msra.mxu1 %v5604_v37  ;;  %v5651_v37 = vld [vmem:[%s5712_s18 + $0xa08] sm:$0xff]   ;;  %v5656_v42 = vld [vmem:[%s5712_s18 + $0xac0] sm:$0xff]  }
 0x13b   : > { %5201 = vmatprep.subr.bf16.mxu1 %v5607_v43  ;;  %v196_v43 = vld [vmem:[%s5749_s22 + $0x28] sm:$0x1f] }
 0x13c   : > { %5180 = vmatpush3.bf16.msra.mxu0 %v5606_v41  ;;  %v5655_v41 = vld [vmem:[%s5712_s18 + $0xa00] sm:$0xff]  }
 0x13d   : > { %5181 = vmatprep.subr.bf16.mxu0 %v5609_v27  ;;  %v5658_v27 = vld [vmem:[%s5712_s18 + $0xa80] sm:$0xff]  }
 0x13e   : > { %5202 = vmatpush3.bf16.msra.mxu1 %v5608_v44  ;;  %v1187_v44 = vrot.slane %v196_v43, %v5752_v34 }
 0x13f   : > { %5203 = vmatprep.subr.bf16.mxu1 %v5611_v46 }
 0x140   : > { %5182 = vmatpush3.bf16.msra.mxu0 %v5610_v45  ;;  %v1195_v45 = vcombine.high %v1187_v44, %v1187_v44  ;;  %v1202_v46 = vrot.slane %v1187_v44, %v5752_v34 }
 0x141   : > { %5183 = vmatprep.subr.bf16.mxu0 %v5613_v48  ;;  %v5676_v48 = vmov 0.0  }
 0x142   : > { %5204 = vmatpush3.bf16.msra.mxu1 %v5612_v47  ;;  %v1216_v47 = vrot.slane %v1195_v45, %v5752_v34 }
 0x143   : > { %5205 = vmatprep.subr.bf16.mxu1 %v5615_v50 }
 0x144   : > { %5184 = vmatpush3.bf16.msra.mxu0 %v5614_v49  ;;  %v5659_v49 = vld [vmem:[%s5712_s18 + $0xb38] sm:$0xff]  }
 0x145   : > { %5185 = vmatprep.subr.bf16.mxu0 %v5617_v52  ;;  %v1218_v52 = vcombine.high %v1216_v47, %v1216_v47 }
 0x146   : > { %5206 = vmatpush3.bf16.msra.mxu1 %v5616_v51  ;;  %v1217_v51 = vcombine.high %v1202_v46, %v1202_v46 }
 0x147   : > { %5207 = vmatprep.subr.bf16.mxu1 %v5619_v54 }
 0x148   : > { %5186 = vmatpush3.bf16.msra.mxu0 %v5618_v53 }
 0x149   : > { %5187 = vmatprep.subr.bf16.mxu0 %v5621_v56  ;;  %v5660_v56 = vld [vmem:[%s5712_s18 + $0xb30] sm:$0xff]  }
 0x14a   : > { %5208 = vmatpush3.bf16.msra.mxu1 %v5620_v55 }
 0x14b   : > { %5209 = vmatprep.subr.bf16.mxu1 %v5623_v58 }
 0x14c   : > { %5188 = vmatpush3.bf16.msra.mxu0 %v5622_v57 }
 0x14d   : > { %5217 = vmatprep.subr.bf16.mxu0 %v5626_v61 }
 0x14e   : > { %5210 = vmatpush3.bf16.msra.mxu1 %v5625_v59 }
 0x14f   : > { %v4925_v3 = vpop.f32.mrf.mxu0  ;;  %4177 = vmatmul.mubr.bf16.vlgmr.msra.gmra.mxu0 %v1161_v60  ;;  %5239 = vmatprep.subr.bf16.mxu1 %v5628_v63 }
 0x150   : > { %5218 = vmatpush3.bf16.msra.mxu0 %v5627_v62  ;;  %4256 = vmatprep.mubr.bf16.mxu0 %v1216_v47 }
 0x151   : > { %v4926_v6 = vpop.f32.mrf.mxu0  ;;  %v4947_v7 = vpop.f32.mrf.mxu1  ;;  %4217 = vmatmul.mubr.bf16.vlgmr.msra.gmra.mxu1 %v1177_v1  ;;  %5219 = vmatprep.subr.bf16.mxu0 %v5630_v2  ;;  %v5662_v2 = vld [vmem:[%s5712_s18 + $0xb20] sm:$0xff]  }
 0x152   : > { %v4927_v9 = vadd.f32 %v4926_v6, %v4925_v3  ;;  %5240 = vmatpush3.bf16.msra.mxu1 %v5629_v0  ;;  %4296 = vmatprep.mubr.bf16.mxu1 %v1218_v52  ;;  %v5661_v0 = vld [vmem:[%s5712_s18 + $0xb28] sm:$0xff]   ;;  %v5663_v3 = vld [vmem:[%s5712_s18 + $0xb18] sm:$0xff]  }
 0x153   : > { %v4928_v11 = vpop.f32.mrf.mxu0  ;;  %v4948_v12 = vpop.f32.mrf.mxu1  ;;  %5241 = vmatprep.subr.bf16.mxu1 %v5632_v5  ;;  %v1180_v5 = vcombine.high %v196_v43, %v196_v43  ;;  %v5665_v6 = vld [vmem:[%s5712_s18 + $0xb08] sm:$0xff]  }
 0x154   : > { %v3699_v14 = vadd.f32 %v4927_v9, %v6097_v39  ;;  %v4949_v15 = vadd.f32 %v4948_v12, %v4947_v7  ;;  %5220 = vmatpush3.bf16.msra.mxu0 %v5631_v4  ;;  %v5653_v39 = vld [vmem:[%s5712_s18 + $0xa88] sm:$0xff]   ;;  %v5664_v4 = vld [vmem:[%s5712_s18 + $0xb10] sm:$0xff]  }
 0x155   : > { %v4929_v17 = vpop.f32.mrf.mxu0  ;;  %v4950_v19 = vpop.f32.mrf.mxu1  ;;  %5221 = vmatprep.subr.bf16.mxu0 %v5634_v10  ;;  %v1194_v7 = vrot.slane %v1180_v5, %v5752_v34 }
 0x156   : > { %v6134_v20 = vadd.f32 %v4949_v15, %v3699_v14  ;;  %5242 = vmatpush3.bf16.msra.mxu1 %v5633_v8  ;;  %v5666_v8 = vld [vmem:[%s5712_s18 + $0xb00] sm:$0xff]  }
 0x157   : > { %v4951_v23 = vpop.f32.mrf.mxu1  ;;  %5243 = vmatprep.subr.bf16.mxu1 %v5636_v16  ;;  %v1209_v9 = vrot.slane %v1194_v7, %v5752_v34 }
 0x158   : > { %5222 = vmatpush3.bf16.msra.mxu0 %v5635_v13 }
 0x159   : > { %5223 = vmatprep.subr.bf16.mxu0 %v5638_v21 }
 0x15a   : > { %5244 = vmatpush3.bf16.msra.mxu1 %v5637_v18 }
 0x15b   : > { %5245 = vmatprep.subr.bf16.mxu1 %v5640_v24 }
 0x15c   : > { %5224 = vmatpush3.bf16.msra.mxu0 %v5639_v22 }
 0x15d   : > { %5225 = vmatprep.subr.bf16.mxu0 %v5642_v26 }
 0x15e   : > { %5246 = vmatpush3.bf16.msra.mxu1 %v5641_v25 }
 0x15f   : > { %5247 = vmatprep.subr.bf16.mxu1 %v5644_v29 }
 0x160   : > { %5226 = vmatpush3.bf16.msra.mxu0 %v5643_v28 }
 0x161   : > { %5227 = vmatprep.subr.bf16.mxu0 %v5646_v31 }
 0x162   : > { %5248 = vmatpush3.bf16.msra.mxu1 %v5645_v30 }
 0x163   : > { %5249 = vmatprep.subr.bf16.mxu1 %v5648_v33 }
 0x164   : > { %5228 = vmatpush3.bf16.msra.mxu0 %v5647_v32 }
 0x165   : > { %5229 = vmatprep.subr.bf16.mxu0 %v5650_v36 }
 0x166   : > { %5250 = vmatpush3.bf16.msra.mxu1 %v5649_v35 }
 0x167   : > { %5251 = vmatprep.subr.bf16.mxu1 %v5652_v38 }
 0x168   : > { %5230 = vmatpush3.bf16.msra.mxu0 %v5651_v37 }
 0x169   : > { %5231 = vmatprep.subr.bf16.mxu0 %v5654_v40 }
 0x16a   : > { %5252 = vmatpush3.bf16.msra.mxu1 %v5653_v39 }
 0x16b   : > { %5253 = vmatprep.subr.bf16.mxu1 %v5656_v42 }
 0x16c   : > { %5232 = vmatpush3.bf16.msra.mxu0 %v5655_v41 }
 0x16d   : > { %5270 = vmatprep.subr.bf16.mxu0 %v5676_v48 }
 0x16e   : > { %5254 = vmatpush3.bf16.msra.mxu1 %v5658_v27 }
 0x16f   : > { %v4969_v50 = vpop.f32.mrf.mxu0  ;;  %4257 = vmatmul.mubr.bf16.vlgmr.msra.gmra.mxu0 %v1202_v46 }
 0x170   : > { %5271 = vmatpush3.bf16.msra.mxu0 %v5659_v49  ;;  %5286 = vmatprep.mubr.msk.bf16.mxu0 %vm5677_vm0, %v5676_v48 }
 0x171   : > { %v4970_v53 = vpop.f32.mrf.mxu0  ;;  %v4991_v54 = vpop.f32.mrf.mxu1  ;;  %4297 = vmatmul.mubr.bf16.vlgmr.msra.gmra.mxu1 %v1217_v51  ;;  %5272 = vmatprep.subr.bf16.mxu0 %v5676_v48 }
 0x172   : > { %v4971_v55 = vadd.f32 %v4970_v53, %v4969_v50 }
 0x173   : > { %v4972_v57 = vpop.f32.mrf.mxu0  ;;  %v4992_v58 = vpop.f32.mrf.mxu1 }
 0x174   : > { %v3779_v59 = vadd.f32 %v4971_v55, %v6134_v20  ;;  %v4993_v60 = vadd.f32 %v4992_v58, %v4991_v54  ;;  %5273 = vmatpush3.bf16.msra.mxu0 %v5660_v56 }
 0x175   : > { %v4973_v61 = vpop.f32.mrf.mxu0  ;;  %v4994_v62 = vpop.f32.mrf.mxu1  ;;  %5274 = vmatprep.subr.bf16.mxu0 %v5676_v48 }
 0x176   : > { %v3819_v63 = vadd.f32 %v4993_v60, %v3779_v59 }
 0x177   : > { %v4995_v1 = vpop.f32.mrf.mxu1 }
 0x178   : > { %5275 = vmatpush3.bf16.msra.mxu0 %v5661_v0 }
 0x179   : > { %5276 = vmatprep.subr.bf16.mxu0 %v5676_v48 }
 0x17c   : > { %5277 = vmatpush3.bf16.msra.mxu0 %v5662_v2 }
 0x17d   : > { %5278 = vmatprep.subr.bf16.mxu0 %v5676_v48 }
 0x180   : > { %5279 = vmatpush3.bf16.msra.mxu0 %v5663_v3 }
 0x181   : > { %5280 = vmatprep.subr.bf16.mxu0 %v5676_v48 }
 0x184   : > { %5281 = vmatpush3.bf16.msra.mxu0 %v5664_v4 }
 0x185   : > { %5282 = vmatprep.subr.bf16.mxu0 %v5676_v48 }
 0x188   : > { %5283 = vmatpush3.bf16.msra.mxu0 %v5665_v6 }
 0x189   : > { %5284 = vmatprep.subr.bf16.mxu0 %v5676_v48 }
 0x18c   : > { %5285 = vmatpush3.bf16.msra.mxu0 %v5666_v8 }
 0x18f   : > { %v5013_v10 = vpop.f32.mrf.mxu0  ;;  %5287 = vmatmul.mubr.bf16.vlgmr.msra.gmra.mxu0 %v1209_v9 }
 0x191   : > { %v5014_v11 = vpop.f32.mrf.mxu0  ;;  %v5035_v12 = vpop.f32.mrf.mxu1 }
 0x192   : > { %v5015_v13 = vadd.f32 %v5014_v11, %v5013_v10 }
 0x193   : > { %v5016_v14 = vpop.f32.mrf.mxu0  ;;  %v5036_v15 = vpop.f32.mrf.mxu1 }
 0x194   : > { %v3859_v16 = vadd.f32 %v5015_v13, %v3819_v63  ;;  %v5037_v17 = vadd.f32 %v5036_v15, %v5035_v12 }
 0x195   : > { %v5017_v18 = vpop.f32.mrf.mxu0  ;;  %v5038_v19 = vpop.f32.mrf.mxu1 }
 0x196   : > { %v3899_v20 = vadd.f32 %v5037_v17, %v3859_v16 }
 0x197   : > { %v5039_v21 = vpop.f32.mrf.mxu1 }
 0x1af   : > { %v5057_v22 = vpop.f32.mrf.mxu0 }
 0x1b1   : > { %v5058_v23 = vpop.f32.mrf.mxu0  ;;  %v5079_v24 = vpop.f32.mrf.mxu1 }
 0x1b2   : > { %v5059_v25 = vadd.f32 %v5058_v23, %v5057_v22 }
 0x1b3   : > { %v5060_v26 = vpop.f32.mrf.mxu0  ;;  %v5080_v34 = vpop.f32.mrf.mxu1 }
 0x1b4   : > { %v3939_v28 = vadd.f32 %v5059_v25, %v3899_v20  ;;  %v5081_v29 = vadd.f32 %v5080_v34, %v5079_v24 }
 0x1b5   : > { %v5061_v30 = vpop.f32.mrf.mxu0  ;;  %v5082_v31 = vpop.f32.mrf.mxu1 }
 0x1b6   : > { %v3979_v32 = vadd.f32 %v5081_v29, %v3939_v28 }
 0x1b7   : > { %v5083_v33 = vpop.f32.mrf.mxu1 }
 0x1cf   : > { %v5101_v35 = vpop.f32.mrf.mxu0 }
 0x1d1   : > { %v5102_v36 = vpop.f32.mrf.mxu0  ;;  %v5123_v37 = vpop.f32.mrf.mxu1 }
 0x1d2   : > { %v5103_v38 = vadd.f32 %v5102_v36, %v5101_v35 }
 0x1d3   : > { %v5104_v39 = vpop.f32.mrf.mxu0  ;;  %v5124_v40 = vpop.f32.mrf.mxu1 }
 0x1d4   : > { %v4019_v41 = vadd.f32 %v5103_v38, %v3979_v32  ;;  %v5125_v42 = vadd.f32 %v5124_v40, %v5123_v37 }
 0x1d5   : > { %v5105_v43 = vpop.f32.mrf.mxu0  ;;  %v5126_v44 = vpop.f32.mrf.mxu1 }
 0x1d6   : > { %v4059_v27 = vadd.f32 %v5125_v42, %v4019_v41 }
 0x1d7   : > { %v5127_v45 = vpop.f32.mrf.mxu1 }
 0x1ef   : > { %v5145_v46 = vpop.f32.mrf.mxu0 }
 0x1f1   : > { %v5146_v47 = vpop.f32.mrf.mxu0  ;;  %v5167_v48 = vpop.f32.mrf.mxu1 }
 0x1f2   : > { %v5147_v49 = vadd.f32 %v5146_v47, %v5145_v46 }
 0x1f3   : > { %v5148_v50 = vpop.f32.mrf.mxu0  ;;  %v5168_v51 = vpop.f32.mrf.mxu1 }
 0x1f4   : > { %v4099_v52 = vadd.f32 %v5147_v49, %v4059_v27  ;;  %v5169_v53 = vadd.f32 %v5168_v51, %v5167_v48 }
 0x1f5   : > { %v5149_v54 = vpop.f32.mrf.mxu0  ;;  %v5170_v55 = vpop.f32.mrf.mxu1 }
 0x1f6   : > { %v4139_v56 = vadd.f32 %v5169_v53, %v4099_v52 }
 0x1f7   : > { %v5171_v57 = vpop.f32.mrf.mxu1 }
 0x20f   : > { %v5189_v58 = vpop.f32.mrf.mxu0 }
 0x211   : > { %v5190_v59 = vpop.f32.mrf.mxu0  ;;  %v5211_v60 = vpop.f32.mrf.mxu1 }
 0x212   : > { %v5191_v10 = vadd.f32 %v5190_v59, %v5189_v58 }
 0x213   : > { %v5192_v61 = vpop.f32.mrf.mxu0  ;;  %v5212_v62 = vpop.f32.mrf.mxu1 }
 0x214   : > { %v4179_v11 = vadd.f32 %v5191_v10, %v4139_v56  ;;  %v5213_v12 = vadd.f32 %v5212_v62, %v5211_v60 }
 0x215   : > { %v5193_v63 = vpop.f32.mrf.mxu0  ;;  %v5214_v0 = vpop.f32.mrf.mxu1 }
 0x216   : > { %v4219_v14 = vadd.f32 %v5213_v12, %v4179_v11 }
 0x217   : > { %v5215_v1 = vpop.f32.mrf.mxu1 }
 0x22f   : > { %v5233_v2 = vpop.f32.mrf.mxu0 }
 0x231   : > { %v5234_v3 = vpop.f32.mrf.mxu0  ;;  %v5255_v4 = vpop.f32.mrf.mxu1 }
 0x232   : > { %v5235_v13 = vadd.f32 %v5234_v3, %v5233_v2 }
 0x233   : > { %v5236_v5 = vpop.f32.mrf.mxu0  ;;  %v5256_v6 = vpop.f32.mrf.mxu1 }
 0x234   : > { %v4259_v15 = vadd.f32 %v5235_v13, %v4219_v14  ;;  %v5257_v16 = vadd.f32 %v5256_v6, %v5255_v4 }
 0x235   : > { %v5237_v7 = vpop.f32.mrf.mxu0  ;;  %v5258_v8 = vpop.f32.mrf.mxu1 }
 0x236   : > { %v4299_v17 = vadd.f32 %v5257_v16, %v4259_v15 }
 0x237   : > { %v5259_v9 = vpop.f32.mrf.mxu1 }
 0x24f   : > { %v4338_v18 = vpop.f32.mrf.mxu0 }
 0x250   : > { %v4339_v19 = vadd.f32 %v4338_v18, %v4299_v17 }
 0x251   : > { %v5288_v20 = vpop.f32.mrf.mxu0 }
 0x252   : > { %4345 = vst.msk [vmem:[%s189_s30] sm:$0x3] %vm4344_vm1, %v4339_v19 }
 0x253   : > { %v4341_v21 = vpop.f32.mrf.mxu0 }
 0x255   : > { %v5289_v22 = vpop.f32.mrf.mxu0 }
 0x256 PF: > { %s13_s12 = sadd.s32 1, %s5673_s12  }
 0x257   : > { %p10_p7 = scmp.ge.s32.totalorder %s13_s12, 4  }
 0x259   :  { %12 = sbr.rel (!%p10_p7) target bundleno = 1 (0x1), region = 65 }

</bundles_post_ra>
